<compile_context>
chip_gen: v6e
topology: v6e:2x2x1
jax: 0.10.0
libtpu: 0.0.40
codegen_flags: <defaults>
</compile_context>

<pallas_src>
import functools

import numpy as np
import jax
import jax.numpy as jnp
from jax.experimental import pallas as pl
from jax.experimental.pallas import tpu as pltpu


# --------------------------------------------------------------------------------------
# Kernel 1: fused conv stack.  Each layer is one dense matmul + bias + ReLU.
# refs = (x_ref, w0_ref, b0_ref, w1_ref, b1_ref, ..., o_ref)
# --------------------------------------------------------------------------------------
def _conv_stack_kernel(*refs):
    x_ref, o_ref = refs[0], refs[-1]
    wb = refs[1:-1]
    y = x_ref[...]                                    # (frames_per_block, Hi*Wi*Ci)
    for layer in range(len(wb) // 2):
        w_ref, b_ref = wb[2 * layer], wb[2 * layer + 1]
        y = jnp.dot(y, w_ref[...], preferred_element_type=jnp.float32) + b_ref[...]
        y = jnp.maximum(y, 0.0)                       # Dropout3d = identity (eval); ReLU
    o_ref[...] = y                                    # lane-dense: last dim = Ho*Wo*Cl (1152)


def conv_stack(frames2d, conv_ws, conv_bs, *, frames_per_block=8):
    nt, in_feat = frames2d.shape
    if nt % frames_per_block != 0:
        frames_per_block = nt
    nblk = nt // frames_per_block
    out_feat = conv_ws[-1].shape[1]

    in_specs = [pl.BlockSpec((frames_per_block, in_feat), lambda i: (i, 0))]
    operands = [frames2d]
    for w_unf, b_unf in zip(conv_ws, conv_bs):
        in_specs.append(pl.BlockSpec(w_unf.shape, lambda i: (0, 0)))   # grid-invariant
        in_specs.append(pl.BlockSpec(b_unf.shape, lambda i: (0, 0)))
        operands += [w_unf, b_unf]

    return pl.pallas_call(
        _conv_stack_kernel,
        out_shape=jax.ShapeDtypeStruct((nt, out_feat), jnp.float32),
        grid=(nblk,),
        in_specs=in_specs,
        out_specs=pl.BlockSpec((frames_per_block, out_feat), lambda i: (i, 0)),
        compiler_params=pltpu.CompilerParams(dimension_semantics=("parallel",)),
    )(*operands)


# --------------------------------------------------------------------------------------
# Kernel 2: GRU (PyTorch gate convention, h0 = 0) + Linear + softmax, fully fused.
#   feats:  (T*B, F)   T-major sequence of per-frame features
#   wih_t:  (F, 3H_pad)   bih: (1, 3H_pad)      (columns [r | z | n | zero-pad])
#   whh_t:  (H, 3H_pad)   bhh: (1, 3H_pad)
#   wd:     (T*H, V_pad)  bd:  (1, V_pad)
#   out:    (B, V_pad) softmax probabilities (padding columns are exactly 0)
# --------------------------------------------------------------------------------------
def _gru_dense_softmax_kernel(feats_ref, wih_ref, bih_ref, whh_ref, bhh_ref,
                              wd_ref, bd_ref, o_ref, *, t_len, batch, hsz, vocab):
    # Hoisted input projection: one big MXU matmul covers every timestep.
    gx_all = jnp.dot(feats_ref[...], wih_ref[...],
                     preferred_element_type=jnp.float32) + bih_ref[...]      # (T*B, 3H_pad)
    whh = whh_ref[...]                                                       # small, resident
    bhh = bhh_ref[...]

    h = jnp.zeros((batch, hsz), jnp.float32)
    logits = jnp.zeros((batch, wd_ref.shape[1]), jnp.float32)
    # Only the tiny recurrent matmul stays serial; T is static -> fully unrolled for the
    # LLO scheduler, so MXU / EUP (sigmoid, tanh) / VPU work interleaves across steps.
    for t in range(t_len):
        gx = gx_all[t * batch:(t + 1) * batch, :]
        gh = jnp.dot(h, whh, preferred_element_type=jnp.float32) + bhh
        r = jax.nn.sigmoid(gx[:, 0:hsz] + gh[:, 0:hsz])
        z = jax.nn.sigmoid(gx[:, hsz:2 * hsz] + gh[:, hsz:2 * hsz])
        n = jnp.tanh(gx[:, 2 * hsz:3 * hsz] + r * gh[:, 2 * hsz:3 * hsz])
        h = (1.0 - z) * n + z * h
        # Dense layer fused into the recurrence: accumulate this timestep's contribution,
        # so the (B, T, H) hidden tensor is never materialized / stored lane-sparse.
        logits = logits + jnp.dot(h, wd_ref[t * hsz:(t + 1) * hsz, :],
                                  preferred_element_type=jnp.float32)
    logits = logits + bd_ref[...]

    # Softmax over the 128-padded vocab axis; padded columns masked to -inf -> prob 0.
    col = jax.lax.broadcasted_iota(jnp.int32, logits.shape, 1)
    logits = jnp.where(col < vocab, logits, jnp.float32(-1e30))
    m = jnp.max(logits, axis=-1, keepdims=True)
    e = jnp.exp(logits - m)
    s = jnp.sum(e, axis=-1, keepdims=True)
    inv = pl.reciprocal(s, approx=True)          # EUP slot (otherwise idle)
    inv = inv * (2.0 - s * inv)                  # one Newton step -> f32-accurate
    o_ref[...] = e * inv


def gru_dense_softmax(feats, wih_t, bih, whh_t, bhh, wd_pad, bd_pad,
                      *, t_len, batch, hsz, vocab):
    # TODO(synk): at production LipNet shapes (T~75, F~150K, 3xGRU-256) tile feats / wd over T
    # instead of untiled full-array VMEM specs (v7x scoped-VMEM budget is 32 MiB).
    vpad = wd_pad.shape[1]
    vmem = lambda: pl.BlockSpec(memory_space=pltpu.MemorySpace.VMEM)
    kern = functools.partial(_gru_dense_softmax_kernel,
                             t_len=t_len, batch=batch, hsz=hsz, vocab=vocab)
    return pl.pallas_call(
        kern,
        out_shape=jax.ShapeDtypeStruct((batch, vpad), jnp.float32),
        in_specs=[vmem() for _ in range(7)],
        out_specs=vmem(),
    )(feats, wih_t, bih, whh_t, bhh, wd_pad, bd_pad)


# --------------------------------------------------------------------------------------
# Full forward pass.
# --------------------------------------------------------------------------------------
def lipnet_forward(x, params, *, n_conv, gru_size, vocabsize):
    b_, c, t, h, w = x.shape                       # PyTorch NCDHW convention
    # T-major frame order so the conv output is directly the (T*B, F) GRU input sequence;
    # per-frame pixels flattened to (H, W, C) order once here (wrapper-side layout plumbing).
    frames2d = jnp.transpose(x, (2, 0, 3, 4, 1)).reshape(t * b_, h * w * c)
    conv_ws = [params[f"conv{i}_w"] for i in range(n_conv)]
    conv_bs = [params[f"conv{i}_b"] for i in range(n_conv)]
    feats = conv_stack(frames2d, conv_ws, conv_bs)                       # (T*B, F)
    probs_pad = gru_dense_softmax(
        feats, params["wih_t"], params["bih"], params["whh_t"], params["bhh"],
        params["dense_w_pad"], params["dense_b_pad"],
        t_len=t, batch=b_, hsz=gru_size, vocab=vocabsize)                # (B, V_pad)
    return probs_pad[:, :vocabsize]


# --------------------------------------------------------------------------------------
# Parameter construction (deterministic).  Conv weights are unfolded into dense
# (Hi*Wi*Ci, Ho*Wo*Co) matrices; the last layer emits features in torch's (C, H, W)
# order (permute(0,2,1,3,4).view), so the GRU weight needs no permutation.
# --------------------------------------------------------------------------------------
def _unfold_conv_layer(w4, bias, hi, wi, out_order):
    """Exact rewrite of a valid 2-D conv as a dense matrix: out_flat = in_flat @ W + b.

    w4: (Co, Ci, k, k) (torch Conv3d weight with the size-1 time axis dropped).
    Input features flattened in (h, w, c) order; output order "hwc" or "chw".
    """
    w4 = np.asarray(w4, np.float32)
    bias = np.asarray(bias, np.float32).reshape(-1)
    co_n, ci_n, k, _ = w4.shape
    ho, wo = hi - k + 1, wi - k + 1
    W = np.zeros((hi * wi * ci_n, ho * wo * co_n), np.float32)
    bvec = np.zeros((ho * wo * co_n,), np.float32)
    for i in range(ho):
        for j in range(wo):
            for co in range(co_n):
                oc = ((i * wo + j) * co_n + co) if out_order == "hwc" \
                    else ((co * ho + i) * wo + j)
                bvec[oc] = bias[co]
                for di in range(k):
                    for dj in range(k):
                        base = ((i + di) * wi + (j + dj)) * ci_n
                        W[base:base + ci_n, oc] = w4[co, :, di, dj]
    return W, bvec.reshape(1, -1), ho, wo


def init_params(key, conv_sizes, conv_kernel_sizes, gru_size, img_T, img_H, img_W, vocabsize):
    params = {}
    keys = jax.random.split(key, 16)
    ki = 0
    h, w = img_H, img_W
    n_conv = len(conv_sizes) - 1
    for idx in range(n_conv):
        cin, cout, k = conv_sizes[idx], conv_sizes[idx + 1], conv_kernel_sizes[idx]
        w4 = jax.random.normal(keys[ki], (cout, cin, k, k), jnp.float32) * 0.1; ki += 1
        bc = jax.random.normal(keys[ki], (cout,), jnp.float32) * 0.1; ki += 1
        order = "chw" if idx == n_conv - 1 else "hwc"
        w_unf, b_unf, h, w = _unfold_conv_layer(w4, bc, h, w, order)
        params[f"conv{idx}_w"] = jnp.asarray(w_unf)
        params[f"conv{idx}_b"] = jnp.asarray(b_unf)
    feat = conv_sizes[-1] * h * w

    g3 = 3 * gru_size
    g3p = ((g3 + 127) // 128) * 128                      # lane-dense gate axis (96 -> 128)
    wih = jax.random.normal(keys[ki], (g3, feat), jnp.float32) * 0.05; ki += 1
    whh = jax.random.normal(keys[ki], (g3, gru_size), jnp.float32) * 0.05; ki += 1
    bih = jax.random.normal(keys[ki], (g3,), jnp.float32) * 0.05; ki += 1
    bhh = jax.random.normal(keys[ki], (g3,), jnp.float32) * 0.05; ki += 1
    params["wih_t"] = jnp.zeros((feat, g3p), jnp.float32).at[:, :g3].set(wih.T)
    params["whh_t"] = jnp.zeros((gru_size, g3p), jnp.float32).at[:, :g3].set(whh.T)
    params["bih"] = jnp.zeros((1, g3p), jnp.float32).at[:, :g3].set(bih[None, :])
    params["bhh"] = jnp.zeros((1, g3p), jnp.float32).at[:, :g3].set(bhh[None, :])

    vpad = ((vocabsize + 127) // 128) * 128              # lane-dense vocab axis (28 -> 128)
    dw = jax.random.normal(keys[ki], (vocabsize, gru_size * img_T), jnp.float32) * 0.05; ki += 1
    db = jax.random.normal(keys[ki], (vocabsize,), jnp.float32) * 0.05; ki += 1
    params["dense_w_pad"] = (jnp.zeros((gru_size * img_T, vpad), jnp.float32)
                             .at[:, :vocabsize].set(dw.T))
    params["dense_b_pad"] = jnp.zeros((1, vpad), jnp.float32).at[:, :vocabsize].set(db[None, :])
    return params, feat


if __name__ == "__main__":
    B, T, H, W = 2, 8, 16, 16
    conv_sizes = (1, 4, 8)
    conv_kernel_sizes = (3, 3)
    gru_size = 32
    vocabsize = 28

    key = jax.random.PRNGKey(0)
    kx, kp = jax.random.split(key)

    # PyTorch Conv3d input convention: (B, C, T, H, W)
    x = jax.random.normal(kx, (B, conv_sizes[0], T, H, W), jnp.float32)
    params, feat = init_params(kp, conv_sizes, conv_kernel_sizes, gru_size, T, H, W, vocabsize)

    fwd = jax.jit(functools.partial(
        lipnet_forward, n_conv=len(conv_sizes) - 1, gru_size=gru_size, vocabsize=vocabsize))
    out = jax.block_until_ready(fwd(x, params))

    assert out.shape == (B, vocabsize), out.shape
    assert bool(jnp.all(jnp.isfinite(out)))
    assert bool(jnp.allclose(jnp.sum(out, axis=-1), 1.0, atol=1e-4))
    print("KERNEL_OK")
</pallas_src>

<mosaic_0001>
module attributes {stable_mosaic.version = 11 : i64} {
  func.func @_conv_stack_kernel(%arg0: i32, %arg1: memref<8x256xf32, #tpu.memory_space<vmem>>, %arg2: memref<256x784xf32, #tpu.memory_space<vmem>>, %arg3: memref<1x784xf32, #tpu.memory_space<vmem>>, %arg4: memref<784x1152xf32, #tpu.memory_space<vmem>>, %arg5: memref<1x1152xf32, #tpu.memory_space<vmem>>, %arg6: memref<8x1152xf32, #tpu.memory_space<vmem>>) attributes {dimension_semantics = [#tpu.dimension_semantics<parallel>], iteration_bounds = array<i64: 2>, scalar_prefetch = 0 : i64, scratch_operands = 0 : i64, tpu.core_type = #tpu.core_type<tc>, window_params = [{transform_indices = @transform_0, window_bounds = array<i64: 8, 256>}, {pipeline_mode = #tpu.pipeline_mode<synchronous>, transform_indices = @transform_1, window_bounds = array<i64: 256, 784>}, {pipeline_mode = #tpu.pipeline_mode<synchronous>, transform_indices = @transform_2, window_bounds = array<i64: 1, 784>}, {pipeline_mode = #tpu.pipeline_mode<synchronous>, transform_indices = @transform_3, window_bounds = array<i64: 784, 1152>}, {pipeline_mode = #tpu.pipeline_mode<synchronous>, transform_indices = @transform_4, window_bounds = array<i64: 1, 1152>}, {transform_indices = @transform_5, window_bounds = array<i64: 8, 1152>}]} {
    %c0 = arith.constant 0 : index
    %c0_0 = arith.constant 0 : index
    %0 = vector.load %arg1[%c0, %c0_0] : memref<8x256xf32, #tpu.memory_space<vmem>>, vector<8x256xf32>
    %c0_1 = arith.constant 0 : index
    %c0_2 = arith.constant 0 : index
    %1 = vector.load %arg2[%c0_1, %c0_2] : memref<256x784xf32, #tpu.memory_space<vmem>>, vector<256x784xf32>
    %cst = arith.constant dense<0.000000e+00> : vector<8x784xf32>
    %2 = tpu.matmul %0, %1, %cst {dimension_numbers = #tpu.dot_dimension_numbers<[1], [0], [0], [1], [0, 0, 1, 1], [], []>} : vector<8x256xf32>, vector<256x784xf32>, vector<8x784xf32> -> vector<8x784xf32>
    %c0_3 = arith.constant 0 : index
    %c0_4 = arith.constant 0 : index
    %3 = vector.load %arg3[%c0_3, %c0_4] : memref<1x784xf32, #tpu.memory_space<vmem>>, vector<1x784xf32>
    %4 = vector.broadcast %3 : vector<1x784xf32> to vector<8x784xf32>
    %5 = arith.addf %2, %4 : vector<8x784xf32>
    %cst_5 = arith.constant 0.000000e+00 : f32
    %6 = vector.broadcast %cst_5 : f32 to vector<8x784xf32>
    %7 = arith.maximumf %5, %6 : vector<8x784xf32>
    %c0_6 = arith.constant 0 : index
    %c0_7 = arith.constant 0 : index
    %8 = vector.load %arg4[%c0_6, %c0_7] : memref<784x1152xf32, #tpu.memory_space<vmem>>, vector<784x1152xf32>
    %cst_8 = arith.constant dense<0.000000e+00> : vector<8x1152xf32>
    %9 = tpu.matmul %7, %8, %cst_8 {dimension_numbers = #tpu.dot_dimension_numbers<[1], [0], [0], [1], [0, 0, 1, 1], [], []>} : vector<8x784xf32>, vector<784x1152xf32>, vector<8x1152xf32> -> vector<8x1152xf32>
    %c0_9 = arith.constant 0 : index
    %c0_10 = arith.constant 0 : index
    %10 = vector.load %arg5[%c0_9, %c0_10] : memref<1x1152xf32, #tpu.memory_space<vmem>>, vector<1x1152xf32>
    %11 = vector.broadcast %10 : vector<1x1152xf32> to vector<8x1152xf32>
    %12 = arith.addf %9, %11 : vector<8x1152xf32>
    %cst_11 = arith.constant 0.000000e+00 : f32
    %13 = vector.broadcast %cst_11 : f32 to vector<8x1152xf32>
    %14 = arith.maximumf %12, %13 : vector<8x1152xf32>
    %c0_12 = arith.constant 0 : index
    %c0_13 = arith.constant 0 : index
    %15 = vector.load %arg6[%c0_12, %c0_13] : memref<8x1152xf32, #tpu.memory_space<vmem>>, vector<8x1152xf32>
    tpu.vector_store %arg6[%c0_12, %c0_13], %14 {strides = array<i32>} : memref<8x1152xf32, #tpu.memory_space<vmem>>, vector<8x1152xf32>,
    return
  }
  func.func @transform_0(%arg0: i32) -> (i32, i32) {
    %c0_i32 = arith.constant 0 : i32
    %c0_i32_0 = arith.constant 0 : i32
    return %arg0, %c0_i32 : i32, i32
  }
  func.func @transform_1(%arg0: i32) -> (i32, i32) {
    %c0_i32 = arith.constant 0 : i32
    %c0_i32_0 = arith.constant 0 : i32
    %c0_i32_1 = arith.constant 0 : i32
    return %c0_i32, %c0_i32_0 : i32, i32
  }
  func.func @transform_2(%arg0: i32) -> (i32, i32) {
    %c0_i32 = arith.constant 0 : i32
    %c0_i32_0 = arith.constant 0 : i32
    %c0_i32_1 = arith.constant 0 : i32
    return %c0_i32, %c0_i32_0 : i32, i32
  }
  func.func @transform_3(%arg0: i32) -> (i32, i32) {
    %c0_i32 = arith.constant 0 : i32
    %c0_i32_0 = arith.constant 0 : i32
    %c0_i32_1 = arith.constant 0 : i32
    return %c0_i32, %c0_i32_0 : i32, i32
  }
  func.func @transform_4(%arg0: i32) -> (i32, i32) {
    %c0_i32 = arith.constant 0 : i32
    %c0_i32_0 = arith.constant 0 : i32
    %c0_i32_1 = arith.constant 0 : i32
    return %c0_i32, %c0_i32_0 : i32, i32
  }
  func.func @transform_5(%arg0: i32) -> (i32, i32) {
    %c0_i32 = arith.constant 0 : i32
    %c0_i32_0 = arith.constant 0 : i32
    return %arg0, %c0_i32 : i32, i32
  }
}

module attributes {stable_mosaic.version = 11 : i64} {
  func.func @_gru_dense_softmax_kernel(%arg0: memref<16x1152xf32, #tpu.memory_space<vmem>>, %arg1: memref<1152x128xf32, #tpu.memory_space<vmem>>, %arg2: memref<1x128xf32, #tpu.memory_space<vmem>>, %arg3: memref<32x128xf32, #tpu.memory_space<vmem>>, %arg4: memref<1x128xf32, #tpu.memory_space<vmem>>, %arg5: memref<256x128xf32, #tpu.memory_space<vmem>>, %arg6: memref<1x128xf32, #tpu.memory_space<vmem>>, %arg7: memref<2x128xf32, #tpu.memory_space<vmem>>) attributes {dimension_semantics = [], scalar_prefetch = 0 : i64, scratch_operands = 0 : i64, tpu.core_type = #tpu.core_type<tc>} {
    %c0 = arith.constant 0 : index
    %c0_0 = arith.constant 0 : index
    %0 = vector.load %arg0[%c0, %c0_0] : memref<16x1152xf32, #tpu.memory_space<vmem>>, vector<16x1152xf32>
    %c0_1 = arith.constant 0 : index
    %c0_2 = arith.constant 0 : index
    %1 = vector.load %arg1[%c0_1, %c0_2] : memref<1152x128xf32, #tpu.memory_space<vmem>>, vector<1152x128xf32>
    %cst = arith.constant dense<0.000000e+00> : vector<16x128xf32>
    %2 = tpu.matmul %0, %1, %cst {dimension_numbers = #tpu.dot_dimension_numbers<[1], [0], [0], [1], [0, 0, 1, 1], [], []>} : vector<16x1152xf32>, vector<1152x128xf32>, vector<16x128xf32> -> vector<16x128xf32>
    %c0_3 = arith.constant 0 : index
    %c0_4 = arith.constant 0 : index
    %3 = vector.load %arg2[%c0_3, %c0_4] : memref<1x128xf32, #tpu.memory_space<vmem>>, vector<1x128xf32>
    %4 = vector.broadcast %3 : vector<1x128xf32> to vector<16x128xf32>
    %5 = arith.addf %2, %4 : vector<16x128xf32>
    %c0_5 = arith.constant 0 : index
    %c0_6 = arith.constant 0 : index
    %6 = vector.load %arg3[%c0_5, %c0_6] : memref<32x128xf32, #tpu.memory_space<vmem>>, vector<32x128xf32>
    %c0_7 = arith.constant 0 : index
    %c0_8 = arith.constant 0 : index
    %7 = vector.load %arg4[%c0_7, %c0_8] : memref<1x128xf32, #tpu.memory_space<vmem>>, vector<1x128xf32>
    %cst_9 = arith.constant 0.000000e+00 : f32
    %8 = vector.broadcast %cst_9 : f32 to vector<2x32xf32>
    %cst_10 = arith.constant 0.000000e+00 : f32
    %9 = vector.broadcast %cst_10 : f32 to vector<2x128xf32>
    %10 = vector.extract_strided_slice %5 {offsets = [0, 0], sizes = [2, 128], strides = [1, 1]} : vector<16x128xf32> to vector<2x128xf32>
    %cst_11 = arith.constant dense<0.000000e+00> : vector<2x128xf32>
    %11 = tpu.matmul %8, %6, %cst_11 {dimension_numbers = #tpu.dot_dimension_numbers<[1], [0], [0], [1], [0, 0, 1, 1], [], []>} : vector<2x32xf32>, vector<32x128xf32>, vector<2x128xf32> -> vector<2x128xf32>
    %12 = vector.broadcast %7 : vector<1x128xf32> to vector<2x128xf32>
    %13 = arith.addf %11, %12 : vector<2x128xf32>
    %14 = vector.extract_strided_slice %10 {offsets = [0, 0], sizes = [2, 32], strides = [1, 1]} : vector<2x128xf32> to vector<2x32xf32>
    %15 = vector.extract_strided_slice %13 {offsets = [0, 0], sizes = [2, 32], strides = [1, 1]} : vector<2x128xf32> to vector<2x32xf32>
    %16 = arith.addf %14, %15 : vector<2x32xf32>
    %17 = arith.negf %16 : vector<2x32xf32>
    %18 = math.exp %17 : vector<2x32xf32>
    %cst_12 = arith.constant 1.000000e+00 : f32
    %19 = vector.broadcast %cst_12 : f32 to vector<2x32xf32>
    %20 = arith.addf %19, %18 : vector<2x32xf32>
    %21 = arith.divf %19, %20 : vector<2x32xf32>
    %22 = vector.extract_strided_slice %10 {offsets = [0, 32], sizes = [2, 32], strides = [1, 1]} : vector<2x128xf32> to vector<2x32xf32>
    %23 = vector.extract_strided_slice %13 {offsets = [0, 32], sizes = [2, 32], strides = [1, 1]} : vector<2x128xf32> to vector<2x32xf32>
    %24 = arith.addf %22, %23 : vector<2x32xf32>
    %25 = arith.negf %24 : vector<2x32xf32>
    %26 = math.exp %25 : vector<2x32xf32>
    %cst_13 = arith.constant 1.000000e+00 : f32
    %27 = vector.broadcast %cst_13 : f32 to vector<2x32xf32>
    %28 = arith.addf %27, %26 : vector<2x32xf32>
    %29 = arith.divf %27, %28 : vector<2x32xf32>
    %30 = vector.extract_strided_slice %10 {offsets = [0, 64], sizes = [2, 32], strides = [1, 1]} : vector<2x128xf32> to vector<2x32xf32>
    %31 = vector.extract_strided_slice %13 {offsets = [0, 64], sizes = [2, 32], strides = [1, 1]} : vector<2x128xf32> to vector<2x32xf32>
    %32 = arith.mulf %21, %31 : vector<2x32xf32>
    %33 = arith.addf %30, %32 : vector<2x32xf32>
    %34 = math.tanh %33 : vector<2x32xf32>
    %cst_14 = arith.constant 1.000000e+00 : f32
    %35 = vector.broadcast %cst_14 : f32 to vector<2x32xf32>
    %36 = arith.subf %35, %29 : vector<2x32xf32>
    %37 = arith.mulf %36, %34 : vector<2x32xf32>
    %38 = arith.mulf %29, %8 : vector<2x32xf32>
    %39 = arith.addf %37, %38 : vector<2x32xf32>
    %c0_15 = arith.constant 0 : index
    %c0_16 = arith.constant 0 : index
    %40 = vector.load %arg5[%c0_15, %c0_16] : memref<256x128xf32, #tpu.memory_space<vmem>>, vector<32x128xf32>
    %cst_17 = arith.constant dense<0.000000e+00> : vector<2x128xf32>
    %41 = tpu.matmul %39, %40, %cst_17 {dimension_numbers = #tpu.dot_dimension_numbers<[1], [0], [0], [1], [0, 0, 1, 1], [], []>} : vector<2x32xf32>, vector<32x128xf32>, vector<2x128xf32> -> vector<2x128xf32>
    %42 = arith.addf %9, %41 : vector<2x128xf32>
    %43 = vector.extract_strided_slice %5 {offsets = [2, 0], sizes = [2, 128], strides = [1, 1]} : vector<16x128xf32> to vector<2x128xf32>
    %cst_18 = arith.constant dense<0.000000e+00> : vector<2x128xf32>
    %44 = tpu.matmul %39, %6, %cst_18 {dimension_numbers = #tpu.dot_dimension_numbers<[1], [0], [0], [1], [0, 0, 1, 1], [], []>} : vector<2x32xf32>, vector<32x128xf32>, vector<2x128xf32> -> vector<2x128xf32>
    %45 = vector.broadcast %7 : vector<1x128xf32> to vector<2x128xf32>
    %46 = arith.addf %44, %45 : vector<2x128xf32>
    %47 = vector.extract_strided_slice %43 {offsets = [0, 0], sizes = [2, 32], strides = [1, 1]} : vector<2x128xf32> to vector<2x32xf32>
    %48 = vector.extract_strided_slice %46 {offsets = [0, 0], sizes = [2, 32], strides = [1, 1]} : vector<2x128xf32> to vector<2x32xf32>
    %49 = arith.addf %47, %48 : vector<2x32xf32>
    %50 = arith.negf %49 : vector<2x32xf32>
    %51 = math.exp %50 : vector<2x32xf32>
    %cst_19 = arith.constant 1.000000e+00 : f32
    %52 = vector.broadcast %cst_19 : f32 to vector<2x32xf32>
    %53 = arith.addf %52, %51 : vector<2x32xf32>
    %54 = arith.divf %52, %53 : vector<2x32xf32>
    %55 = vector.extract_strided_slice %43 {offsets = [0, 32], sizes = [2, 32], strides = [1, 1]} : vector<2x128xf32> to vector<2x32xf32>
    %56 = vector.extract_strided_slice %46 {offsets = [0, 32], sizes = [2, 32], strides = [1, 1]} : vector<2x128xf32> to vector<2x32xf32>
    %57 = arith.addf %55, %56 : vector<2x32xf32>
    %58 = arith.negf %57 : vector<2x32xf32>
    %59 = math.exp %58 : vector<2x32xf32>
    %cst_20 = arith.constant 1.000000e+00 : f32
    %60 = vector.broadcast %cst_20 : f32 to vector<2x32xf32>
    %61 = arith.addf %60, %59 : vector<2x32xf32>
    %62 = arith.divf %60, %61 : vector<2x32xf32>
    %63 = vector.extract_strided_slice %43 {offsets = [0, 64], sizes = [2, 32], strides = [1, 1]} : vector<2x128xf32> to vector<2x32xf32>
    %64 = vector.extract_strided_slice %46 {offsets = [0, 64], sizes = [2, 32], strides = [1, 1]} : vector<2x128xf32> to vector<2x32xf32>
    %65 = arith.mulf %54, %64 : vector<2x32xf32>
    %66 = arith.addf %63, %65 : vector<2x32xf32>
    %67 = math.tanh %66 : vector<2x32xf32>
    %cst_21 = arith.constant 1.000000e+00 : f32
    %68 = vector.broadcast %cst_21 : f32 to vector<2x32xf32>
    %69 = arith.subf %68, %62 : vector<2x32xf32>
    %70 = arith.mulf %69, %67 : vector<2x32xf32>
    %71 = arith.mulf %62, %39 : vector<2x32xf32>
    %72 = arith.addf %70, %71 : vector<2x32xf32>
    %c32 = arith.constant 32 : index
    %c0_22 = arith.constant 0 : index
    %73 = vector.load %arg5[%c32, %c0_22] : memref<256x128xf32, #tpu.memory_space<vmem>>, vector<32x128xf32>
    %cst_23 = arith.constant dense<0.000000e+00> : vector<2x128xf32>
    %74 = tpu.matmul %72, %73, %cst_23 {dimension_numbers = #tpu.dot_dimension_numbers<[1], [0], [0], [1], [0, 0, 1, 1], [], []>} : vector<2x32xf32>, vector<32x128xf32>, vector<2x128xf32> -> vector<2x128xf32>
    %75 = arith.addf %42, %74 : vector<2x128xf32>
    %76 = vector.extract_strided_slice %5 {offsets = [4, 0], sizes = [2, 128], strides = [1, 1]} : vector<16x128xf32> to vector<2x128xf32>
    %cst_24 = arith.constant dense<0.000000e+00> : vector<2x128xf32>
    %77 = tpu.matmul %72, %6, %cst_24 {dimension_numbers = #tpu.dot_dimension_numbers<[1], [0], [0], [1], [0, 0, 1, 1], [], []>} : vector<2x32xf32>, vector<32x128xf32>, vector<2x128xf32> -> vector<2x128xf32>
    %78 = vector.broadcast %7 : vector<1x128xf32> to vector<2x128xf32>
    %79 = arith.addf %77, %78 : vector<2x128xf32>
    %80 = vector.extract_strided_slice %76 {offsets = [0, 0], sizes = [2, 32], strides = [1, 1]} : vector<2x128xf32> to vector<2x32xf32>
    %81 = vector.extract_strided_slice %79 {offsets = [0, 0], sizes = [2, 32], strides = [1, 1]} : vector<2x128xf32> to vector<2x32xf32>
    %82 = arith.addf %80, %81 : vector<2x32xf32>
    %83 = arith.negf %82 : vector<2x32xf32>
    %84 = math.exp %83 : vector<2x32xf32>
    %cst_25 = arith.constant 1.000000e+00 : f32
    %85 = vector.broadcast %cst_25 : f32 to vector<2x32xf32>
    %86 = arith.addf %85, %84 : vector<2x32xf32>
    %87 = arith.divf %85, %86 : vector<2x32xf32>
    %88 = vector.extract_strided_slice %76 {offsets = [0, 32], sizes = [2, 32], strides = [1, 1]} : vector<2x128xf32> to vector<2x32xf32>
    %89 = vector.extract_strided_slice %79 {offsets = [0, 32], sizes = [2, 32], strides = [1, 1]} : vector<2x128xf32> to vector<2x32xf32>
    %90 = arith.addf %88, %89 : vector<2x32xf32>
    %91 = arith.negf %90 : vector<2x32xf32>
    %92 = math.exp %91 : vector<2x32xf32>
    %cst_26 = arith.constant 1.000000e+00 : f32
    %93 = vector.broadcast %cst_26 : f32 to vector<2x32xf32>
    %94 = arith.addf %93, %92 : vector<2x32xf32>
    %95 = arith.divf %93, %94 : vector<2x32xf32>
    %96 = vector.extract_strided_slice %76 {offsets = [0, 64], sizes = [2, 32], strides = [1, 1]} : vector<2x128xf32> to vector<2x32xf32>
    %97 = vector.extract_strided_slice %79 {offsets = [0, 64], sizes = [2, 32], strides = [1, 1]} : vector<2x128xf32> to vector<2x32xf32>
    %98 = arith.mulf %87, %97 : vector<2x32xf32>
    %99 = arith.addf %96, %98 : vector<2x32xf32>
    %100 = math.tanh %99 : vector<2x32xf32>
    %cst_27 = arith.constant 1.000000e+00 : f32
    %101 = vector.broadcast %cst_27 : f32 to vector<2x32xf32>
    %102 = arith.subf %101, %95 : vector<2x32xf32>
    %103 = arith.mulf %102, %100 : vector<2x32xf32>
    %104 = arith.mulf %95, %72 : vector<2x32xf32>
    %105 = arith.addf %103, %104 : vector<2x32xf32>
    %c64 = arith.constant 64 : index
    %c0_28 = arith.constant 0 : index
    %106 = vector.load %arg5[%c64, %c0_28] : memref<256x128xf32, #tpu.memory_space<vmem>>, vector<32x128xf32>
    %cst_29 = arith.constant dense<0.000000e+00> : vector<2x128xf32>
    %107 = tpu.matmul %105, %106, %cst_29 {dimension_numbers = #tpu.dot_dimension_numbers<[1], [0], [0], [1], [0, 0, 1, 1], [], []>} : vector<2x32xf32>, vector<32x128xf32>, vector<2x128xf32> -> vector<2x128xf32>
    %108 = arith.addf %75, %107 : vector<2x128xf32>
    %109 = vector.extract_strided_slice %5 {offsets = [6, 0], sizes = [2, 128], strides = [1, 1]} : vector<16x128xf32> to vector<2x128xf32>
    %cst_30 = arith.constant dense<0.000000e+00> : vector<2x128xf32>
    %110 = tpu.matmul %105, %6, %cst_30 {dimension_numbers = #tpu.dot_dimension_numbers<[1], [0], [0], [1], [0, 0, 1, 1], [], []>} : vector<2x32xf32>, vector<32x128xf32>, vector<2x128xf32> -> vector<2x128xf32>
    %111 = vector.broadcast %7 : vector<1x128xf32> to vector<2x128xf32>
    %112 = arith.addf %110, %111 : vector<2x128xf32>
    %113 = vector.extract_strided_slice %109 {offsets = [0, 0], sizes = [2, 32], strides = [1, 1]} : vector<2x128xf32> to vector<2x32xf32>
    %114 = vector.extract_strided_slice %112 {offsets = [0, 0], sizes = [2, 32], strides = [1, 1]} : vector<2x128xf32> to vector<2x32xf32>
    %115 = arith.addf %113, %114 : vector<2x32xf32>
    %116 = arith.negf %115 : vector<2x32xf32>
    %117 = math.exp %116 : vector<2x32xf32>
    %cst_31 = arith.constant 1.000000e+00 : f32
    %118 = vector.broadcast %cst_31 : f32 to vector<2x32xf32>
    %119 = arith.addf %118, %117 : vector<2x32xf32>
    %120 = arith.divf %118, %119 : vector<2x32xf32>
    %121 = vector.extract_strided_slice %109 {offsets = [0, 32], sizes = [2, 32], strides = [1, 1]} : vector<2x128xf32> to vector<2x32xf32>
    %122 = vector.extract_strided_slice %112 {offsets = [0, 32], sizes = [2, 32], strides = [1, 1]} : vector<2x128xf32> to vector<2x32xf32>
    %123 = arith.addf %121, %122 : vector<2x32xf32>
    %124 = arith.negf %123 : vector<2x32xf32>
    %125 = math.exp %124 : vector<2x32xf32>
    %cst_32 = arith.constant 1.000000e+00 : f32
    %126 = vector.broadcast %cst_32 : f32 to vector<2x32xf32>
    %127 = arith.addf %126, %125 : vector<2x32xf32>
    %128 = arith.divf %126, %127 : vector<2x32xf32>
    %129 = vector.extract_strided_slice %109 {offsets = [0, 64], sizes = [2, 32], strides = [1, 1]} : vector<2x128xf32> to vector<2x32xf32>
    %130 = vector.extract_strided_slice %112 {offsets = [0, 64], sizes = [2, 32], strides = [1, 1]} : vector<2x128xf32> to vector<2x32xf32>
    %131 = arith.mulf %120, %130 : vector<2x32xf32>
    %132 = arith.addf %129, %131 : vector<2x32xf32>
    %133 = math.tanh %132 : vector<2x32xf32>
    %cst_33 = arith.constant 1.000000e+00 : f32
    %134 = vector.broadcast %cst_33 : f32 to vector<2x32xf32>
    %135 = arith.subf %134, %128 : vector<2x32xf32>
    %136 = arith.mulf %135, %133 : vector<2x32xf32>
    %137 = arith.mulf %128, %105 : vector<2x32xf32>
    %138 = arith.addf %136, %137 : vector<2x32xf32>
    %c96 = arith.constant 96 : index
    %c0_34 = arith.constant 0 : index
    %139 = vector.load %arg5[%c96, %c0_34] : memref<256x128xf32, #tpu.memory_space<vmem>>, vector<32x128xf32>
    %cst_35 = arith.constant dense<0.000000e+00> : vector<2x128xf32>
    %140 = tpu.matmul %138, %139, %cst_35 {dimension_numbers = #tpu.dot_dimension_numbers<[1], [0], [0], [1], [0, 0, 1, 1], [], []>} : vector<2x32xf32>, vector<32x128xf32>, vector<2x128xf32> -> vector<2x128xf32>
    %141 = arith.addf %108, %140 : vector<2x128xf32>
    %142 = vector.extract_strided_slice %5 {offsets = [8, 0], sizes = [2, 128], strides = [1, 1]} : vector<16x128xf32> to vector<2x128xf32>
    %cst_36 = arith.constant dense<0.000000e+00> : vector<2x128xf32>
    %143 = tpu.matmul %138, %6, %cst_36 {dimension_numbers = #tpu.dot_dimension_numbers<[1], [0], [0], [1], [0, 0, 1, 1], [], []>} : vector<2x32xf32>, vector<32x128xf32>, vector<2x128xf32> -> vector<2x128xf32>
    %144 = vector.broadcast %7 : vector<1x128xf32> to vector<2x128xf32>
    %145 = arith.addf %143, %144 : vector<2x128xf32>
    %146 = vector.extract_strided_slice %142 {offsets = [0, 0], sizes = [2, 32], strides = [1, 1]} : vector<2x128xf32> to vector<2x32xf32>
    %147 = vector.extract_strided_slice %145 {offsets = [0, 0], sizes = [2, 32], strides = [1, 1]} : vector<2x128xf32> to vector<2x32xf32>
    %148 = arith.addf %146, %147 : vector<2x32xf32>
    %149 = arith.negf %148 : vector<2x32xf32>
    %150 = math.exp %149 : vector<2x32xf32>
    %cst_37 = arith.constant 1.000000e+00 : f32
    %151 = vector.broadcast %cst_37 : f32 to vector<2x32xf32>
    %152 = arith.addf %151, %150 : vector<2x32xf32>
    %153 = arith.divf %151, %152 : vector<2x32xf32>
    %154 = vector.extract_strided_slice %142 {offsets = [0, 32], sizes = [2, 32], strides = [1, 1]} : vector<2x128xf32> to vector<2x32xf32>
    %155 = vector.extract_strided_slice %145 {offsets = [0, 32], sizes = [2, 32], strides = [1, 1]} : vector<2x128xf32> to vector<2x32xf32>
    %156 = arith.addf %154, %155 : vector<2x32xf32>
    %157 = arith.negf %156 : vector<2x32xf32>
    %158 = math.exp %157 : vector<2x32xf32>
    %cst_38 = arith.constant 1.000000e+00 : f32
    %159 = vector.broadcast %cst_38 : f32 to vector<2x32xf32>
    %160 = arith.addf %159, %158 : vector<2x32xf32>
    %161 = arith.divf %159, %160 : vector<2x32xf32>
    %162 = vector.extract_strided_slice %142 {offsets = [0, 64], sizes = [2, 32], strides = [1, 1]} : vector<2x128xf32> to vector<2x32xf32>
    %163 = vector.extract_strided_slice %145 {offsets = [0, 64], sizes = [2, 32], strides = [1, 1]} : vector<2x128xf32> to vector<2x32xf32>
    %164 = arith.mulf %153, %163 : vector<2x32xf32>
    %165 = arith.addf %162, %164 : vector<2x32xf32>
    %166 = math.tanh %165 : vector<2x32xf32>
    %cst_39 = arith.constant 1.000000e+00 : f32
    %167 = vector.broadcast %cst_39 : f32 to vector<2x32xf32>
    %168 = arith.subf %167, %161 : vector<2x32xf32>
    %169 = arith.mulf %168, %166 : vector<2x32xf32>
    %170 = arith.mulf %161, %138 : vector<2x32xf32>
    %171 = arith.addf %169, %170 : vector<2x32xf32>
    %c128 = arith.constant 128 : index
    %c0_40 = arith.constant 0 : index
    %172 = vector.load %arg5[%c128, %c0_40] : memref<256x128xf32, #tpu.memory_space<vmem>>, vector<32x128xf32>
    %cst_41 = arith.constant dense<0.000000e+00> : vector<2x128xf32>
    %173 = tpu.matmul %171, %172, %cst_41 {dimension_numbers = #tpu.dot_dimension_numbers<[1], [0], [0], [1], [0, 0, 1, 1], [], []>} : vector<2x32xf32>, vector<32x128xf32>, vector<2x128xf32> -> vector<2x128xf32>
    %174 = arith.addf %141, %173 : vector<2x128xf32>
    %175 = vector.extract_strided_slice %5 {offsets = [10, 0], sizes = [2, 128], strides = [1, 1]} : vector<16x128xf32> to vector<2x128xf32>
    %cst_42 = arith.constant dense<0.000000e+00> : vector<2x128xf32>
    %176 = tpu.matmul %171, %6, %cst_42 {dimension_numbers = #tpu.dot_dimension_numbers<[1], [0], [0], [1], [0, 0, 1, 1], [], []>} : vector<2x32xf32>, vector<32x128xf32>, vector<2x128xf32> -> vector<2x128xf32>
    %177 = vector.broadcast %7 : vector<1x128xf32> to vector<2x128xf32>
    %178 = arith.addf %176, %177 : vector<2x128xf32>
    %179 = vector.extract_strided_slice %175 {offsets = [0, 0], sizes = [2, 32], strides = [1, 1]} : vector<2x128xf32> to vector<2x32xf32>
    %180 = vector.extract_strided_slice %178 {offsets = [0, 0], sizes = [2, 32], strides = [1, 1]} : vector<2x128xf32> to vector<2x32xf32>
    %181 = arith.addf %179, %180 : vector<2x32xf32>
    %182 = arith.negf %181 : vector<2x32xf32>
    %183 = math.exp %182 : vector<2x32xf32>
    %cst_43 = arith.constant 1.000000e+00 : f32
    %184 = vector.broadcast %cst_43 : f32 to vector<2x32xf32>
    %185 = arith.addf %184, %183 : vector<2x32xf32>
    %186 = arith.divf %184, %185 : vector<2x32xf32>
    %187 = vector.extract_strided_slice %175 {offsets = [0, 32], sizes = [2, 32], strides = [1, 1]} : vector<2x128xf32> to vector<2x32xf32>
    %188 = vector.extract_strided_slice %178 {offsets = [0, 32], sizes = [2, 32], strides = [1, 1]} : vector<2x128xf32> to vector<2x32xf32>
    %189 = arith.addf %187, %188 : vector<2x32xf32>
    %190 = arith.negf %189 : vector<2x32xf32>
    %191 = math.exp %190 : vector<2x32xf32>
    %cst_44 = arith.constant 1.000000e+00 : f32
    %192 = vector.broadcast %cst_44 : f32 to vector<2x32xf32>
    %193 = arith.addf %192, %191 : vector<2x32xf32>
    %194 = arith.divf %192, %193 : vector<2x32xf32>
    %195 = vector.extract_strided_slice %175 {offsets = [0, 64], sizes = [2, 32], strides = [1, 1]} : vector<2x128xf32> to vector<2x32xf32>
    %196 = vector.extract_strided_slice %178 {offsets = [0, 64], sizes = [2, 32], strides = [1, 1]} : vector<2x128xf32> to vector<2x32xf32>
    %197 = arith.mulf %186, %196 : vector<2x32xf32>
    %198 = arith.addf %195, %197 : vector<2x32xf32>
    %199 = math.tanh %198 : vector<2x32xf32>
    %cst_45 = arith.constant 1.000000e+00 : f32
    %200 = vector.broadcast %cst_45 : f32 to vector<2x32xf32>
    %201 = arith.subf %200, %194 : vector<2x32xf32>
    %202 = arith.mulf %201, %199 : vector<2x32xf32>
    %203 = arith.mulf %194, %171 : vector<2x32xf32>
    %204 = arith.addf %202, %203 : vector<2x32xf32>
    %c160 = arith.constant 160 : index
    %c0_46 = arith.constant 0 : index
    %205 = vector.load %arg5[%c160, %c0_46] : memref<256x128xf32, #tpu.memory_space<vmem>>, vector<32x128xf32>
    %cst_47 = arith.constant dense<0.000000e+00> : vector<2x128xf32>
    %206 = tpu.matmul %204, %205, %cst_47 {dimension_numbers = #tpu.dot_dimension_numbers<[1], [0], [0], [1], [0, 0, 1, 1], [], []>} : vector<2x32xf32>, vector<32x128xf32>, vector<2x128xf32> -> vector<2x128xf32>
    %207 = arith.addf %174, %206 : vector<2x128xf32>
    %208 = vector.extract_strided_slice %5 {offsets = [12, 0], sizes = [2, 128], strides = [1, 1]} : vector<16x128xf32> to vector<2x128xf32>
    %cst_48 = arith.constant dense<0.000000e+00> : vector<2x128xf32>
    %209 = tpu.matmul %204, %6, %cst_48 {dimension_numbers = #tpu.dot_dimension_numbers<[1], [0], [0], [1], [0, 0, 1, 1], [], []>} : vector<2x32xf32>, vector<32x128xf32>, vector<2x128xf32> -> vector<2x128xf32>
    %210 = vector.broadcast %7 : vector<1x128xf32> to vector<2x128xf32>
    %211 = arith.addf %209, %210 : vector<2x128xf32>
    %212 = vector.extract_strided_slice %208 {offsets = [0, 0], sizes = [2, 32], strides = [1, 1]} : vector<2x128xf32> to vector<2x32xf32>
    %213 = vector.extract_strided_slice %211 {offsets = [0, 0], sizes = [2, 32], strides = [1, 1]} : vector<2x128xf32> to vector<2x32xf32>
    %214 = arith.addf %212, %213 : vector<2x32xf32>
    %215 = arith.negf %214 : vector<2x32xf32>
    %216 = math.exp %215 : vector<2x32xf32>
    %cst_49 = arith.constant 1.000000e+00 : f32
    %217 = vector.broadcast %cst_49 : f32 to vector<2x32xf32>
    %218 = arith.addf %217, %216 : vector<2x32xf32>
    %219 = arith.divf %217, %218 : vector<2x32xf32>
    %220 = vector.extract_strided_slice %208 {offsets = [0, 32], sizes = [2, 32], strides = [1, 1]} : vector<2x128xf32> to vector<2x32xf32>
    %221 = vector.extract_strided_slice %211 {offsets = [0, 32], sizes = [2, 32], strides = [1, 1]} : vector<2x128xf32> to vector<2x32xf32>
    %222 = arith.addf %220, %221 : vector<2x32xf32>
    %223 = arith.negf %222 : vector<2x32xf32>
    %224 = math.exp %223 : vector<2x32xf32>
    %cst_50 = arith.constant 1.000000e+00 : f32
    %225 = vector.broadcast %cst_50 : f32 to vector<2x32xf32>
    %226 = arith.addf %225, %224 : vector<2x32xf32>
    %227 = arith.divf %225, %226 : vector<2x32xf32>
    %228 = vector.extract_strided_slice %208 {offsets = [0, 64], sizes = [2, 32], strides = [1, 1]} : vector<2x128xf32> to vector<2x32xf32>
    %229 = vector.extract_strided_slice %211 {offsets = [0, 64], sizes = [2, 32], strides = [1, 1]} : vector<2x128xf32> to vector<2x32xf32>
    %230 = arith.mulf %219, %229 : vector<2x32xf32>
    %231 = arith.addf %228, %230 : vector<2x32xf32>
    %232 = math.tanh %231 : vector<2x32xf32>
    %cst_51 = arith.constant 1.000000e+00 : f32
    %233 = vector.broadcast %cst_51 : f32 to vector<2x32xf32>
    %234 = arith.subf %233, %227 : vector<2x32xf32>
    %235 = arith.mulf %234, %232 : vector<2x32xf32>
    %236 = arith.mulf %227, %204 : vector<2x32xf32>
    %237 = arith.addf %235, %236 : vector<2x32xf32>
    %c192 = arith.constant 192 : index
    %c0_52 = arith.constant 0 : index
    %238 = vector.load %arg5[%c192, %c0_52] : memref<256x128xf32, #tpu.memory_space<vmem>>, vector<32x128xf32>
    %cst_53 = arith.constant dense<0.000000e+00> : vector<2x128xf32>
    %239 = tpu.matmul %237, %238, %cst_53 {dimension_numbers = #tpu.dot_dimension_numbers<[1], [0], [0], [1], [0, 0, 1, 1], [], []>} : vector<2x32xf32>, vector<32x128xf32>, vector<2x128xf32> -> vector<2x128xf32>
    %240 = arith.addf %207, %239 : vector<2x128xf32>
    %241 = vector.extract_strided_slice %5 {offsets = [14, 0], sizes = [2, 128], strides = [1, 1]} : vector<16x128xf32> to vector<2x128xf32>
    %cst_54 = arith.constant dense<0.000000e+00> : vector<2x128xf32>
    %242 = tpu.matmul %237, %6, %cst_54 {dimension_numbers = #tpu.dot_dimension_numbers<[1], [0], [0], [1], [0, 0, 1, 1], [], []>} : vector<2x32xf32>, vector<32x128xf32>, vector<2x128xf32> -> vector<2x128xf32>
    %243 = vector.broadcast %7 : vector<1x128xf32> to vector<2x128xf32>
    %244 = arith.addf %242, %243 : vector<2x128xf32>
    %245 = vector.extract_strided_slice %241 {offsets = [0, 0], sizes = [2, 32], strides = [1, 1]} : vector<2x128xf32> to vector<2x32xf32>
    %246 = vector.extract_strided_slice %244 {offsets = [0, 0], sizes = [2, 32], strides = [1, 1]} : vector<2x128xf32> to vector<2x32xf32>
    %247 = arith.addf %245, %246 : vector<2x32xf32>
    %248 = arith.negf %247 : vector<2x32xf32>
    %249 = math.exp %248 : vector<2x32xf32>
    %cst_55 = arith.constant 1.000000e+00 : f32
    %250 = vector.broadcast %cst_55 : f32 to vector<2x32xf32>
    %251 = arith.addf %250, %249 : vector<2x32xf32>
    %252 = arith.divf %250, %251 : vector<2x32xf32>
    %253 = vector.extract_strided_slice %241 {offsets = [0, 32], sizes = [2, 32], strides = [1, 1]} : vector<2x128xf32> to vector<2x32xf32>
    %254 = vector.extract_strided_slice %244 {offsets = [0, 32], sizes = [2, 32], strides = [1, 1]} : vector<2x128xf32> to vector<2x32xf32>
    %255 = arith.addf %253, %254 : vector<2x32xf32>
    %256 = arith.negf %255 : vector<2x32xf32>
    %257 = math.exp %256 : vector<2x32xf32>
    %cst_56 = arith.constant 1.000000e+00 : f32
    %258 = vector.broadcast %cst_56 : f32 to vector<2x32xf32>
    %259 = arith.addf %258, %257 : vector<2x32xf32>
    %260 = arith.divf %258, %259 : vector<2x32xf32>
    %261 = vector.extract_strided_slice %241 {offsets = [0, 64], sizes = [2, 32], strides = [1, 1]} : vector<2x128xf32> to vector<2x32xf32>
    %262 = vector.extract_strided_slice %244 {offsets = [0, 64], sizes = [2, 32], strides = [1, 1]} : vector<2x128xf32> to vector<2x32xf32>
    %263 = arith.mulf %252, %262 : vector<2x32xf32>
    %264 = arith.addf %261, %263 : vector<2x32xf32>
    %265 = math.tanh %264 : vector<2x32xf32>
    %cst_57 = arith.constant 1.000000e+00 : f32
    %266 = vector.broadcast %cst_57 : f32 to vector<2x32xf32>
    %267 = arith.subf %266, %260 : vector<2x32xf32>
    %268 = arith.mulf %267, %265 : vector<2x32xf32>
    %269 = arith.mulf %260, %237 : vector<2x32xf32>
    %270 = arith.addf %268, %269 : vector<2x32xf32>
    %c224 = arith.constant 224 : index
    %c0_58 = arith.constant 0 : index
    %271 = vector.load %arg5[%c224, %c0_58] : memref<256x128xf32, #tpu.memory_space<vmem>>, vector<32x128xf32>
    %cst_59 = arith.constant dense<0.000000e+00> : vector<2x128xf32>
    %272 = tpu.matmul %270, %271, %cst_59 {dimension_numbers = #tpu.dot_dimension_numbers<[1], [0], [0], [1], [0, 0, 1, 1], [], []>} : vector<2x32xf32>, vector<32x128xf32>, vector<2x128xf32> -> vector<2x128xf32>
    %273 = arith.addf %240, %272 : vector<2x128xf32>
    %c0_60 = arith.constant 0 : index
    %c0_61 = arith.constant 0 : index
    %274 = vector.load %arg6[%c0_60, %c0_61] : memref<1x128xf32, #tpu.memory_space<vmem>>, vector<1x128xf32>
    %275 = vector.broadcast %274 : vector<1x128xf32> to vector<2x128xf32>
    %276 = arith.addf %273, %275 : vector<2x128xf32>
    %277 = tpu.iota {dimensions = array<i32: 1>} : vector<2x128xi32>
    %c28_i32 = arith.constant 28 : i32
    %278 = vector.broadcast %c28_i32 : i32 to vector<2x128xi32>
    %279 = arith.cmpi slt, %277, %278 : vector<2x128xi32>
    %cst_62 = arith.constant -1.000000e+30 : f32
    %280 = vector.broadcast %cst_62 : f32 to vector<2x128xf32>
    %281 = arith.select %279, %276, %280 : vector<2x128xi1>, vector<2x128xf32>
    %cst_63 = arith.constant dense<0xFF800000> : vector<2xf32>
    %282 = vector.multi_reduction <maximumf>, %281, %cst_63 [1] : vector<2x128xf32> to vector<2xf32>
    %283 = vector.shape_cast %282 : vector<2xf32> to vector<2x1xf32>
    %284 = vector.broadcast %283 : vector<2x1xf32> to vector<2x128xf32>
    %285 = arith.subf %281, %284 : vector<2x128xf32>
    %286 = math.exp %285 : vector<2x128xf32>
    %cst_64 = arith.constant dense<0.000000e+00> : vector<2xf32>
    %287 = vector.multi_reduction <add>, %286, %cst_64 [1] : vector<2x128xf32> to vector<2xf32>
    %288 = vector.shape_cast %287 : vector<2xf32> to vector<2x1xf32>
    %289 = tpu.reciprocal %288 {approx = true} : vector<2x1xf32> -> vector<2x1xf32>
    %290 = arith.mulf %288, %289 : vector<2x1xf32>
    %cst_65 = arith.constant 2.000000e+00 : f32
    %291 = vector.broadcast %cst_65 : f32 to vector<2x1xf32>
    %292 = arith.subf %291, %290 : vector<2x1xf32>
    %293 = arith.mulf %289, %292 : vector<2x1xf32>
    %294 = vector.broadcast %293 : vector<2x1xf32> to vector<2x128xf32>
    %295 = arith.mulf %286, %294 : vector<2x128xf32>
    %c0_66 = arith.constant 0 : index
    %c0_67 = arith.constant 0 : index
    %296 = vector.load %arg7[%c0_66, %c0_67] : memref<2x128xf32, #tpu.memory_space<vmem>>, vector<2x128xf32>
    tpu.vector_store %arg7[%c0_66, %c0_67], %295 {strides = array<i32>} : memref<2x128xf32, #tpu.memory_space<vmem>>, vector<2x128xf32>,
    return
  }
}

</mosaic_0001>

<bundles_post_ra>
// kernel: lipnet_forward.3
= control target key start
LH: loop header
LB: loop body
LE: loop exit
PB: predicated region body
PF: predicated region fallthrough
CT: control target
= control target key end

     0   :  { %s3504_s0 = inlined_call_operand.vmem [shape: f32[16,1152], index: 0, kind: input, shape index: {}]   ;;  %s3505_s1 = inlined_call_operand.vmem [shape: f32[1152,128], index: 1, kind: input, shape index: {}]   ;;  %s3506_s2 = inlined_call_operand.vmem [shape: f32[1,128], index: 2, kind: input, shape index: {}]   ;;  %s3507_s3 = inlined_call_operand.vmem [shape: f32[32,128], index: 3, kind: input, shape index: {}]   ;;  %s3508_s4 = inlined_call_operand.vmem [shape: f32[1,128], index: 4, kind: input, shape index: {}]   ;;  %s3509_s5 = inlined_call_operand.vmem [shape: f32[256,128], index: 5, kind: input, shape index: {}]   ;;  %s3510_s6 = inlined_call_operand.vmem [shape: f32[1,128], index: 6, kind: input, shape index: {}]   ;;  %s3511_s7 = inlined_call_operand.hbm [shape: f32[2,128], index: 7, kind: output, shape index: {}]  }
   0x1   :  { %v76_v0 = vld [vmem:[%s3505_s1 + $0xf8] sm:$0xff]  ;;  %v75_v4 = vld [vmem:[%s3505_s1 + $0xf0] sm:$0xff]  ;;  %v74_v8 = vld [vmem:[%s3505_s1 + $0xe8] sm:$0xff] }
   0x2   :  { %v108_v1 = vld [vmem:[%s3505_s1 + $0x1f8] sm:$0xff]  ;;  %2091 = vmatprep.subr.mxu0 %v76_v0  ;;  %v107_v5 = vld [vmem:[%s3505_s1 + $0x1f0] sm:$0xff]  ;;  %v106_v9 = vld [vmem:[%s3505_s1 + $0x1e8] sm:$0xff] }
   0x3   :  { %v60_v2 = vld [vmem:[%s3505_s1 + $0x78] sm:$0xff]  ;;  %2129 = vmatprep.subr.mxu1 %v108_v1  ;;  %v59_v6 = vld [vmem:[%s3505_s1 + $0x70] sm:$0xff]  ;;  %v58_v10 = vld [vmem:[%s3505_s1 + $0x68] sm:$0xff] }
   0x4   :  { %v92_v3 = vld [vmem:[%s3505_s1 + $0x178] sm:$0xff]  ;;  %2092 = vmatpush3.msra.mxu0 %v60_v2  ;;  %v91_v7 = vld [vmem:[%s3505_s1 + $0x170] sm:$0xff]  ;;  %v90_v11 = vld [vmem:[%s3505_s1 + $0x168] sm:$0xff] }
   0x5   :  { %2130 = vmatpush3.msra.mxu1 %v92_v3  ;;  %2093 = vmatprep.subr.mxu0 %v75_v4  ;;  %v73_v12 = vld [vmem:[%s3505_s1 + $0xe0] sm:$0xff]  ;;  %v72_v16 = vld [vmem:[%s3505_s1 + $0xd8] sm:$0xff]  ;;  %v71_v20 = vld [vmem:[%s3505_s1 + $0xd0] sm:$0xff] }
   0x6   :  { %2131 = vmatprep.subr.mxu1 %v107_v5  ;;  %2094 = vmatpush3.msra.mxu0 %v59_v6  ;;  %v105_v13 = vld [vmem:[%s3505_s1 + $0x1e0] sm:$0xff]  ;;  %v104_v17 = vld [vmem:[%s3505_s1 + $0x1d8] sm:$0xff]  ;;  %v103_v21 = vld [vmem:[%s3505_s1 + $0x1d0] sm:$0xff] }
   0x7   :  { %2132 = vmatpush3.msra.mxu1 %v91_v7  ;;  %2095 = vmatprep.subr.mxu0 %v74_v8  ;;  %v57_v14 = vld [vmem:[%s3505_s1 + $0x60] sm:$0xff]  ;;  %v56_v18 = vld [vmem:[%s3505_s1 + $0x58] sm:$0xff]  ;;  %v55_v22 = vld [vmem:[%s3505_s1 + $0x50] sm:$0xff] }
   0x8   :  { %2133 = vmatprep.subr.mxu1 %v106_v9  ;;  %v89_v15 = vld [vmem:[%s3505_s1 + $0x160] sm:$0xff]  ;;  %2096 = vmatpush3.msra.mxu0 %v58_v10  ;;  %v88_v19 = vld [vmem:[%s3505_s1 + $0x158] sm:$0xff]  ;;  %v87_v23 = vld [vmem:[%s3505_s1 + $0x150] sm:$0xff] }
   0x9   :  { %2134 = vmatpush3.msra.mxu1 %v90_v11  ;;  %2097 = vmatprep.subr.mxu0 %v73_v12  ;;  %v70_v24 = vld [vmem:[%s3505_s1 + $0xc8] sm:$0xff]  ;;  %v69_v28 = vld [vmem:[%s3505_s1 + $0xc0] sm:$0xff]  ;;  %v68_v32 = vld [vmem:[%s3505_s1 + $0xb8] sm:$0xff] }
   0xa   :  { %2135 = vmatprep.subr.mxu1 %v105_v13  ;;  %2098 = vmatpush3.msra.mxu0 %v57_v14  ;;  %v102_v25 = vld [vmem:[%s3505_s1 + $0x1c8] sm:$0xff]  ;;  %v101_v29 = vld [vmem:[%s3505_s1 + $0x1c0] sm:$0xff]  ;;  %v100_v33 = vld [vmem:[%s3505_s1 + $0x1b8] sm:$0xff] }
   0xb   :  { %2136 = vmatpush3.msra.mxu1 %v89_v15  ;;  %2099 = vmatprep.subr.mxu0 %v72_v16  ;;  %v54_v26 = vld [vmem:[%s3505_s1 + $0x48] sm:$0xff]  ;;  %v53_v30 = vld [vmem:[%s3505_s1 + $0x40] sm:$0xff]  ;;  %v52_v34 = vld [vmem:[%s3505_s1 + $0x38] sm:$0xff] }
   0xc   :  { %2137 = vmatprep.subr.mxu1 %v104_v17  ;;  %2100 = vmatpush3.msra.mxu0 %v56_v18  ;;  %v86_v27 = vld [vmem:[%s3505_s1 + $0x148] sm:$0xff]  ;;  %v85_v31 = vld [vmem:[%s3505_s1 + $0x140] sm:$0xff]  ;;  %v84_v35 = vld [vmem:[%s3505_s1 + $0x138] sm:$0xff] }
   0xd   :  { %2138 = vmatpush3.msra.mxu1 %v88_v19  ;;  %2101 = vmatprep.subr.mxu0 %v71_v20  ;;  %v67_v36 = vld [vmem:[%s3505_s1 + $0xb0] sm:$0xff]  ;;  %v66_v40 = vld [vmem:[%s3505_s1 + $0xa8] sm:$0xff]  ;;  %v65_v44 = vld [vmem:[%s3505_s1 + $0xa0] sm:$0xff] }
   0xe   :  { %2139 = vmatprep.subr.mxu1 %v103_v21  ;;  %2102 = vmatpush3.msra.mxu0 %v55_v22  ;;  %v99_v37 = vld [vmem:[%s3505_s1 + $0x1b0] sm:$0xff]  ;;  %v98_v41 = vld [vmem:[%s3505_s1 + $0x1a8] sm:$0xff]  ;;  %v97_v45 = vld [vmem:[%s3505_s1 + $0x1a0] sm:$0xff] }
   0xf   :  { %2140 = vmatpush3.msra.mxu1 %v87_v23  ;;  %2103 = vmatprep.subr.mxu0 %v70_v24  ;;  %v51_v38 = vld [vmem:[%s3505_s1 + $0x30] sm:$0xff]  ;;  %v50_v42 = vld [vmem:[%s3505_s1 + $0x28] sm:$0xff]  ;;  %v49_v46 = vld [vmem:[%s3505_s1 + $0x20] sm:$0xff] }
  0x10   :  { %2141 = vmatprep.subr.mxu1 %v102_v25  ;;  %2104 = vmatpush3.msra.mxu0 %v54_v26  ;;  %v83_v39 = vld [vmem:[%s3505_s1 + $0x130] sm:$0xff]  ;;  %v82_v43 = vld [vmem:[%s3505_s1 + $0x128] sm:$0xff]  ;;  %v81_v47 = vld [vmem:[%s3505_s1 + $0x120] sm:$0xff] }
  0x11   :  { %2142 = vmatpush3.msra.mxu1 %v86_v27  ;;  %2105 = vmatprep.subr.mxu0 %v69_v28  ;;  %v64_v48 = vld [vmem:[%s3505_s1 + $0x98] sm:$0xff]  ;;  %v63_v52 = vld [vmem:[%s3505_s1 + $0x90] sm:$0xff]  ;;  %v62_v56 = vld [vmem:[%s3505_s1 + $0x88] sm:$0xff] }
  0x12   :  { %2143 = vmatprep.subr.mxu1 %v101_v29  ;;  %2106 = vmatpush3.msra.mxu0 %v53_v30  ;;  %v96_v49 = vld [vmem:[%s3505_s1 + $0x198] sm:$0xff]  ;;  %v95_v53 = vld [vmem:[%s3505_s1 + $0x190] sm:$0xff]  ;;  %v94_v57 = vld [vmem:[%s3505_s1 + $0x188] sm:$0xff] }
  0x13   :  { %2144 = vmatpush3.msra.mxu1 %v85_v31  ;;  %2107 = vmatprep.subr.mxu0 %v68_v32  ;;  %v48_v50 = vld [vmem:[%s3505_s1 + $0x18] sm:$0xff]  ;;  %v47_v54 = vld [vmem:[%s3505_s1 + $0x10] sm:$0xff]  ;;  %v46_v58 = vld [vmem:[%s3505_s1 + $0x8] sm:$0xff] }
  0x14   :  { %2145 = vmatprep.subr.mxu1 %v100_v33  ;;  %2108 = vmatpush3.msra.mxu0 %v52_v34  ;;  %v80_v51 = vld [vmem:[%s3505_s1 + $0x118] sm:$0xff]  ;;  %v79_v55 = vld [vmem:[%s3505_s1 + $0x110] sm:$0xff]  ;;  %v78_v59 = vld [vmem:[%s3505_s1 + $0x108] sm:$0xff] }
  0x15   :  { %2146 = vmatpush3.msra.mxu1 %v84_v35  ;;  %2109 = vmatprep.subr.mxu0 %v67_v36  ;;  %v61_v60 = vld [vmem:[%s3505_s1 + $0x80] sm:$0xff]  ;;  %v28_v63 = vld [vmem:[%s3504_s0 + $0x8] sm:$0xff]  ;;  %v30_v1 = vld [vmem:[%s3504_s0 + $0x18] sm:$0xff] }
  0x16   :  { %2147 = vmatprep.subr.mxu1 %v99_v37  ;;  %2110 = vmatpush3.msra.mxu0 %v51_v38  ;;  %v93_v61 = vld [vmem:[%s3505_s1 + $0x180] sm:$0xff]  ;;  %v29_v3 = vld [vmem:[%s3504_s0 + $0x10] sm:$0xff]  ;;  %v140_v4 = vld [vmem:[%s3505_s1 + $0x2f8] sm:$0xff] }
  0x17   :  { %2148 = vmatpush3.msra.mxu1 %v83_v39  ;;  %2111 = vmatprep.subr.mxu0 %v66_v40  ;;  %v45_v62 = vld [vmem:[%s3505_s1] sm:$0xff]  ;;  %v172_v5 = vld [vmem:[%s3505_s1 + $0x3f8] sm:$0xff]  ;;  %v139_v8 = vld [vmem:[%s3505_s1 + $0x2f0] sm:$0xff] }
  0x18   :  { %2149 = vmatprep.subr.mxu1 %v98_v41  ;;  %2112 = vmatpush3.msra.mxu0 %v50_v42  ;;  %v77_v0 = vld [vmem:[%s3505_s1 + $0x100] sm:$0xff]  ;;  %v124_v6 = vld [vmem:[%s3505_s1 + $0x278] sm:$0xff]  ;;  %v171_v9 = vld [vmem:[%s3505_s1 + $0x3f0] sm:$0xff] }
  0x19   :  { %2150 = vmatpush3.msra.mxu1 %v82_v43  ;;  %2113 = vmatprep.subr.mxu0 %v65_v44  ;;  %v27_v2 = vld [vmem:[%s3504_s0] sm:$0xff]  ;;  %v156_v7 = vld [vmem:[%s3505_s1 + $0x378] sm:$0xff]  ;;  %v123_v10 = vld [vmem:[%s3505_s1 + $0x270] sm:$0xff] }
  0x1a   :  { %2151 = vmatprep.subr.mxu1 %v97_v45  ;;  %2114 = vmatpush3.msra.mxu0 %v49_v46  ;;  %v155_v11 = vld [vmem:[%s3505_s1 + $0x370] sm:$0xff]  ;;  %v138_v12 = vld [vmem:[%s3505_s1 + $0x2e8] sm:$0xff]  ;;  %v137_v16 = vld [vmem:[%s3505_s1 + $0x2e0] sm:$0xff] }
  0x1b   :  { %2152 = vmatpush3.msra.mxu1 %v81_v47  ;;  %2115 = vmatprep.subr.mxu0 %v64_v48  ;;  %v170_v13 = vld [vmem:[%s3505_s1 + $0x3e8] sm:$0xff]  ;;  %v169_v17 = vld [vmem:[%s3505_s1 + $0x3e0] sm:$0xff]  ;;  %v136_v20 = vld [vmem:[%s3505_s1 + $0x2d8] sm:$0xff] }
  0x1c   :  { %2153 = vmatprep.subr.mxu1 %v96_v49  ;;  %2116 = vmatpush3.msra.mxu0 %v48_v50  ;;  %v122_v14 = vld [vmem:[%s3505_s1 + $0x268] sm:$0xff]  ;;  %v121_v18 = vld [vmem:[%s3505_s1 + $0x260] sm:$0xff]  ;;  %v168_v21 = vld [vmem:[%s3505_s1 + $0x3d8] sm:$0xff] }
  0x1d   :  { %2154 = vmatpush3.msra.mxu1 %v80_v51  ;;  %2117 = vmatprep.subr.mxu0 %v63_v52  ;;  %v154_v15 = vld [vmem:[%s3505_s1 + $0x368] sm:$0xff]  ;;  %v153_v19 = vld [vmem:[%s3505_s1 + $0x360] sm:$0xff]  ;;  %v120_v22 = vld [vmem:[%s3505_s1 + $0x258] sm:$0xff] }
  0x1e   :  { %2155 = vmatprep.subr.mxu1 %v95_v53  ;;  %2118 = vmatpush3.msra.mxu0 %v47_v54  ;;  %v152_v23 = vld [vmem:[%s3505_s1 + $0x358] sm:$0xff]  ;;  %v135_v24 = vld [vmem:[%s3505_s1 + $0x2d0] sm:$0xff]  ;;  %v134_v28 = vld [vmem:[%s3505_s1 + $0x2c8] sm:$0xff] }
  0x1f   :  { %2156 = vmatpush3.msra.mxu1 %v79_v55  ;;  %2119 = vmatprep.subr.mxu0 %v62_v56  ;;  %v167_v25 = vld [vmem:[%s3505_s1 + $0x3d0] sm:$0xff]  ;;  %v166_v29 = vld [vmem:[%s3505_s1 + $0x3c8] sm:$0xff]  ;;  %v133_v32 = vld [vmem:[%s3505_s1 + $0x2c0] sm:$0xff] }
  0x20   :  { %2157 = vmatprep.subr.mxu1 %v94_v57  ;;  %2120 = vmatpush3.msra.mxu0 %v46_v58  ;;  %v119_v26 = vld [vmem:[%s3505_s1 + $0x250] sm:$0xff]  ;;  %v118_v30 = vld [vmem:[%s3505_s1 + $0x248] sm:$0xff]  ;;  %v165_v33 = vld [vmem:[%s3505_s1 + $0x3c0] sm:$0xff] }
  0x21   :  { %2158 = vmatpush3.msra.mxu1 %v78_v59  ;;  %2121 = vmatprep.subr.mxu0 %v61_v60  ;;  %v151_v27 = vld [vmem:[%s3505_s1 + $0x350] sm:$0xff]  ;;  %v150_v31 = vld [vmem:[%s3505_s1 + $0x348] sm:$0xff]  ;;  %v117_v34 = vld [vmem:[%s3505_s1 + $0x240] sm:$0xff] }
  0x22   :  { %2159 = vmatprep.subr.mxu1 %v93_v61  ;;  %2122 = vmatpush3.msra.mxu0 %v45_v62  ;;  %v149_v35 = vld [vmem:[%s3505_s1 + $0x340] sm:$0xff]  ;;  %v132_v36 = vld [vmem:[%s3505_s1 + $0x2b8] sm:$0xff]  ;;  %v131_v40 = vld [vmem:[%s3505_s1 + $0x2b0] sm:$0xff] }
  0x23   :  { %260 = vmatprep.mubr.f32.mxu0 %v28_v63  ;;  %2160 = vmatpush3.msra.mxu1 %v77_v0  ;;  %v164_v37 = vld [vmem:[%s3505_s1 + $0x3b8] sm:$0xff]  ;;  %v163_v41 = vld [vmem:[%s3505_s1 + $0x3b0] sm:$0xff]  ;;  %v130_v44 = vld [vmem:[%s3505_s1 + $0x2a8] sm:$0xff] }
  0x24   :  { %335 = vmatprep.mubr.f32.mxu1 %v30_v1  ;;  %261 = vmatmul.mubr.f32.vlgmr.msra.gmra.mxu0 %v27_v2  ;;  %v116_v38 = vld [vmem:[%s3505_s1 + $0x238] sm:$0xff]  ;;  %v115_v42 = vld [vmem:[%s3505_s1 + $0x230] sm:$0xff]  ;;  %v162_v45 = vld [vmem:[%s3505_s1 + $0x3a8] sm:$0xff] }
  0x25   :  { %336 = vmatmul.mubr.f32.vlgmr.msra.gmra.mxu1 %v29_v3  ;;  %2167 = vmatprep.subr.mxu0 %v140_v4  ;;  %v148_v39 = vld [vmem:[%s3505_s1 + $0x338] sm:$0xff]  ;;  %v147_v43 = vld [vmem:[%s3505_s1 + $0x330] sm:$0xff]  ;;  %v114_v46 = vld [vmem:[%s3505_s1 + $0x228] sm:$0xff] }
  0x26   :  { %2205 = vmatprep.subr.mxu1 %v172_v5  ;;  %2168 = vmatpush3.msra.mxu0 %v124_v6  ;;  %v146_v47 = vld [vmem:[%s3505_s1 + $0x328] sm:$0xff]  ;;  %v129_v48 = vld [vmem:[%s3505_s1 + $0x2a0] sm:$0xff] }
  0x27   :  { %2206 = vmatpush3.msra.mxu1 %v156_v7  ;;  %2169 = vmatprep.subr.mxu0 %v139_v8  ;;  %v161_v49 = vld [vmem:[%s3505_s1 + $0x3a0] sm:$0xff] }
  0x28   :  { %2207 = vmatprep.subr.mxu1 %v171_v9  ;;  %2170 = vmatpush3.msra.mxu0 %v123_v10  ;;  %v113_v50 = vld [vmem:[%s3505_s1 + $0x220] sm:$0xff] }
  0x29   :  { %2208 = vmatpush3.msra.mxu1 %v155_v11  ;;  %2171 = vmatprep.subr.mxu0 %v138_v12  ;;  %v145_v51 = vld [vmem:[%s3505_s1 + $0x320] sm:$0xff] }
  0x2a   :  { %2209 = vmatprep.subr.mxu1 %v170_v13  ;;  %2172 = vmatpush3.msra.mxu0 %v122_v14 }
  0x2b   :  { %2210 = vmatpush3.msra.mxu1 %v154_v15  ;;  %2173 = vmatprep.subr.mxu0 %v137_v16 }
  0x2c   :  { %2211 = vmatprep.subr.mxu1 %v169_v17  ;;  %2174 = vmatpush3.msra.mxu0 %v121_v18 }
  0x2d   :  { %2212 = vmatpush3.msra.mxu1 %v153_v19  ;;  %2175 = vmatprep.subr.mxu0 %v136_v20 }
  0x2e   :  { %2213 = vmatprep.subr.mxu1 %v168_v21  ;;  %2176 = vmatpush3.msra.mxu0 %v120_v22 }
  0x2f   :  { %2214 = vmatpush3.msra.mxu1 %v152_v23  ;;  %2177 = vmatprep.subr.mxu0 %v135_v24 }
  0x30   :  { %2215 = vmatprep.subr.mxu1 %v167_v25  ;;  %2178 = vmatpush3.msra.mxu0 %v119_v26 }
  0x31   :  { %2216 = vmatpush3.msra.mxu1 %v151_v27  ;;  %2179 = vmatprep.subr.mxu0 %v134_v28 }
  0x32   :  { %2217 = vmatprep.subr.mxu1 %v166_v29  ;;  %2180 = vmatpush3.msra.mxu0 %v118_v30 }
  0x33   :  { %2218 = vmatpush3.msra.mxu1 %v150_v31  ;;  %2181 = vmatprep.subr.mxu0 %v133_v32 }
  0x34   :  { %2219 = vmatprep.subr.mxu1 %v165_v33  ;;  %2182 = vmatpush3.msra.mxu0 %v117_v34 }
  0x35   :  { %2220 = vmatpush3.msra.mxu1 %v149_v35  ;;  %2183 = vmatprep.subr.mxu0 %v132_v36 }
  0x36   :  { %2221 = vmatprep.subr.mxu1 %v164_v37  ;;  %2184 = vmatpush3.msra.mxu0 %v116_v38 }
  0x37   :  { %2222 = vmatpush3.msra.mxu1 %v148_v39  ;;  %2185 = vmatprep.subr.mxu0 %v131_v40 }
  0x38   :  { %2223 = vmatprep.subr.mxu1 %v163_v41  ;;  %2186 = vmatpush3.msra.mxu0 %v115_v42 }
  0x39   :  { %2224 = vmatpush3.msra.mxu1 %v147_v43  ;;  %2187 = vmatprep.subr.mxu0 %v130_v44 }
  0x3a   :  { %2225 = vmatprep.subr.mxu1 %v162_v45 }
  0x3b   :  { %12 = vsyncpa [#allocation3], 0  ;;  %2188 = vmatpush3.msra.mxu0 %v114_v46  ;;  %2226 = vmatpush3.msra.mxu1 %v146_v47  ;;  %v37_v52 = vld [vmem:[%s3504_s0 + $0x50] sm:$0xff]  ;;  %v128_v53 = vld [vmem:[%s3505_s1 + $0x298] sm:$0xff]  ;;  %v2631_v15 = vmov 0.0   ;;  %vm2632_vm0 = vmmov 0  }
  0x3c   :  { %2189 = vmatprep.subr.mxu0 %v129_v48  ;;  %2227 = vmatprep.subr.mxu1 %v161_v49  ;;  %v160_v54 = vld [vmem:[%s3505_s1 + $0x398] sm:$0xff]  ;;  %v36_v55 = vld [vmem:[%s3504_s0 + $0x48] sm:$0xff]  ;;  %v39_v58 = vld [vmem:[%s3504_s0 + $0x60] sm:$0xff]  ;;  %vm582_vm1 = vcmask 261120   ;;  %vm2035_vm3 = vcmask 1041408  }
  0x3d   :  { %2190 = vmatpush3.msra.mxu0 %v113_v50  ;;  %2228 = vmatpush3.msra.mxu1 %v145_v51  ;;  %v112_v56 = vld [vmem:[%s3505_s1 + $0x218] sm:$0xff]  ;;  %v127_v59 = vld [vmem:[%s3505_s1 + $0x290] sm:$0xff]  ;;  %v126_v0 = vld [vmem:[%s3505_s1 + $0x288] sm:$0xff] }
  0x3e   :  { %v144_v57 = vld [vmem:[%s3505_s1 + $0x318] sm:$0xff]  ;;  %265 = vmatprep.mubr.f32.mxu0 %v37_v52  ;;  %2191 = vmatprep.subr.mxu0 %v128_v53  ;;  %v159_v60 = vld [vmem:[%s3505_s1 + $0x390] sm:$0xff]  ;;  %v158_v1 = vld [vmem:[%s3505_s1 + $0x388] sm:$0xff] }
  0x3f   :  { %2229 = vmatprep.subr.mxu1 %v160_v54  ;;  %266 = vmatmul.mubr.f32.gmra.mxu0 %v36_v55  ;;  %v38_v61 = vld [vmem:[%s3504_s0 + $0x58] sm:$0xff]  ;;  %v111_v62 = vld [vmem:[%s3505_s1 + $0x210] sm:$0xff]  ;;  %v110_v2 = vld [vmem:[%s3505_s1 + $0x208] sm:$0xff] }
  0x40   :  { %2192 = vmatpush3.msra.mxu0 %v112_v56  ;;  %2230 = vmatpush3.msra.mxu1 %v144_v57  ;;  %v143_v63 = vld [vmem:[%s3505_s1 + $0x310] sm:$0xff]  ;;  %v142_v3 = vld [vmem:[%s3505_s1 + $0x308] sm:$0xff]  ;;  %v125_v4 = vld [vmem:[%s3505_s1 + $0x280] sm:$0xff] }
  0x41   :  { %340 = vmatprep.mubr.f32.mxu1 %v39_v58  ;;  %2193 = vmatprep.subr.mxu0 %v127_v59  ;;  %v157_v5 = vld [vmem:[%s3505_s1 + $0x380] sm:$0xff]  ;;  %v32_v7 = vld [vmem:[%s3504_s0 + $0x28] sm:$0xff]  ;;  %v34_v9 = vld [vmem:[%s3504_s0 + $0x38] sm:$0xff] }
  0x42   :  { %2231 = vmatprep.subr.mxu1 %v159_v60  ;;  %341 = vmatmul.mubr.f32.gmra.mxu1 %v38_v61  ;;  %v109_v6 = vld [vmem:[%s3505_s1 + $0x200] sm:$0xff]  ;;  %v33_v11 = vld [vmem:[%s3504_s0 + $0x30] sm:$0xff]  ;;  %v188_v12 = vld [vmem:[%s3505_s1 + $0x478] sm:$0xff] }
  0x43   :  { %2194 = vmatpush3.msra.mxu0 %v111_v62  ;;  %2232 = vmatpush3.msra.mxu1 %v143_v63  ;;  %v141_v8 = vld [vmem:[%s3505_s1 + $0x300] sm:$0xff]  ;;  %v3102_v13 = vld [vmem:[%s3507_s3 + $0x18] sm:$0xff]  ;;  %v187_v14 = vld [vmem:[%s3505_s1 + $0x470] sm:$0xff] }
  0x44   :  { %2195 = vmatprep.subr.mxu0 %v126_v0  ;;  %2233 = vmatprep.subr.mxu1 %v158_v1  ;;  %v31_v10 = vld [vmem:[%s3504_s0 + $0x20] sm:$0xff]  ;;  %v41_v16 = vld [vmem:[%s3504_s0 + $0x70] sm:$0xff]  ;;  %v40_v19 = vld [vmem:[%s3504_s0 + $0x68] sm:$0xff] }
  0x45   :  { %2196 = vmatpush3.msra.mxu0 %v110_v2  ;;  %2234 = vmatpush3.msra.mxu1 %v142_v3  ;;  %v43_v17 = vld [vmem:[%s3504_s0 + $0x80] sm:$0xff]  ;;  %v3118_v18 = vld [vmem:[%s3507_s3 + $0x10] sm:$0xff]  ;;  %v42_v20 = vld [vmem:[%s3504_s0 + $0x78] sm:$0xff] }
  0x46   :  { %2197 = vmatprep.subr.mxu0 %v125_v4  ;;  %2235 = vmatprep.subr.mxu1 %v157_v5  ;;  %v186_v21 = vld [vmem:[%s3505_s1 + $0x468] sm:$0xff]  ;;  %v185_v23 = vld [vmem:[%s3505_s1 + $0x460] sm:$0xff]  ;;  %v184_v25 = vld [vmem:[%s3505_s1 + $0x458] sm:$0xff] }
  0x47   :  { %2198 = vmatpush3.msra.mxu0 %v109_v6  ;;  %410 = vmatprep.mubr.f32.mxu0 %v32_v7  ;;  %v3134_v22 = vld [vmem:[%s3507_s3 + $0x8] sm:$0xff]  ;;  %v3143_v24 = vld [vmem:[%s3507_s3] sm:$0xff]  ;;  %v183_v26 = vld [vmem:[%s3505_s1 + $0x450] sm:$0xff]  ;;  %s2633_s3 = smov 64  }
  0x48   :  { %2236 = vmatpush3.msra.mxu1 %v141_v8  ;;  %485 = vmatprep.mubr.f32.mxu1 %v34_v9  ;;  %v35_v27 = vld [vmem:[%s3504_s0 + $0x40] sm:$0xff]  ;;  %v182_v28 = vld [vmem:[%s3505_s1 + $0x448] sm:$0xff]  ;;  %v180_v30 = vld [vmem:[%s3505_s1 + $0x438] sm:$0xff] }
  0x49   :  { %411 = vmatmul.mubr.f32.vlgmr.msra.gmra.mxu0 %v31_v10  ;;  %486 = vmatmul.mubr.f32.vlgmr.msra.gmra.mxu1 %v33_v11  ;;  %v181_v29 = vld [vmem:[%s3505_s1 + $0x440] sm:$0xff]  ;;  %v179_v31 = vld [vmem:[%s3505_s1 + $0x430] sm:$0xff]  ;;  %v178_v32 = vld [vmem:[%s3505_s1 + $0x428] sm:$0xff] }
  0x4a   :  { %2341 = vmatprep.subr.mxu0 %v188_v12  ;;  %2376 = vmatprep.subr.mxu1 %v2631_v15  ;;  %v177_v33 = vld [vmem:[%s3505_s1 + $0x420] sm:$0xff]  ;;  %v176_v34 = vld [vmem:[%s3505_s1 + $0x418] sm:$0xff]  ;;  %v175_v35 = vld [vmem:[%s3505_s1 + $0x410] sm:$0xff] }
  0x4b   :  { %2342 = vmatpush3.msra.mxu0 %v188_v12  ;;  %2377 = vmatpush3.msra.mxu1 %v3102_v13  ;;  %v174_v36 = vld [vmem:[%s3505_s1 + $0x408] sm:$0xff]  ;;  %v173_v37 = vld [vmem:[%s3505_s1 + $0x400] sm:$0xff] }
  0x4c   :  { %2343 = vmatprep.subr.mxu0 %v187_v14  ;;  %2378 = vmatprep.subr.mxu1 %v2631_v15  ;;  %v44_v38 = vld [vmem:[%s3504_s0 + $0x88] sm:$0xff]  ;;  %v2065_v48 = vld [vmem:[%s3506_s2] ss:$0 sm:$0xff] }
  0x4d   :  { %415 = vmatprep.mubr.f32.mxu0 %v41_v16  ;;  %490 = vmatprep.mubr.f32.mxu1 %v43_v17  ;;  %v3221_v6 = vld [vmem:[%s3508_s4] ss:$0 sm:$0xff]  ;;  %s2634_s4 = smov 96  }
  0x4e   :  { %2344 = vmatpush3.msra.mxu0 %v187_v14  ;;  %2379 = vmatpush3.msra.mxu1 %v3118_v18 }
  0x4f   :  { %416 = vmatmul.mubr.f32.gmra.mxu0 %v40_v19  ;;  %491 = vmatmul.mubr.f32.gmra.mxu1 %v42_v20 }
  0x50   :  { %2345 = vmatprep.subr.mxu0 %v186_v21  ;;  %2380 = vmatprep.subr.mxu1 %v2631_v15 }
  0x51   :  { %2346 = vmatpush3.msra.mxu0 %v186_v21  ;;  %2381 = vmatpush3.msra.mxu1 %v3134_v22 }
  0x52   :  { %2347 = vmatprep.subr.mxu0 %v185_v23  ;;  %2382 = vmatprep.subr.mxu1 %v2631_v15 }
  0x53   :  { %2348 = vmatpush3.msra.mxu0 %v185_v23  ;;  %2383 = vmatpush3.msra.mxu1 %v3143_v24 }
  0x54   :  { %2384 = vmatprep.mubr.msk.f32.mxu1 %vm2632_vm0, %v2631_v15  ;;  %2349 = vmatprep.subr.mxu0 %v184_v25 }
  0x55   :  { %2385 = vmatmul.mubr.f32.vlgmr.msra.gmra.mxu1 %v2631_v15  ;;  %2350 = vmatpush3.msra.mxu0 %v184_v25 }
  0x56   :  { %2351 = vmatprep.subr.mxu0 %v183_v26  ;;  %2373 = vmatprep.mubr.f32.mxu0 %v35_v27 }
  0x57   :  { %2352 = vmatpush3.msra.mxu0 %v183_v26  ;;  %2387 = vmatprep.subr.mxu1 %v2631_v15 }
  0x58   :  { %2353 = vmatprep.subr.mxu0 %v182_v28  ;;  %2388 = vmatpush3.msra.mxu1 %v3102_v13 }
  0x59   :  { %2354 = vmatpush3.msra.mxu0 %v182_v28  ;;  %2389 = vmatprep.subr.mxu1 %v2631_v15 }
  0x5a   :  { %2355 = vmatprep.subr.mxu0 %v181_v29  ;;  %2390 = vmatpush3.msra.mxu1 %v3118_v18 }
  0x5b   :  { %2356 = vmatpush3.msra.mxu0 %v181_v29  ;;  %2391 = vmatprep.subr.mxu1 %v2631_v15 }
  0x5c   :  { %2357 = vmatprep.subr.mxu0 %v180_v30  ;;  %2392 = vmatpush3.msra.mxu1 %v3134_v22 }
  0x5d   :  { %2358 = vmatpush3.msra.mxu0 %v180_v30  ;;  %2393 = vmatprep.subr.mxu1 %v2631_v15 }
  0x5e   :  { %2359 = vmatprep.subr.mxu0 %v179_v31  ;;  %2394 = vmatpush3.msra.mxu1 %v3143_v24 }
  0x5f   :  { %2360 = vmatpush3.msra.mxu0 %v179_v31  ;;  %2395 = vmatprep.mubr.msk.f32.mxu1 %vm2632_vm0, %v2631_v15 }
  0x60   :  { %2361 = vmatprep.subr.mxu0 %v178_v32  ;;  %2398 = vmatprep.subr.mxu1 %v2631_v15 }
  0x61   :  { %2362 = vmatpush3.msra.mxu0 %v178_v32 }
  0x62   :  { %2363 = vmatprep.subr.mxu0 %v177_v33 }
  0x63   :  { %2364 = vmatpush3.msra.mxu0 %v177_v33 }
  0x64   :  { %2365 = vmatprep.subr.mxu0 %v176_v34 }
  0x65   :  { %2366 = vmatpush3.msra.mxu0 %v176_v34 }
  0x66   :  { %2367 = vmatprep.subr.mxu0 %v175_v35 }
  0x67   :  { %2368 = vmatpush3.msra.mxu0 %v175_v35 }
  0x68   :  { %2369 = vmatprep.subr.mxu0 %v174_v36 }
  0x69   :  { %2370 = vmatpush3.msra.mxu0 %v174_v36 }
  0x6a   :  { %2371 = vmatprep.subr.mxu0 %v173_v37 }
  0x6b   :  { %2372 = vmatpush3.msra.mxu0 %v173_v37 }
  0x6c   :  { %2374 = vmatmul.mubr.f32.vlgmr.msra.gmra.mxu0 %v44_v38  ;;  %2420 = vmatprep.subr.mxu0 %v2631_v15 }
  0x6d   :  { %2421 = vmatpush3.msra.mxu0 %v3102_v13  ;;  %2428 = vmatprep.mubr.msk.f32.mxu0 %vm2632_vm0, %v2631_v15 }
  0x6e   :  { %2422 = vmatprep.subr.mxu0 %v2631_v15 }
  0x6f   :  { %2423 = vmatpush3.msra.mxu0 %v3118_v18 }
  0x70   :  { %2424 = vmatprep.subr.mxu0 %v2631_v15 }
  0x71   :  { %2425 = vmatpush3.msra.mxu0 %v3134_v22 }
  0x72   :  { %2426 = vmatprep.subr.mxu0 %v2631_v15 }
  0x73   :  { %2427 = vmatpush3.msra.mxu0 %v3143_v24 }
  0x74   :  { %2442 = vmatprep.subr.mxu0 %v2631_v15 }
  0xe4   :  { %v2123_v42 = vpop.f32.mrf.mxu0 }
  0xe5   :  { %v2161_v39 = vpop.f32.mrf.mxu1 }
  0xe6   :  { %v2124_v43 = vpop.f32.mrf.mxu0 }
  0xe7   :  { %v2162_v40 = vpop.f32.mrf.mxu1  ;;  %v2125_v49 = vadd.f32 %v2124_v43, %v2123_v42 }
  0xe8   :  { %v2163_v41 = vadd.f32 %v2162_v40, %v2161_v39 }
  0xe9   :  { %v263_v54 = vadd.f32 %v2125_v49, %v2065_v48 }
  0xeb   :  { %v338_v59 = vadd.f32 %v2163_v41, %v263_v54 }
  0xff   :  { %v2126_v44 = vpop.f32.mrf.mxu0 }
 0x101   :  { %v2127_v45 = vpop.f32.mrf.mxu0 }
 0x102   :  { %v2128_v46 = vadd.f32 %v2127_v45, %v2126_v44  ;;  %v2164_v47 = vpop.f32.mrf.mxu1 }
 0x104   :  { %v268_v50 = vadd.f32 %v2128_v46, %v2065_v48  ;;  %v2165_v51 = vpop.f32.mrf.mxu1 }
 0x105   :  { %v2166_v52 = vadd.f32 %v2165_v51, %v2164_v47  ;;  %v793_v51 = vld [vmem:[%s3509_s5 + $0x30] sm:$0xff] }
 0x107   :  { %v343_v53 = vadd.f32 %v2166_v52, %v268_v50  ;;  %v794_v50 = vld [vmem:[%s3509_s5 + $0x38] sm:$0xff]  ;;  %v792_v52 = vld [vmem:[%s3509_s5 + $0x28] sm:$0xff] }
 0x109   :  { %v2199_v55 = vpop.f32.mrf.mxu0  ;;  %v2237_v56 = vpop.f32.mrf.mxu1 }
 0x10b   :  { %v2200_v57 = vpop.f32.mrf.mxu0  ;;  %v2238_v58 = vpop.f32.mrf.mxu1 }
 0x10c   :  { %v2201_v60 = vadd.f32 %v2200_v57, %v2199_v55  ;;  %v2239_v61 = vadd.f32 %v2238_v58, %v2237_v56 }
 0x10e   :  { %v413_v62 = vadd.f32 %v2201_v60, %v338_v59 }
 0x10f   :  { %v2202_v63 = vpop.f32.mrf.mxu0  ;;  %v2240_v0 = vpop.f32.mrf.mxu1 }
 0x110   :  { %v488_v1 = vadd.f32 %v2239_v61, %v413_v62  ;;  %v685_v62 = vld [vmem:[%s3509_s5 + $0x18] sm:$0xff] }
 0x111   :  { %v2203_v2 = vpop.f32.mrf.mxu0  ;;  %v2241_v3 = vpop.f32.mrf.mxu1 }
 0x112   :  { %v2204_v4 = vadd.f32 %v2203_v2, %v2202_v63  ;;  %v2242_v5 = vadd.f32 %v2241_v3, %v2240_v0  ;;  %v684_v0 = vld [vmem:[%s3509_s5 + $0x10] sm:$0xff]  ;;  %v682_v2 = vld [vmem:[%s3509_s5] sm:$0xff] }
 0x114   :  { %v418_v7 = vadd.f32 %v2204_v4, %v343_v53  ;;  %v791_v53 = vld [vmem:[%s3509_s5 + $0x20] sm:$0xff] }
 0x115   :  { %v652_v8 = vpop.f32.mrf.mxu1 }
 0x116   :  { %v653_v9 = vadd.f32 %v3221_v6, %v652_v8  ;;  %v493_v10 = vadd.f32 %v2242_v5, %v418_v7 }
 0x117   :  { %v2386_v11 = vpop.f32.mrf.mxu1 }
 0x118   :  { %664 = vrot.lane.b32.xlu0 %v653_v9, %s2633_s3 }
 0x12c   :  { %v2375_v12 = vpop.f32.mrf.mxu0 }
 0x12d   :  { %v3225_v14 = vadd.f32 %v2375_v12, %v493_v10 }
 0x12e   :  { %v562_v16 = vpop.f32.mrf.mxu0 }
 0x12f   :  { %v3227_v17 = vadd.f32 %v562_v16, %v488_v1  ;;  %v683_v1 = vld [vmem:[%s3509_s5 + $0x8] sm:$0xff] }
 0x131   :  { %v656_v19 = vadd.f32 %v653_v9, %v3227_v17 }
 0x133   :  { %v2067_v20 = vmul.f32 -1.442695, %v656_v19 }
 0x135   :  { %2557 = vpow2.f32 %v2067_v20 }
 0x142   :  { %v2558_v21 = vpop.eup %2557 }
 0x143   :  { %v660_v23 = vadd.f32 1.0, %v2558_v21 }
 0x145   :  { %2559 = vrcp.f32 %v660_v23 }
 0x152   :  { %v2560_v25 = vpop.eup %2559 }
 0x153   :  { %v674_v31 = vsub.f32 1.0, %v2560_v25  ;;  %v680_v33 = vmul.f32 0.0, %v2560_v25 }
 0x18a   :  { %v665_v26 = vpop.permute.xlu0 %664 }
 0x18b   :  { %v667_v27 = vmul.f32 %v2560_v25, %v665_v26 }
 0x18d   :  { %669 = vrot.lane.b32.xlu0 %v667_v27, %s2633_s3 }
 0x1ff   :  { %v670_v28 = vpop.permute.xlu0 %669 }
 0x200   :  { %v672_v29 = vadd.f32 %v670_v28, %v3227_v17 }
 0x202   :  { %2561 = vtanh.f32 %v672_v29  ;;  %v1044_v29 = vld [vmem:[%s3509_s5 + $0x58] sm:$0xff] }
 0x20f   :  { %v2562_v30 = vpop.eup %2561 }
 0x210   :  { %676 = vrot.lane.b32.xlu1 %v2562_v30, %s2634_s4  ;;  %v1043_v30 = vld [vmem:[%s3509_s5 + $0x50] sm:$0xff] }
 0x282   :  { %v677_v32 = vpop.permute.xlu1 %676 }
 0x283   :  { %v679_v34 = vmul.f32 %v677_v32, %v674_v31  ;;  %v1042_v31 = vld [vmem:[%s3509_s5 + $0x48] sm:$0xff] }
 0x285   :  { %v681_v35 = vadd.f32 %v680_v33, %v679_v34  ;;  %v1041_v33 = vld [vmem:[%s3509_s5 + $0x40] sm:$0xff] }
 0x287   :  { %687 = vrot.lane.b32.xlu1 %v681_v35, %s2634_s4  ;;  %v787_v55 = vrot.slane %v681_v35, 6 }
 0x2f9   :  { %v3234_v36 = vpop.permute.xlu1 %687 }
 0x2fa   :  { %2396 = vmatmul.mubr.msk.f32.vlgmr.msra.gmra.mxu1 %vm582_vm1, %v3234_v36 }
 0x2fb   :  { %2406 = vmatprep.mubr.msk.f32.mxu1 %vm2632_vm0, %v2631_v15  ;;  %2399 = vmatpush3.msra.mxu1 %v794_v50 }
 0x2fc   :  { %2400 = vmatprep.subr.mxu1 %v2631_v15 }
 0x2fd   :  { %2401 = vmatpush3.msra.mxu1 %v793_v51 }
 0x2fe   :  { %2402 = vmatprep.subr.mxu1 %v2631_v15 }
 0x2ff   :  { %2403 = vmatpush3.msra.mxu1 %v792_v52 }
 0x300   :  { %2404 = vmatprep.subr.mxu1 %v2631_v15 }
 0x301   :  { %2405 = vmatpush3.msra.mxu1 %v791_v53 }
 0x302   :  { %2409 = vmatprep.subr.mxu1 %v2631_v15 }
 0x3ba   :  { %v757_v37 = vpop.f32.mrf.mxu1 }
 0x3bb   :  { %v758_v38 = vadd.f32 %v3221_v6, %v757_v37 }
 0x3bc   :  { %v2397_v39 = vpop.f32.mrf.mxu1 }
 0x3bd   :  { %v762_v40 = vrot.slane %v758_v38, 6 }
 0x3bf   :  { %771 = vrot.lane.b32.xlu0 %v762_v40, %s2633_s3  ;;  %v764_v41 = vadd.f32 %v762_v40, %v3227_v17 }
 0x3c1   :  { %v2069_v42 = vmul.f32 -1.442695, %v764_v41 }
 0x3c3   :  { %2563 = vpow2.f32 %v2069_v42 }
 0x3d0   :  { %v2564_v43 = vpop.eup %2563 }
 0x3d1   :  { %v768_v44 = vadd.f32 1.0, %v2564_v43 }
 0x3d3   :  { %2565 = vrcp.f32 %v768_v44 }
 0x3e0   :  { %v2566_v45 = vpop.eup %2565 }
 0x3e1   :  { %v781_v56 = vsub.f32 1.0, %v2566_v45  ;;  %v789_v59 = vmul.f32 %v2566_v45, %v787_v55 }
 0x431   :  { %v772_v46 = vpop.permute.xlu0 %771 }
 0x432   :  { %v774_v47 = vmul.f32 %v2566_v45, %v772_v46 }
 0x434   :  { %776 = vrot.lane.b32.xlu1 %v774_v47, %s2633_s3 }
 0x4a6   :  { %v777_v48 = vpop.permute.xlu1 %776 }
 0x4a7   :  { %v779_v49 = vadd.f32 %v777_v48, %v3227_v17 }
 0x4a9   :  { %2567 = vtanh.f32 %v779_v49 }
 0x4b6   :  { %v2568_v54 = vpop.eup %2567 }
 0x4b7   :  { %783 = vrot.lane.b32.xlu0 %v2568_v54, %s2634_s4 }
 0x529   :  { %v784_v57 = vpop.permute.xlu0 %783 }
 0x52a   :  { %v786_v58 = vmul.f32 %v784_v57, %v781_v56 }
 0x52c   :  { %v3262_v60 = vadd.f32 %v789_v59, %v786_v58  ;;  %v1225_v58 = vld [vmem:[%s3509_s5 + $0x78] sm:$0xff]  ;;  %v1224_v59 = vld [vmem:[%s3509_s5 + $0x70] sm:$0xff] }
 0x52e   :  { %v796_v61 = vrot.slane %v3262_v60, 2  ;;  %v1037_v34 = vrot.slane %v3262_v60, 6  ;;  %v1223_v60 = vld [vmem:[%s3509_s5 + $0x68] sm:$0xff] }
 0x530   :  { %797 = vrot.lane.b32.xlu1 %v796_v61, %s2634_s4  ;;  %v1222_v61 = vld [vmem:[%s3509_s5 + $0x60] sm:$0xff] }
 0x5a2   :  { %v798_v63 = vpop.permute.xlu1 %797 }
 0x5a3   :  { %2407 = vmatmul.mubr.msk.f32.vlgmr.msra.gmra.mxu1 %vm582_vm1, %v798_v63  ;;  %2429 = vmatmul.mubr.msk.f32.vlgmr.msra.gmra.mxu0 %vm582_vm1, %v798_v63 }
 0x5a4   :  { %2410 = vmatpush3.msra.mxu1 %v685_v62  ;;  %2417 = vmatprep.mubr.msk.f32.mxu1 %vm2632_vm0, %v2631_v15 }
 0x5a5   :  { %2411 = vmatprep.subr.mxu1 %v2631_v15  ;;  %2443 = vmatpush3.msra.mxu0 %v3102_v13 }
 0x5a6   :  { %2412 = vmatpush3.msra.mxu1 %v684_v0  ;;  %2444 = vmatprep.subr.mxu0 %v2631_v15 }
 0x5a7   :  { %2413 = vmatprep.subr.mxu1 %v2631_v15  ;;  %2445 = vmatpush3.msra.mxu0 %v3118_v18 }
 0x5a8   :  { %2414 = vmatpush3.msra.mxu1 %v683_v1  ;;  %2446 = vmatprep.subr.mxu0 %v2631_v15 }
 0x5a9   :  { %2415 = vmatprep.subr.mxu1 %v2631_v15  ;;  %2447 = vmatpush3.msra.mxu0 %v3134_v22 }
 0x5aa   :  { %2416 = vmatpush3.msra.mxu1 %v682_v2  ;;  %2448 = vmatprep.subr.mxu0 %v2631_v15 }
 0x5ab   :  { %2418 = vmatmul.mubr.msk.f32.vlgmr.msra.gmra.mxu1 %vm582_vm1, %v3234_v36  ;;  %2431 = vmatprep.subr.mxu1 %v2631_v15 }
 0x5ac   :  { %2449 = vmatpush3.msra.mxu0 %v3143_v24  ;;  %2450 = vmatprep.mubr.msk.f32.mxu0 %vm2632_vm0, %v2631_v15 }
 0x5ad   :  { %2439 = vmatprep.mubr.msk.f32.mxu1 %vm2632_vm0, %v2631_v15  ;;  %2464 = vmatprep.subr.mxu0 %v2631_v15 }
 0x5ae   :  { %2432 = vmatpush3.msra.mxu1 %v1044_v29  ;;  %v1403_v29 = vld [vmem:[%s3509_s5 + $0x98] sm:$0xff] }
 0x5af   :  { %2433 = vmatprep.subr.mxu1 %v2631_v15 }
 0x5b0   :  { %2434 = vmatpush3.msra.mxu1 %v1043_v30  ;;  %v1402_v30 = vld [vmem:[%s3509_s5 + $0x90] sm:$0xff] }
 0x5b1   :  { %2435 = vmatprep.subr.mxu1 %v2631_v15 }
 0x5b2   :  { %2436 = vmatpush3.msra.mxu1 %v1042_v31  ;;  %v1401_v31 = vld [vmem:[%s3509_s5 + $0x88] sm:$0xff] }
 0x5b3   :  { %2437 = vmatprep.subr.mxu1 %v2631_v15 }
 0x5b4   :  { %2438 = vmatpush3.msra.mxu1 %v1041_v33  ;;  %v1400_v33 = vld [vmem:[%s3509_s5 + $0x80] sm:$0xff] }
 0x5b5   :  { %2453 = vmatprep.subr.mxu1 %v2631_v15 }
 0x663   :  { %v867_v3 = vpop.f32.mrf.mxu1  ;;  %v1007_v4 = vpop.f32.mrf.mxu0 }
 0x664   :  { %v1008_v5 = vadd.f32 %v3221_v6, %v1007_v4 }
 0x665   :  { %v2408_v7 = vpop.f32.mrf.mxu1  ;;  %v2430_v8 = vpop.f32.mrf.mxu0 }
 0x666   :  { %v1012_v9 = vrot.slane %v1008_v5, 4 }
 0x668   :  { %1021 = vrot.lane.b32.xlu0 %v1012_v9, %s2633_s3  ;;  %v1014_v16 = vadd.f32 %v1012_v9, %v3227_v17 }
 0x66a   :  { %v2073_v19 = vmul.f32 -1.442695, %v1014_v16 }
 0x66b   :  { %v937_v10 = vpop.f32.mrf.mxu1 }
 0x66c   :  { %v938_v11 = vadd.f32 %v937_v10, %v867_v3  ;;  %2569 = vpow2.f32 %v2073_v19 }
 0x66d   :  { %v2419_v12 = vpop.f32.mrf.mxu1 }
 0x679   :  { %v2570_v20 = vpop.eup %2569 }
 0x67a   :  { %v1018_v21 = vadd.f32 1.0, %v2570_v20 }
 0x67c   :  { %2571 = vrcp.f32 %v1018_v21 }
 0x689   :  { %v2572_v23 = vpop.eup %2571 }
 0x68a   :  { %v1031_v35 = vsub.f32 1.0, %v2572_v23  ;;  %v1039_v37 = vmul.f32 %v2572_v23, %v1037_v34 }
 0x6da   :  { %v1022_v25 = vpop.permute.xlu0 %1021 }
 0x6db   :  { %v1024_v26 = vmul.f32 %v2572_v23, %v1022_v25 }
 0x6dd   :  { %1026 = vrot.lane.b32.xlu1 %v1024_v26, %s2633_s3 }
 0x74f   :  { %v1027_v27 = vpop.permute.xlu1 %1026 }
 0x750   :  { %v1029_v28 = vadd.f32 %v1027_v27, %v3227_v17 }
 0x752   :  { %2573 = vtanh.f32 %v1029_v28 }
 0x75f   :  { %v2574_v32 = vpop.eup %2573 }
 0x760   :  { %1033 = vrot.lane.b32.xlu0 %v2574_v32, %s2634_s4 }
 0x7d2   :  { %v1034_v36 = vpop.permute.xlu0 %1033 }
 0x7d3   :  { %v1036_v38 = vmul.f32 %v1034_v36, %v1031_v35 }
 0x7d5   :  { %v1040_v39 = vadd.f32 %v1039_v37, %v1036_v38 }
 0x7d7   :  { %v1046_v40 = vrot.slane %v1040_v39, 4  ;;  %v1218_v62 = vrot.slane %v1040_v39, 6 }
 0x7d9   :  { %1047 = vrot.lane.b32.xlu1 %v1046_v40, %s2634_s4 }
 0x84b   :  { %v1048_v41 = vpop.permute.xlu1 %1047 }
 0x84c   :  { %2440 = vmatmul.mubr.msk.f32.vlgmr.msra.gmra.mxu1 %vm582_vm1, %v1048_v41  ;;  %2451 = vmatmul.mubr.msk.f32.vlgmr.msra.gmra.mxu0 %vm582_vm1, %v1048_v41 }
 0x84d   :  { %2465 = vmatpush3.msra.mxu0 %v3102_v13  ;;  %2472 = vmatprep.mubr.msk.f32.mxu0 %vm2632_vm0, %v2631_v15 }
 0x84e   :  { %2466 = vmatprep.subr.mxu0 %v2631_v15  ;;  %2461 = vmatprep.mubr.msk.f32.mxu1 %vm2632_vm0, %v2631_v15 }
 0x84f   :  { %2467 = vmatpush3.msra.mxu0 %v3118_v18  ;;  %2454 = vmatpush3.msra.mxu1 %v1225_v58  ;;  %v1581_v58 = vld [vmem:[%s3509_s5 + $0xa8] sm:$0xff] }
 0x850   :  { %2468 = vmatprep.subr.mxu0 %v2631_v15  ;;  %2455 = vmatprep.subr.mxu1 %v2631_v15 }
 0x851   :  { %2469 = vmatpush3.msra.mxu0 %v3134_v22  ;;  %2456 = vmatpush3.msra.mxu1 %v1224_v59 }
 0x852   :  { %2470 = vmatprep.subr.mxu0 %v2631_v15  ;;  %2457 = vmatprep.subr.mxu1 %v2631_v15 }
 0x853   :  { %2471 = vmatpush3.msra.mxu0 %v3143_v24  ;;  %2458 = vmatpush3.msra.mxu1 %v1223_v60  ;;  %v1580_v60 = vld [vmem:[%s3509_s5 + $0xa0] sm:$0xff] }
 0x854   :  { %2486 = vmatprep.subr.mxu0 %v2631_v15  ;;  %2459 = vmatprep.subr.mxu1 %v2631_v15 }
 0x855   :  { %2460 = vmatpush3.msra.mxu1 %v1222_v61 }
 0x856   :  { %2475 = vmatprep.subr.mxu1 %v2631_v15 }
 0x90c   :  { %v1117_v42 = vpop.f32.mrf.mxu1  ;;  %v1188_v43 = vpop.f32.mrf.mxu0 }
 0x90d   :  { %v1121_v44 = vadd.f32 %v1117_v42, %v938_v11  ;;  %v1189_v45 = vadd.f32 %v3221_v6, %v1188_v43 }
 0x90e   :  { %v2441_v46 = vpop.f32.mrf.mxu1  ;;  %v2452_v47 = vpop.f32.mrf.mxu0 }
 0x90f   :  { %v1193_v48 = vrot.slane %v1189_v45, 2 }
 0x911   :  { %1202 = vrot.lane.b32.xlu0 %v1193_v48, %s2633_s3  ;;  %v1195_v49 = vadd.f32 %v1193_v48, %v3227_v17 }
 0x913   :  { %v2076_v50 = vmul.f32 -1.442695, %v1195_v49 }
 0x915   :  { %2575 = vpow2.f32 %v2076_v50 }
 0x922   :  { %v2576_v51 = vpop.eup %2575 }
 0x923   :  { %v1199_v52 = vadd.f32 1.0, %v2576_v51 }
 0x925   :  { %2577 = vrcp.f32 %v1199_v52 }
 0x932   :  { %v2578_v53 = vpop.eup %2577 }
 0x933   :  { %v1212_v63 = vsub.f32 1.0, %v2578_v53  ;;  %v1220_v1 = vmul.f32 %v2578_v53, %v1218_v62 }
 0x983   :  { %v1203_v54 = vpop.permute.xlu0 %1202 }
 0x984   :  { %v1205_v55 = vmul.f32 %v2578_v53, %v1203_v54 }
 0x986   :  { %1207 = vrot.lane.b32.xlu1 %v1205_v55, %s2633_s3 }
 0x9f8   :  { %v1208_v56 = vpop.permute.xlu1 %1207 }
 0x9f9   :  { %v1210_v57 = vadd.f32 %v1208_v56, %v3227_v17  ;;  %v1583_v56 = vld [vmem:[%s3509_s5 + $0xb8] sm:$0xff] }
 0x9fb   :  { %2579 = vtanh.f32 %v1210_v57  ;;  %v1582_v57 = vld [vmem:[%s3509_s5 + $0xb0] sm:$0xff] }
 0xa08   :  { %v2580_v17 = vpop.eup %2579 }
 0xa09   :  { %1214 = vrot.lane.b32.xlu0 %v2580_v17, %s2634_s4 }
 0xa7b   :  { %v1215_v0 = vpop.permute.xlu0 %1214 }
 0xa7c   :  { %v1217_v2 = vmul.f32 %v1215_v0, %v1212_v63 }
 0xa7e   :  { %v1221_v3 = vadd.f32 %v1220_v1, %v1217_v2 }
 0xa80   :  { %v1227_v4 = vrot.slane %v1221_v3, 6 }
 0xa82   :  { %1228 = vrot.lane.b32.xlu1 %v1227_v4, %s2634_s4 }
 0xaf4   :  { %v1229_v5 = vpop.permute.xlu1 %1228 }
 0xaf5   :  { %2462 = vmatmul.mubr.msk.f32.vlgmr.msra.gmra.mxu1 %vm582_vm1, %v1229_v5  ;;  %2473 = vmatmul.mubr.msk.f32.vlgmr.msra.gmra.mxu0 %vm582_vm1, %v1229_v5 }
 0xaf6   :  { %2487 = vmatpush3.msra.mxu0 %v3102_v13  ;;  %2494 = vmatprep.mubr.msk.f32.mxu0 %vm2632_vm0, %v2631_v15 }
 0xaf7   :  { %2488 = vmatprep.subr.mxu0 %v2631_v15  ;;  %2483 = vmatprep.mubr.msk.f32.mxu1 %vm2632_vm0, %v2631_v15 }
 0xaf8   :  { %2489 = vmatpush3.msra.mxu0 %v3118_v18  ;;  %2476 = vmatpush3.msra.mxu1 %v1403_v29 }
 0xaf9   :  { %2490 = vmatprep.subr.mxu0 %v2631_v15  ;;  %2477 = vmatprep.subr.mxu1 %v2631_v15 }
 0xafa   :  { %2491 = vmatpush3.msra.mxu0 %v3134_v22  ;;  %2478 = vmatpush3.msra.mxu1 %v1402_v30 }
 0xafb   :  { %2492 = vmatprep.subr.mxu0 %v2631_v15  ;;  %2479 = vmatprep.subr.mxu1 %v2631_v15 }
 0xafc   :  { %2493 = vmatpush3.msra.mxu0 %v3143_v24  ;;  %2480 = vmatpush3.msra.mxu1 %v1401_v31 }
 0xafd   :  { %2508 = vmatprep.subr.mxu0 %v2631_v15  ;;  %2481 = vmatprep.subr.mxu1 %v2631_v15 }
 0xafe   :  { %2482 = vmatpush3.msra.mxu1 %v1400_v33 }
 0xaff   :  { %2497 = vmatprep.subr.mxu1 %v2631_v15 }
 0xbb5   :  { %v1298_v7 = vpop.f32.mrf.mxu1  ;;  %v1369_v8 = vpop.f32.mrf.mxu0 }
 0xbb6   :  { %v1302_v9 = vadd.f32 %v1298_v7, %v1121_v44  ;;  %v1370_v10 = vadd.f32 %v3221_v6, %v1369_v8 }
 0xbb7   :  { %v2463_v11 = vpop.f32.mrf.mxu1  ;;  %v2474_v12 = vpop.f32.mrf.mxu0 }
 0xbb8   :  { %1381 = vrot.lane.b32.xlu0 %v1370_v10, %s2633_s3  ;;  %v1373_v16 = vadd.f32 %v1370_v10, %v3225_v14 }
 0xbba   :  { %v2079_v19 = vmul.f32 -1.442695, %v1373_v16 }
 0xbbc   :  { %2581 = vpow2.f32 %v2079_v19 }
 0xbc9   :  { %v2582_v20 = vpop.eup %2581 }
 0xbca   :  { %v1377_v21 = vadd.f32 1.0, %v2582_v20 }
 0xbcc   :  { %2583 = vrcp.f32 %v1377_v21 }
 0xbd9   :  { %v2584_v23 = vpop.eup %2583 }
 0xbda   :  { %v1391_v34 = vsub.f32 1.0, %v2584_v23  ;;  %v1398_v36 = vmul.f32 %v2584_v23, %v1227_v4 }
 0xc2a   :  { %v1382_v25 = vpop.permute.xlu0 %1381 }
 0xc2b   :  { %v1384_v26 = vmul.f32 %v2584_v23, %v1382_v25  ;;  %v1764_v23 = vld [vmem:[%s3509_s5 + $0xd8] sm:$0xff]  ;;  %v1763_v25 = vld [vmem:[%s3509_s5 + $0xd0] sm:$0xff] }
 0xc2d   :  { %1386 = vrot.lane.b32.xlu1 %v1384_v26, %s2633_s3  ;;  %v1762_v26 = vld [vmem:[%s3509_s5 + $0xc8] sm:$0xff] }
 0xc9f   :  { %v1387_v27 = vpop.permute.xlu1 %1386 }
 0xca0   :  { %v1389_v28 = vadd.f32 %v1387_v27, %v3225_v14 }
 0xca2   :  { %2585 = vtanh.f32 %v1389_v28  ;;  %v1761_v28 = vld [vmem:[%s3509_s5 + $0xc0] sm:$0xff] }
 0xcaf   :  { %v2586_v32 = vpop.eup %2585 }
 0xcb0   :  { %1393 = vrot.lane.b32.xlu0 %v2586_v32, %s2634_s4 }
 0xd22   :  { %v1394_v35 = vpop.permute.xlu0 %1393 }
 0xd23   :  { %v1396_v37 = vmul.f32 %v1394_v35, %v1391_v34 }
 0xd25   :  { %v1399_v38 = vadd.f32 %v1398_v36, %v1396_v37 }
 0xd27   :  { %1405 = vrot.lane.b32.xlu1 %v1399_v38, %s2634_s4  ;;  %v1576_v17 = vrot.slane %v1399_v38, 6 }
 0xd99   :  { %v1406_v39 = vpop.permute.xlu1 %1405 }
 0xd9a   :  { %2484 = vmatmul.mubr.msk.f32.vlgmr.msra.gmra.mxu1 %vm582_vm1, %v1406_v39  ;;  %2495 = vmatmul.mubr.msk.f32.vlgmr.msra.gmra.mxu0 %vm582_vm1, %v1406_v39 }
 0xd9b   :  { %2509 = vmatpush3.msra.mxu0 %v3102_v13  ;;  %2516 = vmatprep.mubr.msk.f32.mxu0 %vm2632_vm0, %v2631_v15 }
 0xd9c   :  { %2510 = vmatprep.subr.mxu0 %v2631_v15  ;;  %2505 = vmatprep.mubr.msk.f32.mxu1 %vm2632_vm0, %v2631_v15 }
 0xd9d   :  { %2511 = vmatpush3.msra.mxu0 %v3118_v18  ;;  %2498 = vmatpush3.msra.mxu1 %v1583_v56 }
 0xd9e   :  { %2512 = vmatprep.subr.mxu0 %v2631_v15  ;;  %2499 = vmatprep.subr.mxu1 %v2631_v15 }
 0xd9f   :  { %2513 = vmatpush3.msra.mxu0 %v3134_v22  ;;  %2500 = vmatpush3.msra.mxu1 %v1582_v57 }
 0xda0   :  { %2514 = vmatprep.subr.mxu0 %v2631_v15  ;;  %2501 = vmatprep.subr.mxu1 %v2631_v15 }
 0xda1   :  { %2515 = vmatpush3.msra.mxu0 %v3143_v24  ;;  %2502 = vmatpush3.msra.mxu1 %v1581_v58 }
 0xda2   :  { %2530 = vmatprep.subr.mxu0 %v2631_v15  ;;  %2503 = vmatprep.subr.mxu1 %v2631_v15 }
 0xda3   :  { %2504 = vmatpush3.msra.mxu1 %v1580_v60 }
 0xda4   :  { %2519 = vmatprep.subr.mxu1 %v2631_v15 }
 0xe5a   :  { %v1475_v40 = vpop.f32.mrf.mxu1  ;;  %v1546_v41 = vpop.f32.mrf.mxu0 }
 0xe5b   :  { %v1479_v42 = vadd.f32 %v1475_v40, %v1302_v9  ;;  %v1547_v43 = vadd.f32 %v3221_v6, %v1546_v41 }
 0xe5c   :  { %v2485_v44 = vpop.f32.mrf.mxu1  ;;  %v2496_v45 = vpop.f32.mrf.mxu0 }
 0xe5d   :  { %v1551_v46 = vrot.slane %v1547_v43, 6 }
 0xe5f   :  { %1560 = vrot.lane.b32.xlu0 %v1551_v46, %s2633_s3  ;;  %v1553_v47 = vadd.f32 %v1551_v46, %v3225_v14 }
 0xe61   :  { %v2082_v48 = vmul.f32 -1.442695, %v1553_v47 }
 0xe63   :  { %2587 = vpow2.f32 %v2082_v48 }
 0xe70   :  { %v2588_v49 = vpop.eup %2587 }
 0xe71   :  { %v1557_v50 = vadd.f32 1.0, %v2588_v49 }
 0xe73   :  { %2589 = vrcp.f32 %v1557_v50 }
 0xe80   :  { %v2590_v51 = vpop.eup %2589 }
 0xe81   :  { %v1570_v61 = vsub.f32 1.0, %v2590_v51  ;;  %v1578_v63 = vmul.f32 %v2590_v51, %v1576_v17 }
 0xed1   :  { %v1561_v52 = vpop.permute.xlu0 %1560 }
 0xed2   :  { %v1563_v53 = vmul.f32 %v2590_v51, %v1561_v52  ;;  %v1945_v52 = vld [vmem:[%s3509_s5 + $0xf8] sm:$0xff] }
 0xed4   :  { %1565 = vrot.lane.b32.xlu1 %v1563_v53, %s2633_s3  ;;  %v1944_v53 = vld [vmem:[%s3509_s5 + $0xf0] sm:$0xff] }
 0xf46   :  { %v1566_v54 = vpop.permute.xlu1 %1565 }
 0xf47   :  { %v1568_v55 = vadd.f32 %v1566_v54, %v3225_v14  ;;  %v1943_v54 = vld [vmem:[%s3509_s5 + $0xe8] sm:$0xff] }
 0xf49   :  { %2591 = vtanh.f32 %v1568_v55  ;;  %v1942_v55 = vld [vmem:[%s3509_s5 + $0xe0] sm:$0xff]  ;;  %s2635_s5 = smov [#allocation2]  }
 0xf56   :  { %v2592_v59 = vpop.eup %2591 }
 0xf57   :  { %1572 = vrot.lane.b32.xlu0 %v2592_v59, %s2634_s4 }
 0xfc9   :  { %v1573_v62 = vpop.permute.xlu0 %1572 }
 0xfca   :  { %v1575_v0 = vmul.f32 %v1573_v62, %v1570_v61 }
 0xfcc   :  { %v1579_v1 = vadd.f32 %v1578_v63, %v1575_v0 }
 0xfce   :  { %v1585_v2 = vrot.slane %v1579_v1, 2  ;;  %v1757_v29 = vrot.slane %v1579_v1, 6  ;;  %v2090_v1 = vld [vmem:[%s3510_s6] ss:$0 sm:$0xff]  ;;  %s2057_s6 = sshll.u32 %s2635_s5, 4  ;;  %s2058_s6 = int_to_ptr.vmem [resolvable:$true] %s2057_s6 }
 0xfcf   :  { %p2614_p1 = scmp.lt.s32.totalorder %s2058_s6, %s2058_s6 }
 0xfd0   :  { %1586 = vrot.lane.b32.xlu1 %v1585_v2, %s2634_s4 }
0x1042   :  { %v1587_v3 = vpop.permute.xlu1 %1586 }
0x1043   :  { %2506 = vmatmul.mubr.msk.f32.vlgmr.msra.gmra.mxu1 %vm582_vm1, %v1587_v3  ;;  %2517 = vmatmul.mubr.msk.f32.vlgmr.msra.gmra.mxu0 %vm582_vm1, %v1587_v3 }
0x1044   :  { %2531 = vmatpush3.msra.mxu0 %v3102_v13  ;;  %2538 = vmatprep.mubr.msk.f32.mxu0 %vm2632_vm0, %v2631_v15 }
0x1045   :  { %2532 = vmatprep.subr.mxu0 %v2631_v15  ;;  %2527 = vmatprep.mubr.msk.f32.mxu1 %vm2632_vm0, %v2631_v15 }
0x1046   :  { %2533 = vmatpush3.msra.mxu0 %v3118_v18  ;;  %2520 = vmatpush3.msra.mxu1 %v1764_v23 }
0x1047   :  { %2534 = vmatprep.subr.mxu0 %v2631_v15  ;;  %2521 = vmatprep.subr.mxu1 %v2631_v15 }
0x1048   :  { %2535 = vmatpush3.msra.mxu0 %v3134_v22  ;;  %2522 = vmatpush3.msra.mxu1 %v1763_v25 }
0x1049   :  { %2536 = vmatprep.subr.mxu0 %v2631_v15  ;;  %2523 = vmatprep.subr.mxu1 %v2631_v15 }
0x104a   :  { %2537 = vmatpush3.msra.mxu0 %v3143_v24  ;;  %2524 = vmatpush3.msra.mxu1 %v1762_v26 }
0x104b   :  { %2525 = vmatprep.subr.mxu1 %v2631_v15 }
0x104c   :  { %2526 = vmatpush3.msra.mxu1 %v1761_v28 }
0x104d   :  { %2541 = vmatprep.subr.mxu1 %v2631_v15 }
0x1103   :  { %v1656_v4 = vpop.f32.mrf.mxu1  ;;  %v1727_v13 = vpop.f32.mrf.mxu0 }
0x1104   :  { %v1660_v5 = vadd.f32 %v1656_v4, %v1479_v42  ;;  %v1728_v7 = vadd.f32 %v3221_v6, %v1727_v13 }
0x1105   :  { %v2507_v8 = vpop.f32.mrf.mxu1  ;;  %v2518_v9 = vpop.f32.mrf.mxu0 }
0x1106   :  { %v1732_v10 = vrot.slane %v1728_v7, 4 }
0x1108   :  { %1741 = vrot.lane.b32.xlu0 %v1732_v10, %s2633_s3  ;;  %v1734_v18 = vadd.f32 %v1732_v10, %v3225_v14 }
0x110a   :  { %v2085_v11 = vmul.f32 -1.442695, %v1734_v18 }
0x110c   :  { %2593 = vpow2.f32 %v2085_v11 }
0x1119   :  { %v2594_v12 = vpop.eup %2593 }
0x111a   :  { %v1738_v22 = vadd.f32 1.0, %v2594_v12 }
0x111c   :  { %2595 = vrcp.f32 %v1738_v22 }
0x1129   :  { %v2596_v16 = vpop.eup %2595 }
0x112a   :  { %v1751_v30 = vsub.f32 1.0, %v2596_v16  ;;  %v1759_v32 = vmul.f32 %v2596_v16, %v1757_v29 }
0x117a   :  { %v1742_v19 = vpop.permute.xlu0 %1741 }
0x117b   :  { %v1744_v24 = vmul.f32 %v2596_v16, %v1742_v19 }
0x117d   :  { %1746 = vrot.lane.b32.xlu1 %v1744_v24, %s2633_s3 }
0x11ef   :  { %v1747_v20 = vpop.permute.xlu1 %1746 }
0x11f0   :  { %v1749_v21 = vadd.f32 %v1747_v20, %v3225_v14 }
0x11f2   :  { %2597 = vtanh.f32 %v1749_v21 }
0x11ff   :  { %v2598_v27 = vpop.eup %2597 }
0x1200   :  { %1753 = vrot.lane.b32.xlu0 %v2598_v27, %s2634_s4 }
0x1272   :  { %v1754_v31 = vpop.permute.xlu0 %1753 }
0x1273   :  { %v1756_v33 = vmul.f32 %v1754_v31, %v1751_v30 }
0x1275   :  { %v1760_v34 = vadd.f32 %v1759_v32, %v1756_v33 }
0x1277   :  { %v1766_v35 = vrot.slane %v1760_v34, 4  ;;  %v1938_v56 = vrot.slane %v1760_v34, 6 }
0x1279   :  { %1767 = vrot.lane.b32.xlu1 %v1766_v35, %s2634_s4 }
0x12eb   :  { %v1768_v36 = vpop.permute.xlu1 %1767 }
0x12ec   :  { %2528 = vmatmul.mubr.msk.f32.vlgmr.msra.gmra.mxu1 %vm582_vm1, %v1768_v36  ;;  %2539 = vmatmul.mubr.msk.f32.vlgmr.msra.gmra.mxu0 %vm582_vm1, %v1768_v36 }
0x12ed   :  { %2549 = vmatprep.mubr.msk.f32.mxu1 %vm2632_vm0, %v2631_v15  ;;  %2542 = vmatpush3.msra.mxu1 %v1945_v52 }
0x12ee   :  { %2543 = vmatprep.subr.mxu1 %v2631_v15 }
0x12ef   :  { %2544 = vmatpush3.msra.mxu1 %v1944_v53 }
0x12f0   :  { %2545 = vmatprep.subr.mxu1 %v2631_v15 }
0x12f1   :  { %2546 = vmatpush3.msra.mxu1 %v1943_v54 }
0x12f2   :  { %2547 = vmatprep.subr.mxu1 %v2631_v15  ;;  %v2031_v15 = vlaneseq }
0x12f3   :  { %2548 = vmatpush3.msra.mxu1 %v1942_v55 }
0x12f4   :  { %v2032_v63 = vand.u32 127, %v2031_v15 }
0x12f6   :  { %vm2033_vm2 = vcmp.lt.s32.totalorder %v2032_v63, 28 }
0x13ac   :  { %v1837_v37 = vpop.f32.mrf.mxu1  ;;  %v1908_v38 = vpop.f32.mrf.mxu0 }
0x13ad   :  { %v1841_v39 = vadd.f32 %v1837_v37, %v1660_v5  ;;  %v1909_v40 = vadd.f32 %v3221_v6, %v1908_v38 }
0x13ae   :  { %v2529_v41 = vpop.f32.mrf.mxu1  ;;  %v2540_v42 = vpop.f32.mrf.mxu0 }
0x13af   :  { %v1913_v43 = vrot.slane %v1909_v40, 2 }
0x13b1   :  { %1922 = vrot.lane.b32.xlu0 %v1913_v43, %s2633_s3  ;;  %v1915_v44 = vadd.f32 %v1913_v43, %v3225_v14 }
0x13b3   :  { %v2088_v45 = vmul.f32 -1.442695, %v1915_v44 }
0x13b5   :  { %2599 = vpow2.f32 %v2088_v45 }
0x13c2   :  { %v2600_v46 = vpop.eup %2599 }
0x13c3   :  { %v1919_v47 = vadd.f32 1.0, %v2600_v46 }
0x13c5   :  { %2601 = vrcp.f32 %v1919_v47 }
0x13d2   :  { %v2602_v48 = vpop.eup %2601 }
0x13d3   :  { %v1932_v57 = vsub.f32 1.0, %v2602_v48  ;;  %v1940_v59 = vmul.f32 %v2602_v48, %v1938_v56 }
0x1423   :  { %v1923_v49 = vpop.permute.xlu0 %1922 }
0x1424   :  { %v1925_v50 = vmul.f32 %v2602_v48, %v1923_v49 }
0x1426   :  { %1927 = vrot.lane.b32.xlu1 %v1925_v50, %s2633_s3 }
0x1498   :  { %v1928_v51 = vpop.permute.xlu1 %1927 }
0x1499   :  { %v1930_v6 = vadd.f32 %v1928_v51, %v3225_v14 }
0x149b   :  { %2603 = vtanh.f32 %v1930_v6 }
0x14a8   :  { %v2604_v14 = vpop.eup %2603 }
0x14a9   :  { %1934 = vrot.lane.b32.xlu0 %v2604_v14, %s2634_s4 }
0x151b   :  { %v1935_v58 = vpop.permute.xlu0 %1934 }
0x151c   :  { %v1937_v60 = vmul.f32 %v1935_v58, %v1932_v57 }
0x151e   :  { %v1941_v17 = vadd.f32 %v1940_v59, %v1937_v60 }
0x1520   :  { %v1947_v61 = vrot.slane %v1941_v17, 6 }
0x1522   :  { %1948 = vrot.lane.b32.xlu1 %v1947_v61, %s2634_s4  ;;  %s2609_s4 = scalar_lea.vmem %s2058_s6, 32 }
0x1523   :  { %p2610_p0 = scmp.ne.s32.totalorder %s2058_s6, %s2609_s4  ;;  %p2615_p2 = scmp.lt.s32.totalorder %s2609_s4, %s2609_s4 }
0x1525   :  { %p2616_p3 = por %p2615_p2, %p2614_p1 }
0x1527   :  { %p2617_p4 = pnand %p2616_p3, %p2610_p0 }
0x1594   :  { %v1949_v62 = vpop.permute.xlu1 %1948 }
0x1595   :  { %2550 = vmatmul.mubr.msk.f32.vlgmr.msra.gmra.mxu1 %vm582_vm1, %v1949_v62 }
0x1655   :  { %v2018_v0 = vpop.f32.mrf.mxu1 }
0x1656   :  { %v2022_v2 = vadd.f32 %v2018_v0, %v1841_v39 }
0x1657   :  { %v2551_v3 = vpop.f32.mrf.mxu1 }
0x1658   :  { %v2030_v4 = vadd.f32 %v2090_v1, %v2022_v2 }
0x165a   :  { %v2034_v13 = vsel %vm2033_vm2, %v2030_v4, -1e+30 }
0x165b   :  { %v2036_v5 = vsel %vm2035_vm3, %v2034_v13, -inf }
0x165c   :  { %2037 = vmax.xlane.f32.xlu0 %v2036_v5 }
0x16e5   :  { %v2038_v7 = vpop.xlane.xlu0 %2037 }
0x16e6   :  { %v2039_v8 = vsub.f32 %v2034_v13, %v2038_v7 }
0x16e8   :  { %v2040_v9 = vmul.f32 1.442695, %v2039_v8 }
0x16ea   :  { %2605 = vpow2.f32 %v2040_v9 }
0x16f7   :  { %v2606_v10 = vpop.eup %2605 }
0x16f8   :  { %v2042_v18 = vsel %vm2035_vm3, %v2606_v10, 0.0 }
0x16f9   :  { %2043 = vadd.xlane.f32.xlu1 %v2042_v18 }
0x1782   :  { %v2044_v11 = vpop.xlane.xlu1 %2043 }
0x1783   :  { %2607 = vrcp.f32 %v2044_v11 }
0x1790   :  { %v2608_v12 = vpop.eup %2607 }
0x1791   :  { %v2046_v22 = vmul.f32 %v2608_v12, %v2044_v11 }
0x1793   :  { %v2047_v16 = vsub.f32 2.0, %v2046_v22 }
0x1795   :  { %v2048_v19 = vmul.f32 %v2608_v12, %v2047_v16 }
0x1797   :  { %v2049_v24 = vmul.f32 %v2606_v10, %v2048_v19 }
0x1799   :  { %2050 = vst [vmem:[#allocation2] sm:$0x3] %v2049_v24 }
0x179a   :  { %2620 = shalt.err (!%p2617_p4)
}
0x179b   :  { %2060 = dma.vmem_to_hbm [thread:$0]  %s2058_s6, 32, %s3511_s7, [#allocation3]  }
0x179c   :  { %2629 = dma.done.wait [#allocation3], 32  }
0x179d   :  { %2630 = vsyncadd [#allocation3], 4294967264 }
0x179e   :  { %2064 = vsyncpa [#allocation3], 1 }

// kernel: lipnet_forward.2
= control target key start
LH: loop header
LB: loop body
LE: loop exit
PB: predicated region body
PF: predicated region fallthrough
CT: control target
= control target key end

     0   :  { %10 = vsyncpa [#allocation3], 0  ;;  %s4515_s0 = inlined_call_operand.vmem [shape: f32[16,256], index: 0, kind: input, shape index: {}]   ;;  %s4516_s1 = inlined_call_operand.vmem [shape: f32[256,784], index: 1, kind: input, shape index: {}]   ;;  %s4517_s2 = inlined_call_operand.hbm [shape: f32[1,784], index: 2, kind: input, shape index: {}]   ;;  %s4518_s3 = inlined_call_operand.hbm [shape: f32[784,1152], index: 3, kind: input, shape index: {}]   ;;  %s4519_s4 = inlined_call_operand.hbm [shape: f32[1,1152], index: 4, kind: input, shape index: {}]   ;;  %s4520_s5 = inlined_call_operand.vmem [shape: f32[16,1152], index: 5, kind: output, shape index: {}]  }
   0x1   :  { %11 = vsyncpa [#allocation5], 0  ;;  %s3622_s18 = smov 0  }
   0x2 LB: > { %s3585_s19 = smov [#allocation4]   ;;  %s3628_s21 = sadd.s32 4294967295, %s3583_s18   ;;  %s3583_s18 = sphi %s3622_s18, %s17_s18  }
   0x3   : > { %s184_s20 = sshll.u32 %s3585_s19, 4  ;;  %p3275_p0 = scmp.ge.s32.totalorder %s3583_s18, 1  ;;  %s185_s20 = int_to_ptr.vmem [resolvable:$true] %s184_s20 }
   0x4   : > { %p158_p1 = scmp.lt.s32.totalorder %s3583_s18, 3  ;;  %p3469_p2 = scmp.eq.s32.totalorder %s3628_s21, 0 }
   0x5   : > { %s3586_s23 = smov [#allocation2]   ;;  %s3587_s26 = smov [#allocation6]  }
   0x6   : > { %p3633_p3 = pnand %p3275_p0, %p158_p1  ;;  %s174_s24 = sshll.u32 %s3586_s23, 4  ;;  %s175_s24 = int_to_ptr.vmem [resolvable:$true] %s174_s24 }
   0x7   : > { %s198_s27 = sshll.u32 %s3587_s26, 4  ;;  %s3502_s28 = scalar_lea.vmem %s185_s20, 112896  ;;  %s3645_s27 = int_to_ptr.vmem [resolvable:$true] %s198_s27 }
   0x8   : > { %p3459_p4 = pneg %p3633_p3  ;;  %p3503_p7 = scmp.ne.s32.totalorder %s185_s20, %s3502_s28 }
   0x9   : > { %p3510_p10 = scmp.lt.s32.totalorder %s185_s20, %s185_s20  ;;  %p3511_p11 = scmp.lt.s32.totalorder %s3502_s28, %s3502_s28 }
   0xa   : > { %p3641_p5 = pnand %p3469_p2, %p3459_p4 }
   0xb   : > { %p3512_p12 = por %p3511_p11, %p3510_p10 }
   0xc   : > { %p3493_p6 = pneg %p3641_p5 }
   0xe   : > { %p3505_p8 = pnand %p3503_p7, %p3493_p6 }
  0x10   : > { %p3506_p9 = pneg %p3505_p8 }
  0x12   : > { %p3513_p13 = pnand %p3512_p12, %p3506_p9 }
  0x14   : > { %3516 = shalt.err (!%p3513_p13)
}
  0x15   : > { %s3588_s29 = smov 1152   ;;  %s3589_s30 = smov 72  }
  0x16   : > { %3465 = dma.hbm_to_vmem [thread:$0]  (!%p3641_p5), %s4518_s3, 112896, %s185_s20, [#allocation5], %s3588_s29, %s3588_s29, %s3589_s30  }
  0x17   : > { %s3528_s8 = scalar_lea.vmem %s175_s24, 112  ;;  %s3535_s9 = scalar_lea.vmem %s175_s24, 128 }
  0x18   : > { %p3529_p0 = scmp.ne.s32.totalorder %s175_s24, %s3528_s8  ;;  %p3536_p7 = scmp.lt.s32.totalorder %s175_s24, %s175_s24 }
  0x19   : > { %p3537_p8 = scmp.lt.s32.totalorder %s3535_s9, %s3528_s8 }
  0x1a   : > { %p3531_p1 = pnand %p3529_p0, %p3493_p6 }
  0x1b   : > { %p3538_p9 = por %p3537_p8, %p3536_p7 }
  0x1c   : > { %p3532_p4 = pneg %p3531_p1 }
  0x1e   : > { %p3539_p10 = pnand %p3538_p9, %p3532_p4 }
  0x20   : > { %3542 = shalt.err (!%p3539_p10)
}
  0x21   : > { %3462 = dma.hbm_to_vmem [thread:$0]  (!%p3641_p5), %s4517_s2, 112, %s175_s24, [#allocation3]  }
  0x22   : > { %s3554_s12 = scalar_lea.vmem %s3645_s27, 144  ;;  %s3561_s13 = scalar_lea.vmem %s3645_s27, 160 }
  0x23   : > { %p3555_p11 = scmp.ne.s32.totalorder %s3645_s27, %s3554_s12  ;;  %p3562_p0 = scmp.lt.s32.totalorder %s3645_s27, %s3645_s27 }
  0x24   : > { %p3563_p1 = scmp.lt.s32.totalorder %s3561_s13, %s3554_s12 }
  0x25   : > { %p3557_p12 = pnand %p3555_p11, %p3493_p6 }
  0x26   : > { %p3564_p4 = por %p3563_p1, %p3562_p0 }
  0x27   : > { %p3558_p13 = pneg %p3557_p12 }
  0x29   : > { %p3565_p7 = pnand %p3564_p4, %p3558_p13 }
  0x2b   : > { %3568 = shalt.err (!%p3565_p7)
}
  0x2c   : > { %3468 = dma.hbm_to_vmem [thread:$0]  (!%p3641_p5), %s4519_s4, 144, %s3645_s27, [#allocation5]  }
  0x2d   : > { %219 = sbr.rel (%p3633_p3) target bundleno = 931 (0x3a3), region = 40 }
  0x32   : > { %3574 = dma.done.wait (%p3469_p2), [#allocation3], 112  }
  0x33   : > { %3576 = vsyncadd (%p3469_p2), [#allocation3], 4294967184 }
  0x34   : > { %3578 = dma.done.wait (%p3469_p2), [#allocation5], 113040  }
  0x35   : > { %3580 = vsyncadd (%p3469_p2), [#allocation5], 4294854256  ;;  %v373_v0 = vld [vmem:[%s4516_s1 + $0x350] sm:$0xff]  ;;  %v375_v1 = vld [vmem:[%s4516_s1 + $0x360] sm:$0xff]  ;;  %p255_p2 = scmp.lt.s32.totalorder %s3628_s21, 1  ;;  %vm1749_vm0 = vcmask 130048  }
  0x36   : > { %v372_v2 = vld [vmem:[%s4516_s1 + $0x348] sm:$0xff]  ;;  %528 = vmatprep.subr.mxu0 %v373_v0  ;;  %599 = vmatprep.subr.mxu1 %v375_v1  ;;  %v374_v3 = vld [vmem:[%s4516_s1 + $0x358] sm:$0xff]  ;;  %v365_v6 = vld [vmem:[%s4516_s1 + $0x310] sm:$0xff]  ;;  %vm3591_vm1 = vmmov 0  }
  0x37   : > { %v366_v4 = vld [vmem:[%s4516_s1 + $0x318] sm:$0xff]  ;;  %v368_v5 = vld [vmem:[%s4516_s1 + $0x328] sm:$0xff]  ;;  %529 = vmatpush1.msra.mxu0 %v372_v2  ;;  %600 = vmatpush1.msra.mxu1 %v374_v3  ;;  %v367_v7 = vld [vmem:[%s4516_s1 + $0x320] sm:$0xff]  ;;  %s4524_s21 = smov (!%p255_p2, %s3628_s21), 1 }
  0x38   : > { %v359_v8 = vld [vmem:[%s4516_s1 + $0x2e0] sm:$0xff]  ;;  %530 = vmatprep.subr.mxu0 %v366_v4  ;;  %601 = vmatprep.subr.mxu1 %v368_v5  ;;  %v361_v9 = vld [vmem:[%s4516_s1 + $0x2f0] sm:$0xff]  ;;  %v358_v10 = vld [vmem:[%s4516_s1 + $0x2d8] sm:$0xff]  ;;  %s3295_s19 = sshll.u32 %s4524_s21, 4  ;;  %s3446_s8 = smul.u32 72, %s4524_s21 }
  0x39   : > { %v360_v11 = vld [vmem:[%s4516_s1 + $0x2e8] sm:$0xff]  ;;  %531 = vmatpush1.msra.mxu0 %v365_v6  ;;  %602 = vmatpush1.msra.mxu1 %v367_v7  ;;  %v354_v13 = vld [vmem:[%s4516_s1 + $0x2b8] sm:$0xff]  ;;  %v351_v14 = vld [vmem:[%s4516_s1 + $0x2a0] sm:$0xff]  ;;  %s259_s10 = scalar_lea.vmem %s4515_s0, %s3295_s19 }
  0x3a   : > { %v352_v12 = vld [vmem:[%s4516_s1 + $0x2a8] sm:$0xff]  ;;  %532 = vmatprep.subr.mxu0 %v359_v8  ;;  %603 = vmatprep.subr.mxu1 %v361_v9  ;;  %v353_v15 = vld [vmem:[%s4516_s1 + $0x2b0] sm:$0xff]  ;;  %v347_v17 = vld [vmem:[%s4516_s1 + $0x280] sm:$0xff] }
  0x3b   : > { %533 = vmatpush1.msra.mxu0 %v358_v10  ;;  %604 = vmatpush1.msra.mxu1 %v360_v11  ;;  %v345_v16 = vld [vmem:[%s4516_s1 + $0x270] sm:$0xff]  ;;  %v344_v18 = vld [vmem:[%s4516_s1 + $0x268] sm:$0xff]  ;;  %v346_v19 = vld [vmem:[%s4516_s1 + $0x278] sm:$0xff] }
  0x3c   : > { %534 = vmatprep.subr.mxu0 %v352_v12  ;;  %605 = vmatprep.subr.mxu1 %v354_v13  ;;  %v338_v20 = vld [vmem:[%s4516_s1 + $0x238] sm:$0xff]  ;;  %v340_v21 = vld [vmem:[%s4516_s1 + $0x248] sm:$0xff]  ;;  %v337_v22 = vld [vmem:[%s4516_s1 + $0x230] sm:$0xff] }
  0x3d   : > { %535 = vmatpush1.msra.mxu0 %v351_v14  ;;  %606 = vmatpush1.msra.mxu1 %v353_v15  ;;  %v339_v23 = vld [vmem:[%s4516_s1 + $0x240] sm:$0xff]  ;;  %v333_v25 = vld [vmem:[%s4516_s1 + $0x210] sm:$0xff]  ;;  %v330_v26 = vld [vmem:[%s4516_s1 + $0x1f8] sm:$0xff] }
  0x3e   : > { %536 = vmatprep.subr.mxu0 %v345_v16  ;;  %607 = vmatprep.subr.mxu1 %v347_v17  ;;  %v331_v24 = vld [vmem:[%s4516_s1 + $0x200] sm:$0xff]  ;;  %v332_v27 = vld [vmem:[%s4516_s1 + $0x208] sm:$0xff]  ;;  %v326_v29 = vld [vmem:[%s4516_s1 + $0x1d8] sm:$0xff] }
  0x3f   : > { %537 = vmatpush1.msra.mxu0 %v344_v18  ;;  %608 = vmatpush1.msra.mxu1 %v346_v19  ;;  %v324_v28 = vld [vmem:[%s4516_s1 + $0x1c8] sm:$0xff]  ;;  %v323_v30 = vld [vmem:[%s4516_s1 + $0x1c0] sm:$0xff]  ;;  %v325_v31 = vld [vmem:[%s4516_s1 + $0x1d0] sm:$0xff] }
  0x40   : > { %538 = vmatprep.subr.mxu0 %v338_v20  ;;  %609 = vmatprep.subr.mxu1 %v340_v21  ;;  %v317_v32 = vld [vmem:[%s4516_s1 + $0x190] sm:$0xff]  ;;  %v319_v33 = vld [vmem:[%s4516_s1 + $0x1a0] sm:$0xff]  ;;  %v316_v34 = vld [vmem:[%s4516_s1 + $0x188] sm:$0xff] }
  0x41   : > { %539 = vmatpush1.msra.mxu0 %v337_v22  ;;  %610 = vmatpush1.msra.mxu1 %v339_v23  ;;  %v318_v35 = vld [vmem:[%s4516_s1 + $0x198] sm:$0xff]  ;;  %v312_v37 = vld [vmem:[%s4516_s1 + $0x168] sm:$0xff]  ;;  %v309_v38 = vld [vmem:[%s4516_s1 + $0x150] sm:$0xff] }
  0x42   : > { %540 = vmatprep.subr.mxu0 %v331_v24  ;;  %611 = vmatprep.subr.mxu1 %v333_v25  ;;  %v310_v36 = vld [vmem:[%s4516_s1 + $0x158] sm:$0xff]  ;;  %v311_v39 = vld [vmem:[%s4516_s1 + $0x160] sm:$0xff]  ;;  %v305_v41 = vld [vmem:[%s4516_s1 + $0x130] sm:$0xff] }
  0x43   : > { %541 = vmatpush1.msra.mxu0 %v330_v26  ;;  %612 = vmatpush1.msra.mxu1 %v332_v27  ;;  %v303_v40 = vld [vmem:[%s4516_s1 + $0x120] sm:$0xff]  ;;  %v302_v42 = vld [vmem:[%s4516_s1 + $0x118] sm:$0xff]  ;;  %v304_v43 = vld [vmem:[%s4516_s1 + $0x128] sm:$0xff] }
  0x44   : > { %542 = vmatprep.subr.mxu0 %v324_v28  ;;  %613 = vmatprep.subr.mxu1 %v326_v29  ;;  %v296_v44 = vld [vmem:[%s4516_s1 + $0xe8] sm:$0xff]  ;;  %v298_v45 = vld [vmem:[%s4516_s1 + $0xf8] sm:$0xff]  ;;  %v295_v46 = vld [vmem:[%s4516_s1 + $0xe0] sm:$0xff] }
  0x45   : > { %543 = vmatpush1.msra.mxu0 %v323_v30  ;;  %614 = vmatpush1.msra.mxu1 %v325_v31  ;;  %v297_v47 = vld [vmem:[%s4516_s1 + $0xf0] sm:$0xff]  ;;  %v291_v49 = vld [vmem:[%s4516_s1 + $0xc0] sm:$0xff]  ;;  %v288_v50 = vld [vmem:[%s4516_s1 + $0xa8] sm:$0xff] }
  0x46   : > { %544 = vmatprep.subr.mxu0 %v317_v32  ;;  %615 = vmatprep.subr.mxu1 %v319_v33  ;;  %v289_v48 = vld [vmem:[%s4516_s1 + $0xb0] sm:$0xff]  ;;  %v290_v51 = vld [vmem:[%s4516_s1 + $0xb8] sm:$0xff]  ;;  %v284_v53 = vld [vmem:[%s4516_s1 + $0x88] sm:$0xff] }
  0x47   : > { %545 = vmatpush1.msra.mxu0 %v316_v34  ;;  %616 = vmatpush1.msra.mxu1 %v318_v35  ;;  %v282_v52 = vld [vmem:[%s4516_s1 + $0x78] sm:$0xff]  ;;  %v281_v54 = vld [vmem:[%s4516_s1 + $0x70] sm:$0xff]  ;;  %v283_v55 = vld [vmem:[%s4516_s1 + $0x80] sm:$0xff] }
  0x48   : > { %546 = vmatprep.subr.mxu0 %v310_v36  ;;  %617 = vmatprep.subr.mxu1 %v312_v37  ;;  %v275_v56 = vld [vmem:[%s4516_s1 + $0x40] sm:$0xff]  ;;  %v277_v57 = vld [vmem:[%s4516_s1 + $0x50] sm:$0xff]  ;;  %v274_v58 = vld [vmem:[%s4516_s1 + $0x38] sm:$0xff] }
  0x49   : > { %547 = vmatpush1.msra.mxu0 %v309_v38  ;;  %618 = vmatpush1.msra.mxu1 %v311_v39  ;;  %v276_v59 = vld [vmem:[%s4516_s1 + $0x48] sm:$0xff]  ;;  %v270_v61 = vld [vmem:[%s4516_s1 + $0x18] sm:$0xff]  ;;  %v267_v62 = vld [vmem:[%s4516_s1] sm:$0xff] }
  0x4a   : > { %548 = vmatprep.subr.mxu0 %v303_v40  ;;  %619 = vmatprep.subr.mxu1 %v305_v41  ;;  %v268_v60 = vld [vmem:[%s4516_s1 + $0x8] sm:$0xff]  ;;  %v269_v63 = vld [vmem:[%s4516_s1 + $0x10] sm:$0xff]  ;;  %v487_v1 = vld [vmem:[%s4516_s1 + $0x6e0] sm:$0xff] }
  0x4b   : > { %549 = vmatpush1.msra.mxu0 %v302_v42  ;;  %620 = vmatpush1.msra.mxu1 %v304_v43  ;;  %v485_v0 = vld [vmem:[%s4516_s1 + $0x6d0] sm:$0xff]  ;;  %v484_v2 = vld [vmem:[%s4516_s1 + $0x6c8] sm:$0xff]  ;;  %v486_v3 = vld [vmem:[%s4516_s1 + $0x6d8] sm:$0xff] }
  0x4c   : > { %550 = vmatprep.subr.mxu0 %v296_v44  ;;  %621 = vmatprep.subr.mxu1 %v298_v45  ;;  %v478_v4 = vld [vmem:[%s4516_s1 + $0x698] sm:$0xff]  ;;  %v480_v5 = vld [vmem:[%s4516_s1 + $0x6a8] sm:$0xff]  ;;  %v477_v6 = vld [vmem:[%s4516_s1 + $0x690] sm:$0xff] }
  0x4d   : > { %551 = vmatpush1.msra.mxu0 %v295_v46  ;;  %622 = vmatpush1.msra.mxu1 %v297_v47  ;;  %v479_v7 = vld [vmem:[%s4516_s1 + $0x6a0] sm:$0xff]  ;;  %v473_v9 = vld [vmem:[%s4516_s1 + $0x670] sm:$0xff]  ;;  %v470_v10 = vld [vmem:[%s4516_s1 + $0x658] sm:$0xff] }
  0x4e   : > { %552 = vmatprep.subr.mxu0 %v289_v48  ;;  %623 = vmatprep.subr.mxu1 %v291_v49  ;;  %v471_v8 = vld [vmem:[%s4516_s1 + $0x660] sm:$0xff]  ;;  %v472_v11 = vld [vmem:[%s4516_s1 + $0x668] sm:$0xff]  ;;  %v466_v13 = vld [vmem:[%s4516_s1 + $0x638] sm:$0xff] }
  0x4f   : > { %553 = vmatpush1.msra.mxu0 %v288_v50  ;;  %624 = vmatpush1.msra.mxu1 %v290_v51  ;;  %v464_v12 = vld [vmem:[%s4516_s1 + $0x628] sm:$0xff]  ;;  %v463_v14 = vld [vmem:[%s4516_s1 + $0x620] sm:$0xff]  ;;  %v465_v15 = vld [vmem:[%s4516_s1 + $0x630] sm:$0xff] }
  0x50   : > { %554 = vmatprep.subr.mxu0 %v282_v52  ;;  %625 = vmatprep.subr.mxu1 %v284_v53  ;;  %v457_v16 = vld [vmem:[%s4516_s1 + $0x5f0] sm:$0xff]  ;;  %v459_v17 = vld [vmem:[%s4516_s1 + $0x600] sm:$0xff]  ;;  %v456_v18 = vld [vmem:[%s4516_s1 + $0x5e8] sm:$0xff] }
  0x51   : > { %555 = vmatpush1.msra.mxu0 %v281_v54  ;;  %626 = vmatpush1.msra.mxu1 %v283_v55  ;;  %v458_v19 = vld [vmem:[%s4516_s1 + $0x5f8] sm:$0xff]  ;;  %v452_v21 = vld [vmem:[%s4516_s1 + $0x5c8] sm:$0xff]  ;;  %v449_v22 = vld [vmem:[%s4516_s1 + $0x5b0] sm:$0xff] }
  0x52   : > { %556 = vmatprep.subr.mxu0 %v275_v56  ;;  %627 = vmatprep.subr.mxu1 %v277_v57  ;;  %v450_v20 = vld [vmem:[%s4516_s1 + $0x5b8] sm:$0xff]  ;;  %v451_v23 = vld [vmem:[%s4516_s1 + $0x5c0] sm:$0xff]  ;;  %v445_v25 = vld [vmem:[%s4516_s1 + $0x590] sm:$0xff] }
  0x53   : > { %557 = vmatpush1.msra.mxu0 %v274_v58  ;;  %628 = vmatpush1.msra.mxu1 %v276_v59  ;;  %v443_v24 = vld [vmem:[%s4516_s1 + $0x580] sm:$0xff]  ;;  %v442_v26 = vld [vmem:[%s4516_s1 + $0x578] sm:$0xff]  ;;  %v444_v27 = vld [vmem:[%s4516_s1 + $0x588] sm:$0xff] }
  0x54   : > { %558 = vmatprep.subr.mxu0 %v268_v60  ;;  %629 = vmatprep.subr.mxu1 %v270_v61  ;;  %v436_v28 = vld [vmem:[%s4516_s1 + $0x548] sm:$0xff]  ;;  %v438_v29 = vld [vmem:[%s4516_s1 + $0x558] sm:$0xff]  ;;  %v435_v30 = vld [vmem:[%s4516_s1 + $0x540] sm:$0xff] }
  0x55   : > { %559 = vmatpush1.msra.mxu0 %v267_v62  ;;  %630 = vmatpush1.msra.mxu1 %v269_v63  ;;  %v437_v31 = vld [vmem:[%s4516_s1 + $0x550] sm:$0xff]  ;;  %v431_v33 = vld [vmem:[%s4516_s1 + $0x520] sm:$0xff]  ;;  %v428_v34 = vld [vmem:[%s4516_s1 + $0x508] sm:$0xff] }
  0x56   : > { %560 = vmatprep.subr.mxu0 %v485_v0  ;;  %631 = vmatprep.subr.mxu1 %v487_v1  ;;  %v429_v32 = vld [vmem:[%s4516_s1 + $0x510] sm:$0xff]  ;;  %v430_v35 = vld [vmem:[%s4516_s1 + $0x518] sm:$0xff]  ;;  %v424_v37 = vld [vmem:[%s4516_s1 + $0x4e8] sm:$0xff] }
  0x57   : > { %561 = vmatpush2.msra.mxu0 %v484_v2  ;;  %632 = vmatpush2.msra.mxu1 %v486_v3  ;;  %v422_v36 = vld [vmem:[%s4516_s1 + $0x4d8] sm:$0xff]  ;;  %v421_v38 = vld [vmem:[%s4516_s1 + $0x4d0] sm:$0xff]  ;;  %v423_v39 = vld [vmem:[%s4516_s1 + $0x4e0] sm:$0xff] }
  0x58   : > { %562 = vmatprep.subr.mxu0 %v478_v4  ;;  %633 = vmatprep.subr.mxu1 %v480_v5  ;;  %v415_v40 = vld [vmem:[%s4516_s1 + $0x4a0] sm:$0xff]  ;;  %v417_v41 = vld [vmem:[%s4516_s1 + $0x4b0] sm:$0xff]  ;;  %v414_v42 = vld [vmem:[%s4516_s1 + $0x498] sm:$0xff] }
  0x59   : > { %563 = vmatpush2.msra.mxu0 %v477_v6  ;;  %634 = vmatpush2.msra.mxu1 %v479_v7  ;;  %v416_v43 = vld [vmem:[%s4516_s1 + $0x4a8] sm:$0xff]  ;;  %v410_v45 = vld [vmem:[%s4516_s1 + $0x478] sm:$0xff]  ;;  %v407_v46 = vld [vmem:[%s4516_s1 + $0x460] sm:$0xff] }
  0x5a   : > { %564 = vmatprep.subr.mxu0 %v471_v8  ;;  %635 = vmatprep.subr.mxu1 %v473_v9  ;;  %v408_v44 = vld [vmem:[%s4516_s1 + $0x468] sm:$0xff]  ;;  %v409_v47 = vld [vmem:[%s4516_s1 + $0x470] sm:$0xff]  ;;  %v403_v49 = vld [vmem:[%s4516_s1 + $0x440] sm:$0xff] }
  0x5b   : > { %565 = vmatpush2.msra.mxu0 %v470_v10  ;;  %636 = vmatpush2.msra.mxu1 %v472_v11  ;;  %v401_v48 = vld [vmem:[%s4516_s1 + $0x430] sm:$0xff]  ;;  %v400_v50 = vld [vmem:[%s4516_s1 + $0x428] sm:$0xff]  ;;  %v402_v51 = vld [vmem:[%s4516_s1 + $0x438] sm:$0xff] }
  0x5c   : > { %566 = vmatprep.subr.mxu0 %v464_v12  ;;  %637 = vmatprep.subr.mxu1 %v466_v13  ;;  %v394_v52 = vld [vmem:[%s4516_s1 + $0x3f8] sm:$0xff]  ;;  %v396_v53 = vld [vmem:[%s4516_s1 + $0x408] sm:$0xff]  ;;  %v393_v54 = vld [vmem:[%s4516_s1 + $0x3f0] sm:$0xff] }
  0x5d   : > { %567 = vmatpush2.msra.mxu0 %v463_v14  ;;  %638 = vmatpush2.msra.mxu1 %v465_v15  ;;  %v395_v55 = vld [vmem:[%s4516_s1 + $0x400] sm:$0xff]  ;;  %v389_v57 = vld [vmem:[%s4516_s1 + $0x3d0] sm:$0xff]  ;;  %v386_v58 = vld [vmem:[%s4516_s1 + $0x3b8] sm:$0xff] }
  0x5e   : > { %568 = vmatprep.subr.mxu0 %v457_v16  ;;  %639 = vmatprep.subr.mxu1 %v459_v17  ;;  %v387_v56 = vld [vmem:[%s4516_s1 + $0x3c0] sm:$0xff]  ;;  %v388_v59 = vld [vmem:[%s4516_s1 + $0x3c8] sm:$0xff]  ;;  %v382_v61 = vld [vmem:[%s4516_s1 + $0x398] sm:$0xff] }
  0x5f   : > { %569 = vmatpush2.msra.mxu0 %v456_v18  ;;  %640 = vmatpush2.msra.mxu1 %v458_v19  ;;  %v380_v60 = vld [vmem:[%s4516_s1 + $0x388] sm:$0xff]  ;;  %v379_v62 = vld [vmem:[%s4516_s1 + $0x380] sm:$0xff]  ;;  %v381_v0 = vld [vmem:[%s4516_s1 + $0x390] sm:$0xff] }
  0x60   : > { %570 = vmatprep.subr.mxu0 %v450_v20  ;;  %641 = vmatprep.subr.mxu1 %v452_v21  ;;  %v4080_v63 = vld [vmem:[%s259_s10 + $0x8] sm:$0xff]  ;;  %v4085_v1 = vld [vmem:[%s259_s10] sm:$0xff]  ;;  %v377_v2 = vld [vmem:[%s4516_s1 + $0x370] sm:$0xff]  ;;  %s4468_s10 = scalar_lea.vmem %s4520_s5, %s3446_s8 }
  0x61   : > { %571 = vmatpush2.msra.mxu0 %v449_v22  ;;  %642 = vmatpush2.msra.mxu1 %v451_v23  ;;  %v490_v3 = vld [vmem:[%s4516_s1 + $0x6f8] sm:$0xff]  ;;  %v376_v4 = vld [vmem:[%s4516_s1 + $0x368] sm:$0xff]  ;;  %v483_v7 = vld [vmem:[%s4516_s1 + $0x6c0] sm:$0xff] }
  0x62   : > { %572 = vmatprep.subr.mxu0 %v443_v24  ;;  %643 = vmatprep.subr.mxu1 %v445_v25  ;;  %v378_v5 = vld [vmem:[%s4516_s1 + $0x378] sm:$0xff]  ;;  %v369_v8 = vld [vmem:[%s4516_s1 + $0x330] sm:$0xff]  ;;  %v371_v9 = vld [vmem:[%s4516_s1 + $0x340] sm:$0xff] }
  0x63   : > { %573 = vmatpush2.msra.mxu0 %v442_v26  ;;  %644 = vmatpush2.msra.mxu1 %v444_v27  ;;  %v370_v6 = vld [vmem:[%s4516_s1 + $0x338] sm:$0xff]  ;;  %v363_v10 = vld [vmem:[%s4516_s1 + $0x300] sm:$0xff]  ;;  %v476_v11 = vld [vmem:[%s4516_s1 + $0x688] sm:$0xff] }
  0x64   : > { %574 = vmatprep.subr.mxu0 %v436_v28  ;;  %645 = vmatprep.subr.mxu1 %v438_v29  ;;  %v362_v12 = vld [vmem:[%s4516_s1 + $0x2f8] sm:$0xff]  ;;  %v364_v13 = vld [vmem:[%s4516_s1 + $0x308] sm:$0xff]  ;;  %v469_v15 = vld [vmem:[%s4516_s1 + $0x650] sm:$0xff] }
  0x65   : > { %575 = vmatpush2.msra.mxu0 %v435_v30  ;;  %646 = vmatpush2.msra.mxu1 %v437_v31  ;;  %v356_v14 = vld [vmem:[%s4516_s1 + $0x2c8] sm:$0xff]  ;;  %v355_v16 = vld [vmem:[%s4516_s1 + $0x2c0] sm:$0xff]  ;;  %v357_v17 = vld [vmem:[%s4516_s1 + $0x2d0] sm:$0xff] }
  0x66   : > { %576 = vmatprep.subr.mxu0 %v429_v32  ;;  %647 = vmatprep.subr.mxu1 %v431_v33  ;;  %v349_v18 = vld [vmem:[%s4516_s1 + $0x290] sm:$0xff]  ;;  %v462_v19 = vld [vmem:[%s4516_s1 + $0x618] sm:$0xff]  ;;  %v348_v20 = vld [vmem:[%s4516_s1 + $0x288] sm:$0xff] }
  0x67   : > { %577 = vmatpush2.msra.mxu0 %v428_v34  ;;  %648 = vmatpush2.msra.mxu1 %v430_v35  ;;  %v350_v21 = vld [vmem:[%s4516_s1 + $0x298] sm:$0xff]  ;;  %v455_v23 = vld [vmem:[%s4516_s1 + $0x5e0] sm:$0xff]  ;;  %v341_v24 = vld [vmem:[%s4516_s1 + $0x250] sm:$0xff] }
  0x68   : > { %578 = vmatprep.subr.mxu0 %v422_v36  ;;  %649 = vmatprep.subr.mxu1 %v424_v37  ;;  %v342_v22 = vld [vmem:[%s4516_s1 + $0x258] sm:$0xff]  ;;  %v343_v25 = vld [vmem:[%s4516_s1 + $0x260] sm:$0xff]  ;;  %v448_v27 = vld [vmem:[%s4516_s1 + $0x5a8] sm:$0xff] }
  0x69   : > { %579 = vmatpush2.msra.mxu0 %v421_v38  ;;  %650 = vmatpush2.msra.mxu1 %v423_v39  ;;  %v335_v26 = vld [vmem:[%s4516_s1 + $0x220] sm:$0xff]  ;;  %v334_v28 = vld [vmem:[%s4516_s1 + $0x218] sm:$0xff]  ;;  %v336_v29 = vld [vmem:[%s4516_s1 + $0x228] sm:$0xff] }
  0x6a   : > { %580 = vmatprep.subr.mxu0 %v415_v40  ;;  %651 = vmatprep.subr.mxu1 %v417_v41  ;;  %v328_v30 = vld [vmem:[%s4516_s1 + $0x1e8] sm:$0xff]  ;;  %v441_v31 = vld [vmem:[%s4516_s1 + $0x570] sm:$0xff]  ;;  %v327_v32 = vld [vmem:[%s4516_s1 + $0x1e0] sm:$0xff] }
  0x6b   : > { %581 = vmatpush2.msra.mxu0 %v414_v42  ;;  %652 = vmatpush2.msra.mxu1 %v416_v43  ;;  %v329_v33 = vld [vmem:[%s4516_s1 + $0x1f0] sm:$0xff]  ;;  %v434_v35 = vld [vmem:[%s4516_s1 + $0x538] sm:$0xff]  ;;  %v320_v36 = vld [vmem:[%s4516_s1 + $0x1a8] sm:$0xff] }
  0x6c   : > { %582 = vmatprep.subr.mxu0 %v408_v44  ;;  %653 = vmatprep.subr.mxu1 %v410_v45  ;;  %v321_v34 = vld [vmem:[%s4516_s1 + $0x1b0] sm:$0xff]  ;;  %v322_v37 = vld [vmem:[%s4516_s1 + $0x1b8] sm:$0xff]  ;;  %v427_v39 = vld [vmem:[%s4516_s1 + $0x500] sm:$0xff] }
  0x6d   : > { %583 = vmatpush2.msra.mxu0 %v407_v46  ;;  %654 = vmatpush2.msra.mxu1 %v409_v47  ;;  %v314_v38 = vld [vmem:[%s4516_s1 + $0x178] sm:$0xff]  ;;  %v313_v40 = vld [vmem:[%s4516_s1 + $0x170] sm:$0xff]  ;;  %v315_v41 = vld [vmem:[%s4516_s1 + $0x180] sm:$0xff] }
  0x6e   : > { %584 = vmatprep.subr.mxu0 %v401_v48  ;;  %655 = vmatprep.subr.mxu1 %v403_v49  ;;  %v307_v42 = vld [vmem:[%s4516_s1 + $0x140] sm:$0xff]  ;;  %v420_v43 = vld [vmem:[%s4516_s1 + $0x4c8] sm:$0xff]  ;;  %v306_v44 = vld [vmem:[%s4516_s1 + $0x138] sm:$0xff] }
  0x6f   : > { %585 = vmatpush2.msra.mxu0 %v400_v50  ;;  %656 = vmatpush2.msra.mxu1 %v402_v51  ;;  %v308_v45 = vld [vmem:[%s4516_s1 + $0x148] sm:$0xff]  ;;  %v413_v47 = vld [vmem:[%s4516_s1 + $0x490] sm:$0xff]  ;;  %v299_v48 = vld [vmem:[%s4516_s1 + $0x100] sm:$0xff] }
  0x70   : > { %586 = vmatprep.subr.mxu0 %v394_v52  ;;  %657 = vmatprep.subr.mxu1 %v396_v53  ;;  %v300_v46 = vld [vmem:[%s4516_s1 + $0x108] sm:$0xff]  ;;  %v301_v49 = vld [vmem:[%s4516_s1 + $0x110] sm:$0xff]  ;;  %v406_v51 = vld [vmem:[%s4516_s1 + $0x458] sm:$0xff] }
  0x71   : > { %587 = vmatpush2.msra.mxu0 %v393_v54  ;;  %658 = vmatpush2.msra.mxu1 %v395_v55  ;;  %v293_v50 = vld [vmem:[%s4516_s1 + $0xd0] sm:$0xff]  ;;  %v292_v52 = vld [vmem:[%s4516_s1 + $0xc8] sm:$0xff]  ;;  %v294_v53 = vld [vmem:[%s4516_s1 + $0xd8] sm:$0xff] }
  0x72   : > { %588 = vmatprep.subr.mxu0 %v387_v56  ;;  %659 = vmatprep.subr.mxu1 %v389_v57  ;;  %v286_v54 = vld [vmem:[%s4516_s1 + $0x98] sm:$0xff]  ;;  %v399_v55 = vld [vmem:[%s4516_s1 + $0x420] sm:$0xff]  ;;  %v285_v56 = vld [vmem:[%s4516_s1 + $0x90] sm:$0xff] }
  0x73   : > { %589 = vmatpush2.msra.mxu0 %v386_v58  ;;  %660 = vmatpush2.msra.mxu1 %v388_v59  ;;  %v287_v57 = vld [vmem:[%s4516_s1 + $0xa0] sm:$0xff]  ;;  %v392_v59 = vld [vmem:[%s4516_s1 + $0x3e8] sm:$0xff] }
  0x74   : > { %590 = vmatprep.subr.mxu0 %v380_v60  ;;  %661 = vmatprep.subr.mxu1 %v382_v61  ;;  %v279_v58 = vld [vmem:[%s4516_s1 + $0x60] sm:$0xff]  ;;  %v278_v60 = vld [vmem:[%s4516_s1 + $0x58] sm:$0xff]  ;;  %v280_v61 = vld [vmem:[%s4516_s1 + $0x68] sm:$0xff] }
  0x75   : > { %591 = vmatpush2.msra.mxu0 %v379_v62  ;;  %592 = vmatprep.mubr.f32.mxu0 %v4080_v63  ;;  %v272_v62 = vld [vmem:[%s4516_s1 + $0x28] sm:$0xff] }
  0x76   : > { %662 = vmatpush2.msra.mxu1 %v381_v0  ;;  %663 = vmatprep.mubr.f32.mxu1 %v4080_v63  ;;  %v385_v0 = vld [vmem:[%s4516_s1 + $0x3b0] sm:$0xff] }
  0x77   : > { %593 = vmatmul.mubr.f32.vlgmr.msra.gmra.mxu0 %v4085_v1  ;;  %664 = vmatmul.mubr.f32.vlgmr.msra.gmra.mxu1 %v4085_v1 }
  0x78   : > { %670 = vmatprep.subr.mxu0 %v377_v2  ;;  %3296 = vmatprep.subr.mxu1 %v490_v3  ;;  %v271_v2 = vld [vmem:[%s4516_s1 + $0x20] sm:$0xff]  ;;  %v273_v3 = vld [vmem:[%s4516_s1 + $0x30] sm:$0xff] }
  0x79   : > { %671 = vmatpush1.msra.mxu0 %v376_v4  ;;  %3297 = vmatpush3.msra.mxu1 %v378_v5  ;;  %v489_v4 = vld [vmem:[%s4516_s1 + $0x6f0] sm:$0xff]  ;;  %v488_v5 = vld [vmem:[%s4516_s1 + $0x6e8] sm:$0xff] }
  0x7a   : > { %672 = vmatprep.subr.mxu0 %v370_v6  ;;  %3298 = vmatprep.subr.mxu1 %v483_v7  ;;  %v482_v6 = vld [vmem:[%s4516_s1 + $0x6b8] sm:$0xff]  ;;  %v481_v7 = vld [vmem:[%s4516_s1 + $0x6b0] sm:$0xff] }
  0x7b   : > { %673 = vmatpush1.msra.mxu0 %v369_v8  ;;  %3299 = vmatpush3.msra.mxu1 %v371_v9  ;;  %v954_v8 = vld [vmem:[#allocation4 + $0x440] sm:$0xff]  ;;  %v475_v9 = vld [vmem:[%s4516_s1 + $0x680] sm:$0xff] }
  0x7c   : > { %674 = vmatprep.subr.mxu0 %v363_v10  ;;  %3300 = vmatprep.subr.mxu1 %v476_v11  ;;  %v953_v10 = vld [vmem:[#allocation4 + $0x438] sm:$0xff]  ;;  %v474_v11 = vld [vmem:[%s4516_s1 + $0x678] sm:$0xff] }
  0x7d   : > { %675 = vmatpush1.msra.mxu0 %v362_v12  ;;  %3301 = vmatpush3.msra.mxu1 %v364_v13  ;;  %v945_v12 = vld [vmem:[#allocation4 + $0x3f8] sm:$0xff]  ;;  %v468_v13 = vld [vmem:[%s4516_s1 + $0x648] sm:$0xff] }
  0x7e   : > { %676 = vmatprep.subr.mxu0 %v356_v14  ;;  %3302 = vmatprep.subr.mxu1 %v469_v15  ;;  %v944_v14 = vld [vmem:[#allocation4 + $0x3f0] sm:$0xff]  ;;  %v467_v15 = vld [vmem:[%s4516_s1 + $0x640] sm:$0xff] }
  0x7f   : > { %677 = vmatpush1.msra.mxu0 %v355_v16  ;;  %3303 = vmatpush3.msra.mxu1 %v357_v17  ;;  %v936_v16 = vld [vmem:[#allocation4 + $0x3b0] sm:$0xff]  ;;  %v935_v17 = vld [vmem:[#allocation4 + $0x3a8] sm:$0xff] }
  0x80   : > { %678 = vmatprep.subr.mxu0 %v349_v18  ;;  %3304 = vmatprep.subr.mxu1 %v462_v19  ;;  %v460_v18 = vld [vmem:[%s4516_s1 + $0x608] sm:$0xff]  ;;  %v927_v19 = vld [vmem:[#allocation4 + $0x368] sm:$0xff] }
  0x81   : > { %679 = vmatpush1.msra.mxu0 %v348_v20  ;;  %3305 = vmatpush3.msra.mxu1 %v350_v21  ;;  %v454_v20 = vld [vmem:[%s4516_s1 + $0x5d8] sm:$0xff]  ;;  %v926_v21 = vld [vmem:[#allocation4 + $0x360] sm:$0xff] }
  0x82   : > { %680 = vmatprep.subr.mxu0 %v342_v22  ;;  %3306 = vmatprep.subr.mxu1 %v455_v23  ;;  %v453_v22 = vld [vmem:[%s4516_s1 + $0x5d0] sm:$0xff]  ;;  %v918_v23 = vld [vmem:[#allocation4 + $0x320] sm:$0xff] }
  0x83   : > { %681 = vmatpush1.msra.mxu0 %v341_v24  ;;  %3307 = vmatpush3.msra.mxu1 %v343_v25  ;;  %v447_v24 = vld [vmem:[%s4516_s1 + $0x5a0] sm:$0xff] }
  0x84   : > { %682 = vmatprep.subr.mxu0 %v335_v26  ;;  %3308 = vmatprep.subr.mxu1 %v448_v27  ;;  %v917_v25 = vld [vmem:[#allocation4 + $0x318] sm:$0xff]  ;;  %v446_v26 = vld [vmem:[%s4516_s1 + $0x598] sm:$0xff] }
  0x85   : > { %683 = vmatpush1.msra.mxu0 %v334_v28  ;;  %3309 = vmatpush3.msra.mxu1 %v336_v29  ;;  %v909_v27 = vld [vmem:[#allocation4 + $0x2d8] sm:$0xff]  ;;  %v440_v28 = vld [vmem:[%s4516_s1 + $0x568] sm:$0xff]  ;;  %v908_v29 = vld [vmem:[#allocation4 + $0x2d0] sm:$0xff] }
  0x86   : > { %684 = vmatprep.subr.mxu0 %v328_v30  ;;  %3310 = vmatprep.subr.mxu1 %v441_v31  ;;  %v439_v30 = vld [vmem:[%s4516_s1 + $0x560] sm:$0xff]  ;;  %v900_v31 = vld [vmem:[#allocation4 + $0x290] sm:$0xff] }
  0x87   : > { %685 = vmatpush1.msra.mxu0 %v327_v32  ;;  %3311 = vmatpush3.msra.mxu1 %v329_v33  ;;  %v433_v32 = vld [vmem:[%s4516_s1 + $0x530] sm:$0xff] }
  0x88   : > { %686 = vmatprep.subr.mxu0 %v321_v34  ;;  %3312 = vmatprep.subr.mxu1 %v434_v35  ;;  %v899_v33 = vld [vmem:[#allocation4 + $0x288] sm:$0xff]  ;;  %v432_v34 = vld [vmem:[%s4516_s1 + $0x528] sm:$0xff] }
  0x89   : > { %687 = vmatpush1.msra.mxu0 %v320_v36  ;;  %3313 = vmatpush3.msra.mxu1 %v322_v37  ;;  %v891_v35 = vld [vmem:[#allocation4 + $0x248] sm:$0xff]  ;;  %v426_v36 = vld [vmem:[%s4516_s1 + $0x4f8] sm:$0xff]  ;;  %v890_v37 = vld [vmem:[#allocation4 + $0x240] sm:$0xff] }
  0x8a   : > { %688 = vmatprep.subr.mxu0 %v314_v38  ;;  %3314 = vmatprep.subr.mxu1 %v427_v39  ;;  %v425_v38 = vld [vmem:[%s4516_s1 + $0x4f0] sm:$0xff]  ;;  %v882_v39 = vld [vmem:[#allocation4 + $0x200] sm:$0xff] }
  0x8b   : > { %689 = vmatpush1.msra.mxu0 %v313_v40  ;;  %3315 = vmatpush3.msra.mxu1 %v315_v41  ;;  %v419_v40 = vld [vmem:[%s4516_s1 + $0x4c0] sm:$0xff] }
  0x8c   : > { %690 = vmatprep.subr.mxu0 %v307_v42  ;;  %3316 = vmatprep.subr.mxu1 %v420_v43  ;;  %v881_v41 = vld [vmem:[#allocation4 + $0x1f8] sm:$0xff]  ;;  %v418_v42 = vld [vmem:[%s4516_s1 + $0x4b8] sm:$0xff] }
  0x8d   : > { %691 = vmatpush1.msra.mxu0 %v306_v44  ;;  %3317 = vmatpush3.msra.mxu1 %v308_v45  ;;  %v873_v43 = vld [vmem:[#allocation4 + $0x1b8] sm:$0xff]  ;;  %v412_v44 = vld [vmem:[%s4516_s1 + $0x488] sm:$0xff]  ;;  %v872_v45 = vld [vmem:[#allocation4 + $0x1b0] sm:$0xff] }
  0x8e   : > { %692 = vmatprep.subr.mxu0 %v300_v46  ;;  %3318 = vmatprep.subr.mxu1 %v413_v47  ;;  %v411_v46 = vld [vmem:[%s4516_s1 + $0x480] sm:$0xff]  ;;  %v864_v47 = vld [vmem:[#allocation4 + $0x170] sm:$0xff] }
  0x8f   : > { %693 = vmatpush1.msra.mxu0 %v299_v48  ;;  %3319 = vmatpush3.msra.mxu1 %v301_v49  ;;  %v405_v48 = vld [vmem:[%s4516_s1 + $0x450] sm:$0xff] }
  0x90   : > { %694 = vmatprep.subr.mxu0 %v293_v50  ;;  %3320 = vmatprep.subr.mxu1 %v406_v51  ;;  %v863_v49 = vld [vmem:[#allocation4 + $0x168] sm:$0xff]  ;;  %v404_v50 = vld [vmem:[%s4516_s1 + $0x448] sm:$0xff] }
  0x91   : > { %695 = vmatpush1.msra.mxu0 %v292_v52  ;;  %3321 = vmatpush3.msra.mxu1 %v294_v53  ;;  %v855_v51 = vld [vmem:[#allocation4 + $0x128] sm:$0xff]  ;;  %v398_v52 = vld [vmem:[%s4516_s1 + $0x418] sm:$0xff]  ;;  %v854_v53 = vld [vmem:[#allocation4 + $0x120] sm:$0xff] }
  0x92   : > { %696 = vmatprep.subr.mxu0 %v286_v54  ;;  %3322 = vmatprep.subr.mxu1 %v399_v55  ;;  %v397_v54 = vld [vmem:[%s4516_s1 + $0x410] sm:$0xff]  ;;  %v846_v55 = vld [vmem:[#allocation4 + $0xe0] sm:$0xff] }
  0x93   : > { %697 = vmatpush1.msra.mxu0 %v285_v56  ;;  %3323 = vmatpush3.msra.mxu1 %v287_v57  ;;  %v391_v56 = vld [vmem:[%s4516_s1 + $0x3e0] sm:$0xff] }
  0x94   : > { %698 = vmatprep.subr.mxu0 %v279_v58  ;;  %3324 = vmatprep.subr.mxu1 %v392_v59  ;;  %v845_v57 = vld [vmem:[#allocation4 + $0xd8] sm:$0xff]  ;;  %v390_v58 = vld [vmem:[%s4516_s1 + $0x3d8] sm:$0xff] }
  0x95   : > { %699 = vmatpush1.msra.mxu0 %v278_v60  ;;  %3325 = vmatpush3.msra.mxu1 %v280_v61  ;;  %v837_v59 = vld [vmem:[#allocation4 + $0x98] sm:$0xff]  ;;  %v384_v60 = vld [vmem:[%s4516_s1 + $0x3a8] sm:$0xff]  ;;  %v836_v61 = vld [vmem:[#allocation4 + $0x90] sm:$0xff] }
  0x96   : > { %700 = vmatprep.subr.mxu0 %v272_v62  ;;  %3326 = vmatprep.subr.mxu1 %v385_v0  ;;  %v383_v62 = vld [vmem:[%s4516_s1 + $0x3a0] sm:$0xff]  ;;  %v828_v0 = vld [vmem:[#allocation4 + $0x50] sm:$0xff] }
  0x97   : > { %701 = vmatpush1.msra.mxu0 %v271_v2  ;;  %3327 = vmatpush3.msra.mxu1 %v273_v3  ;;  %v1242_v2 = vld [vmem:[#allocation4 + $0xd40] sm:$0xff]  ;;  %v1241_v3 = vld [vmem:[#allocation4 + $0xd38] sm:$0xff] }
  0x98   : > { %805 = vmatprep.mubr.f32.mxu1 %v4080_v63  ;;  %702 = vmatprep.subr.mxu0 %v489_v4  ;;  %v827_v4 = vld [vmem:[#allocation4 + $0x48] sm:$0xff] }
  0x99   : > { %806 = vmatmul.mubr.f32.vlgmr.msra.gmra.mxu1 %v4085_v1  ;;  %703 = vmatpush2.msra.mxu0 %v488_v5  ;;  %v1233_v5 = vld [vmem:[#allocation4 + $0xcf8] sm:$0xff] }
  0x9a   : > { %704 = vmatprep.subr.mxu0 %v482_v6  ;;  %734 = vmatprep.mubr.f32.mxu0 %v4080_v63  ;;  %v461_v63 = vld [vmem:[%s4516_s1 + $0x610] sm:$0xff] }
  0x9b   : > { %705 = vmatpush2.msra.mxu0 %v481_v7  ;;  %1753 = vmatprep.subr.mxu1 %v954_v8  ;;  %v819_v6 = vld [vmem:[#allocation4 + $0x8] sm:$0xff]  ;;  %v1232_v7 = vld [vmem:[#allocation4 + $0xcf0] sm:$0xff]  ;;  %v818_v8 = vld [vmem:[#allocation4] sm:$0xff] }
  0x9c   : > { %706 = vmatprep.subr.mxu0 %v475_v9  ;;  %1754 = vmatpush1.msra.mxu1 %v953_v10  ;;  %v1224_v9 = vld [vmem:[#allocation4 + $0xcb0] sm:$0xff]  ;;  %v1098_v10 = vld [vmem:[#allocation4 + $0x8c0] sm:$0xff] }
  0x9d   : > { %707 = vmatpush2.msra.mxu0 %v474_v11  ;;  %1755 = vmatprep.subr.mxu1 %v945_v12  ;;  %v1223_v11 = vld [vmem:[#allocation4 + $0xca8] sm:$0xff]  ;;  %v1097_v12 = vld [vmem:[#allocation4 + $0x8b8] sm:$0xff] }
  0x9e   : > { %708 = vmatprep.subr.mxu0 %v468_v13  ;;  %1756 = vmatpush1.msra.mxu1 %v944_v14  ;;  %v1215_v13 = vld [vmem:[#allocation4 + $0xc68] sm:$0xff]  ;;  %v1089_v14 = vld [vmem:[#allocation4 + $0x878] sm:$0xff] }
  0x9f   : > { %709 = vmatpush2.msra.mxu0 %v467_v15  ;;  %1757 = vmatprep.subr.mxu1 %v936_v16  ;;  %v1214_v15 = vld [vmem:[#allocation4 + $0xc60] sm:$0xff]  ;;  %v1088_v16 = vld [vmem:[#allocation4 + $0x870] sm:$0xff] }
  0xa0   : > { %710 = vmatprep.subr.mxu0 %v461_v63  ;;  %1758 = vmatpush1.msra.mxu1 %v935_v17  ;;  %v1080_v63 = vld [vmem:[#allocation4 + $0x830] sm:$0xff]  ;;  %v1205_v17 = vld [vmem:[#allocation4 + $0xc18] sm:$0xff] }
  0xa1   : > { %711 = vmatpush2.msra.mxu0 %v460_v18  ;;  %1759 = vmatprep.subr.mxu1 %v927_v19  ;;  %v1079_v18 = vld [vmem:[#allocation4 + $0x828] sm:$0xff]  ;;  %v1197_v19 = vld [vmem:[#allocation4 + $0xbd8] sm:$0xff] }
  0xa2   : > { %712 = vmatprep.subr.mxu0 %v454_v20  ;;  %1760 = vmatpush1.msra.mxu1 %v926_v21  ;;  %v1071_v20 = vld [vmem:[#allocation4 + $0x7e8] sm:$0xff]  ;;  %v1196_v21 = vld [vmem:[#allocation4 + $0xbd0] sm:$0xff] }
  0xa3   : > { %713 = vmatpush2.msra.mxu0 %v453_v22  ;;  %1761 = vmatprep.subr.mxu1 %v918_v23  ;;  %v1070_v22 = vld [vmem:[#allocation4 + $0x7e0] sm:$0xff]  ;;  %v1188_v23 = vld [vmem:[#allocation4 + $0xb90] sm:$0xff] }
  0xa4   : > { %714 = vmatprep.subr.mxu0 %v447_v24  ;;  %1762 = vmatpush1.msra.mxu1 %v917_v25  ;;  %v1062_v24 = vld [vmem:[#allocation4 + $0x7a0] sm:$0xff]  ;;  %v1187_v25 = vld [vmem:[#allocation4 + $0xb88] sm:$0xff] }
  0xa5   : > { %715 = vmatpush2.msra.mxu0 %v446_v26  ;;  %1763 = vmatprep.subr.mxu1 %v909_v27  ;;  %v1061_v26 = vld [vmem:[#allocation4 + $0x798] sm:$0xff]  ;;  %v1179_v27 = vld [vmem:[#allocation4 + $0xb48] sm:$0xff] }
  0xa6   : > { %716 = vmatprep.subr.mxu0 %v440_v28  ;;  %1764 = vmatpush1.msra.mxu1 %v908_v29  ;;  %v1053_v28 = vld [vmem:[#allocation4 + $0x758] sm:$0xff]  ;;  %v1178_v29 = vld [vmem:[#allocation4 + $0xb40] sm:$0xff] }
  0xa7   : > { %717 = vmatpush2.msra.mxu0 %v439_v30  ;;  %1765 = vmatprep.subr.mxu1 %v900_v31  ;;  %v1052_v30 = vld [vmem:[#allocation4 + $0x750] sm:$0xff]  ;;  %v1170_v31 = vld [vmem:[#allocation4 + $0xb00] sm:$0xff] }
  0xa8   : > { %718 = vmatprep.subr.mxu0 %v433_v32  ;;  %1766 = vmatpush1.msra.mxu1 %v899_v33  ;;  %v1044_v32 = vld [vmem:[#allocation4 + $0x710] sm:$0xff]  ;;  %v1169_v33 = vld [vmem:[#allocation4 + $0xaf8] sm:$0xff] }
  0xa9   : > { %719 = vmatpush2.msra.mxu0 %v432_v34  ;;  %1767 = vmatprep.subr.mxu1 %v891_v35  ;;  %v1043_v34 = vld [vmem:[#allocation4 + $0x708] sm:$0xff]  ;;  %v1161_v35 = vld [vmem:[#allocation4 + $0xab8] sm:$0xff] }
  0xaa   : > { %720 = vmatprep.subr.mxu0 %v426_v36  ;;  %1768 = vmatpush1.msra.mxu1 %v890_v37  ;;  %v1035_v36 = vld [vmem:[#allocation4 + $0x6c8] sm:$0xff]  ;;  %v1160_v37 = vld [vmem:[#allocation4 + $0xab0] sm:$0xff] }
  0xab   : > { %721 = vmatpush2.msra.mxu0 %v425_v38  ;;  %1769 = vmatprep.subr.mxu1 %v882_v39  ;;  %v1034_v38 = vld [vmem:[#allocation4 + $0x6c0] sm:$0xff]  ;;  %v1152_v39 = vld [vmem:[#allocation4 + $0xa70] sm:$0xff] }
  0xac   : > { %722 = vmatprep.subr.mxu0 %v419_v40  ;;  %1770 = vmatpush1.msra.mxu1 %v881_v41  ;;  %v1026_v40 = vld [vmem:[#allocation4 + $0x680] sm:$0xff]  ;;  %v1151_v41 = vld [vmem:[#allocation4 + $0xa68] sm:$0xff] }
  0xad   : > { %723 = vmatpush2.msra.mxu0 %v418_v42  ;;  %1771 = vmatprep.subr.mxu1 %v873_v43  ;;  %v1025_v42 = vld [vmem:[#allocation4 + $0x678] sm:$0xff]  ;;  %v1143_v43 = vld [vmem:[#allocation4 + $0xa28] sm:$0xff] }
  0xae   : > { %724 = vmatprep.subr.mxu0 %v412_v44  ;;  %1772 = vmatpush1.msra.mxu1 %v872_v45  ;;  %v1017_v44 = vld [vmem:[#allocation4 + $0x638] sm:$0xff]  ;;  %v1142_v45 = vld [vmem:[#allocation4 + $0xa20] sm:$0xff] }
  0xaf   : > { %725 = vmatpush2.msra.mxu0 %v411_v46  ;;  %1773 = vmatprep.subr.mxu1 %v864_v47  ;;  %v1016_v46 = vld [vmem:[#allocation4 + $0x630] sm:$0xff]  ;;  %v1134_v47 = vld [vmem:[#allocation4 + $0x9e0] sm:$0xff] }
  0xb0   : > { %726 = vmatprep.subr.mxu0 %v405_v48  ;;  %1774 = vmatpush1.msra.mxu1 %v863_v49  ;;  %v1008_v48 = vld [vmem:[#allocation4 + $0x5f0] sm:$0xff]  ;;  %v1133_v49 = vld [vmem:[#allocation4 + $0x9d8] sm:$0xff] }
  0xb1   : > { %727 = vmatpush2.msra.mxu0 %v404_v50  ;;  %1775 = vmatprep.subr.mxu1 %v855_v51  ;;  %v1007_v50 = vld [vmem:[#allocation4 + $0x5e8] sm:$0xff]  ;;  %v1125_v51 = vld [vmem:[#allocation4 + $0x998] sm:$0xff] }
  0xb2   : > { %728 = vmatprep.subr.mxu0 %v398_v52  ;;  %1776 = vmatpush1.msra.mxu1 %v854_v53  ;;  %v999_v52 = vld [vmem:[#allocation4 + $0x5a8] sm:$0xff]  ;;  %v1124_v53 = vld [vmem:[#allocation4 + $0x990] sm:$0xff] }
  0xb3   : > { %729 = vmatpush2.msra.mxu0 %v397_v54  ;;  %1777 = vmatprep.subr.mxu1 %v846_v55  ;;  %v998_v54 = vld [vmem:[#allocation4 + $0x5a0] sm:$0xff]  ;;  %v1116_v55 = vld [vmem:[#allocation4 + $0x950] sm:$0xff] }
  0xb4   : > { %730 = vmatprep.subr.mxu0 %v391_v56  ;;  %1778 = vmatpush1.msra.mxu1 %v845_v57  ;;  %v990_v56 = vld [vmem:[#allocation4 + $0x560] sm:$0xff]  ;;  %v1115_v57 = vld [vmem:[#allocation4 + $0x948] sm:$0xff] }
  0xb5   : > { %731 = vmatpush2.msra.mxu0 %v390_v58  ;;  %1779 = vmatprep.subr.mxu1 %v837_v59  ;;  %v989_v58 = vld [vmem:[#allocation4 + $0x558] sm:$0xff]  ;;  %v1107_v59 = vld [vmem:[#allocation4 + $0x908] sm:$0xff] }
  0xb6   : > { %732 = vmatprep.subr.mxu0 %v384_v60  ;;  %1780 = vmatpush1.msra.mxu1 %v836_v61  ;;  %v981_v60 = vld [vmem:[#allocation4 + $0x518] sm:$0xff]  ;;  %v1106_v61 = vld [vmem:[#allocation4 + $0x900] sm:$0xff] }
  0xb7   : > { %733 = vmatpush2.msra.mxu0 %v383_v62  ;;  %1781 = vmatprep.subr.mxu1 %v828_v0  ;;  %v980_v62 = vld [vmem:[#allocation4 + $0x510] sm:$0xff]  ;;  %v1386_v0 = vld [vmem:[#allocation4 + $0x11c0] sm:$0xff] }
  0xb8   : > { %735 = vmatmul.mubr.f32.vlgmr.msra.gmra.mxu0 %v4085_v1  ;;  %1824 = vmatprep.subr.mxu0 %v1242_v2  ;;  %v1206_v1 = vld [vmem:[#allocation4 + $0xc20] sm:$0xff]  ;;  %v972_v2 = vld [vmem:[#allocation4 + $0x4d0] sm:$0xff] }
  0xb9   : > { %1825 = vmatpush1.msra.mxu0 %v1241_v3  ;;  %1782 = vmatpush1.msra.mxu1 %v827_v4  ;;  %v1385_v3 = vld [vmem:[#allocation4 + $0x11b8] sm:$0xff]  ;;  %v971_v4 = vld [vmem:[#allocation4 + $0x4c8] sm:$0xff] }
  0xba   : > { %1826 = vmatprep.subr.mxu0 %v1233_v5  ;;  %1783 = vmatprep.subr.mxu1 %v819_v6  ;;  %v1377_v5 = vld [vmem:[#allocation4 + $0x1178] sm:$0xff]  ;;  %v963_v6 = vld [vmem:[#allocation4 + $0x488] sm:$0xff] }
  0xbb   : > { %1827 = vmatpush1.msra.mxu0 %v1232_v7  ;;  %1784 = vmatpush1.msra.mxu1 %v818_v8  ;;  %v1376_v7 = vld [vmem:[#allocation4 + $0x1170] sm:$0xff]  ;;  %v962_v8 = vld [vmem:[#allocation4 + $0x480] sm:$0xff] }
  0xbc   : > { %1828 = vmatprep.subr.mxu0 %v1224_v9  ;;  %1785 = vmatprep.subr.mxu1 %v1098_v10  ;;  %v1368_v9 = vld [vmem:[#allocation4 + $0x1130] sm:$0xff]  ;;  %v1530_v10 = vld [vmem:[#allocation4 + $0x1640] sm:$0xff] }
  0xbd   : > { %1829 = vmatpush1.msra.mxu0 %v1223_v11  ;;  %1786 = vmatpush2.msra.mxu1 %v1097_v12  ;;  %v1367_v11 = vld [vmem:[#allocation4 + $0x1128] sm:$0xff] }
  0xbe   : > { %1830 = vmatprep.subr.mxu0 %v1215_v13  ;;  %1787 = vmatprep.subr.mxu1 %v1089_v14  ;;  %v1359_v12 = vld [vmem:[#allocation4 + $0x10e8] sm:$0xff]  ;;  %v1358_v13 = vld [vmem:[#allocation4 + $0x10e0] sm:$0xff] }
  0xbf   : > { %1831 = vmatpush1.msra.mxu0 %v1214_v15  ;;  %1788 = vmatpush2.msra.mxu1 %v1088_v16  ;;  %v1350_v14 = vld [vmem:[#allocation4 + $0x10a0] sm:$0xff]  ;;  %v1349_v15 = vld [vmem:[#allocation4 + $0x1098] sm:$0xff] }
  0xc0   : > { %1832 = vmatprep.subr.mxu0 %v1206_v1  ;;  %1789 = vmatprep.subr.mxu1 %v1080_v63  ;;  %v1341_v16 = vld [vmem:[#allocation4 + $0x1058] sm:$0xff]  ;;  %v1340_v1 = vld [vmem:[#allocation4 + $0x1050] sm:$0xff] }
  0xc1   : > { %1833 = vmatpush1.msra.mxu0 %v1205_v17  ;;  %1790 = vmatpush2.msra.mxu1 %v1079_v18  ;;  %v1332_v63 = vld [vmem:[#allocation4 + $0x1010] sm:$0xff]  ;;  %v1331_v17 = vld [vmem:[#allocation4 + $0x1008] sm:$0xff] }
  0xc2   : > { %1834 = vmatprep.subr.mxu0 %v1197_v19  ;;  %1791 = vmatprep.subr.mxu1 %v1071_v20  ;;  %v1323_v18 = vld [vmem:[#allocation4 + $0xfc8] sm:$0xff]  ;;  %v1322_v19 = vld [vmem:[#allocation4 + $0xfc0] sm:$0xff] }
  0xc3   : > { %1835 = vmatpush1.msra.mxu0 %v1196_v21  ;;  %1792 = vmatpush2.msra.mxu1 %v1070_v22  ;;  %v1314_v20 = vld [vmem:[#allocation4 + $0xf80] sm:$0xff]  ;;  %v1313_v21 = vld [vmem:[#allocation4 + $0xf78] sm:$0xff] }
  0xc4   : > { %1836 = vmatprep.subr.mxu0 %v1188_v23  ;;  %1793 = vmatprep.subr.mxu1 %v1062_v24  ;;  %v1305_v22 = vld [vmem:[#allocation4 + $0xf38] sm:$0xff]  ;;  %v1304_v23 = vld [vmem:[#allocation4 + $0xf30] sm:$0xff] }
  0xc5   : > { %1837 = vmatpush1.msra.mxu0 %v1187_v25  ;;  %1794 = vmatpush2.msra.mxu1 %v1061_v26  ;;  %v1296_v24 = vld [vmem:[#allocation4 + $0xef0] sm:$0xff]  ;;  %v1295_v25 = vld [vmem:[#allocation4 + $0xee8] sm:$0xff] }
  0xc6   : > { %1838 = vmatprep.subr.mxu0 %v1179_v27  ;;  %1795 = vmatprep.subr.mxu1 %v1053_v28  ;;  %v1287_v26 = vld [vmem:[#allocation4 + $0xea8] sm:$0xff]  ;;  %v1286_v27 = vld [vmem:[#allocation4 + $0xea0] sm:$0xff] }
  0xc7   : > { %1839 = vmatpush1.msra.mxu0 %v1178_v29  ;;  %1796 = vmatpush2.msra.mxu1 %v1052_v30  ;;  %v1278_v28 = vld [vmem:[#allocation4 + $0xe60] sm:$0xff]  ;;  %v1277_v29 = vld [vmem:[#allocation4 + $0xe58] sm:$0xff] }
  0xc8   : > { %1840 = vmatprep.subr.mxu0 %v1170_v31  ;;  %1797 = vmatprep.subr.mxu1 %v1044_v32  ;;  %v1269_v30 = vld [vmem:[#allocation4 + $0xe18] sm:$0xff]  ;;  %v1268_v31 = vld [vmem:[#allocation4 + $0xe10] sm:$0xff] }
  0xc9   : > { %1841 = vmatpush1.msra.mxu0 %v1169_v33  ;;  %1798 = vmatpush2.msra.mxu1 %v1043_v34  ;;  %v1260_v32 = vld [vmem:[#allocation4 + $0xdd0] sm:$0xff]  ;;  %v1259_v33 = vld [vmem:[#allocation4 + $0xdc8] sm:$0xff] }
  0xca   : > { %1842 = vmatprep.subr.mxu0 %v1161_v35  ;;  %1799 = vmatprep.subr.mxu1 %v1035_v36  ;;  %v1251_v34 = vld [vmem:[#allocation4 + $0xd88] sm:$0xff]  ;;  %v1250_v35 = vld [vmem:[#allocation4 + $0xd80] sm:$0xff]  ;;  %v1692_v36 = vld [vmem:[#allocation4 + $0x1b50] sm:$0xff] }
  0xcb   : > { %1843 = vmatpush1.msra.mxu0 %v1160_v37  ;;  %1800 = vmatpush2.msra.mxu1 %v1034_v38  ;;  %v493_v37 = vlaneseq }
  0xcc   : > { %1844 = vmatprep.subr.mxu0 %v1152_v39  ;;  %1801 = vmatprep.subr.mxu1 %v1026_v40 }
  0xcd   : > { %1845 = vmatpush1.msra.mxu0 %v1151_v41  ;;  %1802 = vmatpush2.msra.mxu1 %v1025_v42  ;;  %v4383_v38 = vshrl.u32 %v493_v37, 7  ;;  %v4387_v41 = vld [vmem:[#allocation2] sm:$0x7f]  ;;  %v1674_v37 = vld [vmem:[#allocation4 + $0x1ac0] sm:$0xff] }
  0xce   : > { %1846 = vmatprep.subr.mxu0 %v1143_v43  ;;  %1803 = vmatprep.subr.mxu1 %v1017_v44 }
  0xcf   : > { %1847 = vmatpush1.msra.mxu0 %v1142_v45  ;;  %1804 = vmatpush2.msra.mxu1 %v1016_v46  ;;  %v503_v39 = vsub.s32 2, %v4383_v38  ;;  %v495_v40 = vsub.s32 0, %v4383_v38  ;;  %v499_v42 = vsub.s32 1, %v4383_v38  ;;  %v507_v43 = vsub.s32 3, %v4383_v38 }
  0xd0   : > { %1848 = vmatprep.subr.mxu0 %v1134_v47  ;;  %1805 = vmatprep.subr.mxu1 %v1008_v48 }
  0xd1   : > { %1849 = vmatpush1.msra.mxu0 %v1133_v49  ;;  %1806 = vmatpush2.msra.mxu1 %v1007_v50  ;;  %v504_v44 = vrot.slane %v4387_v41, %v503_v39  ;;  %v496_v45 = vrot.slane %v4387_v41, %v495_v40  ;;  %v500_v46 = vrot.slane %v4387_v41, %v499_v42 }
  0xd2   : > { %1850 = vmatprep.subr.mxu0 %v1125_v51  ;;  %1807 = vmatprep.subr.mxu1 %v999_v52  ;;  %v508_v47 = vrot.slane %v4387_v41, %v507_v43 }
  0xd3   : > { %1851 = vmatpush1.msra.mxu0 %v1124_v53  ;;  %1808 = vmatpush2.msra.mxu1 %v998_v54 }
  0xd4   : > { %1852 = vmatprep.subr.mxu0 %v1116_v55  ;;  %1809 = vmatprep.subr.mxu1 %v990_v56 }
  0xd5   : > { %1853 = vmatpush1.msra.mxu0 %v1115_v57  ;;  %1810 = vmatpush2.msra.mxu1 %v989_v58 }
  0xd6   : > { %1854 = vmatprep.subr.mxu0 %v1107_v59  ;;  %1811 = vmatprep.subr.mxu1 %v981_v60  ;;  %v1529_v60 = vld [vmem:[#allocation4 + $0x1638] sm:$0xff] }
  0xd7   : > { %1855 = vmatpush1.msra.mxu0 %v1106_v61  ;;  %1812 = vmatpush2.msra.mxu1 %v980_v62  ;;  %v1691_v61 = vld [vmem:[#allocation4 + $0x1b48] sm:$0xff]  ;;  %v1521_v62 = vld [vmem:[#allocation4 + $0x15f8] sm:$0xff] }
  0xd8   : > { %1856 = vmatprep.subr.mxu0 %v1386_v0  ;;  %1813 = vmatprep.subr.mxu1 %v972_v2  ;;  %v1683_v0 = vld [vmem:[#allocation4 + $0x1b08] sm:$0xff]  ;;  %v1520_v2 = vld [vmem:[#allocation4 + $0x15f0] sm:$0xff] }
  0xd9   : > { %1857 = vmatpush2.msra.mxu0 %v1385_v3  ;;  %1814 = vmatpush2.msra.mxu1 %v971_v4  ;;  %v1682_v3 = vld [vmem:[#allocation4 + $0x1b00] sm:$0xff]  ;;  %v1512_v4 = vld [vmem:[#allocation4 + $0x15b0] sm:$0xff] }
  0xda   : > { %1858 = vmatprep.subr.mxu0 %v1377_v5  ;;  %1815 = vmatprep.subr.mxu1 %v963_v6  ;;  %v1511_v5 = vld [vmem:[#allocation4 + $0x15a8] sm:$0xff]  ;;  %v956_v6 = vld [vmem:[#allocation4 + $0x450] sm:$0xff] }
  0xdb   : > { %1859 = vmatpush2.msra.mxu0 %v1376_v7  ;;  %1816 = vmatpush2.msra.mxu1 %v962_v8  ;;  %v1503_v7 = vld [vmem:[#allocation4 + $0x1568] sm:$0xff]  ;;  %v1502_v8 = vld [vmem:[#allocation4 + $0x1560] sm:$0xff] }
  0xdc   : > { %1860 = vmatprep.subr.mxu0 %v1368_v9  ;;  %1895 = vmatprep.subr.mxu1 %v1530_v10  ;;  %v3590_v9 = vmov 0.0   ;;  %v1494_v10 = vld [vmem:[#allocation4 + $0x1520] sm:$0xff] }
  0xdd   : > { %1861 = vmatpush2.msra.mxu0 %v1367_v11  ;;  %v1493_v11 = vld [vmem:[#allocation4 + $0x1518] sm:$0xff] }
  0xde   : > { %1862 = vmatprep.subr.mxu0 %v1359_v12  ;;  %v1485_v12 = vld [vmem:[#allocation4 + $0x14d8] sm:$0xff] }
  0xdf   : > { %1863 = vmatpush2.msra.mxu0 %v1358_v13  ;;  %v1484_v13 = vld [vmem:[#allocation4 + $0x14d0] sm:$0xff] }
  0xe0   : > { %1864 = vmatprep.subr.mxu0 %v1350_v14  ;;  %v1476_v14 = vld [vmem:[#allocation4 + $0x1490] sm:$0xff] }
  0xe1   : > { %1865 = vmatpush2.msra.mxu0 %v1349_v15  ;;  %v1475_v15 = vld [vmem:[#allocation4 + $0x1488] sm:$0xff] }
  0xe2   : > { %1866 = vmatprep.subr.mxu0 %v1341_v16  ;;  %v1467_v16 = vld [vmem:[#allocation4 + $0x1448] sm:$0xff] }
  0xe3   : > { %1867 = vmatpush2.msra.mxu0 %v1340_v1  ;;  %v1466_v1 = vld [vmem:[#allocation4 + $0x1440] sm:$0xff] }
  0xe4   : > { %1868 = vmatprep.subr.mxu0 %v1332_v63  ;;  %v1458_v63 = vld [vmem:[#allocation4 + $0x1400] sm:$0xff] }
  0xe5   : > { %1869 = vmatpush2.msra.mxu0 %v1331_v17  ;;  %v1457_v17 = vld [vmem:[#allocation4 + $0x13f8] sm:$0xff] }
  0xe6   : > { %1870 = vmatprep.subr.mxu0 %v1323_v18  ;;  %v1449_v18 = vld [vmem:[#allocation4 + $0x13b8] sm:$0xff] }
  0xe7   : > { %1871 = vmatpush2.msra.mxu0 %v1322_v19  ;;  %v1448_v19 = vld [vmem:[#allocation4 + $0x13b0] sm:$0xff] }
  0xe8   : > { %1872 = vmatprep.subr.mxu0 %v1314_v20  ;;  %v1440_v20 = vld [vmem:[#allocation4 + $0x1370] sm:$0xff] }
  0xe9   : > { %1873 = vmatpush2.msra.mxu0 %v1313_v21  ;;  %v1439_v21 = vld [vmem:[#allocation4 + $0x1368] sm:$0xff] }
  0xea   : > { %1874 = vmatprep.subr.mxu0 %v1305_v22  ;;  %v1431_v22 = vld [vmem:[#allocation4 + $0x1328] sm:$0xff] }
  0xeb   : > { %1875 = vmatpush2.msra.mxu0 %v1304_v23  ;;  %v1430_v23 = vld [vmem:[#allocation4 + $0x1320] sm:$0xff] }
  0xec   : > { %1876 = vmatprep.subr.mxu0 %v1296_v24  ;;  %v1422_v24 = vld [vmem:[#allocation4 + $0x12e0] sm:$0xff] }
  0xed   : > { %1877 = vmatpush2.msra.mxu0 %v1295_v25  ;;  %v1421_v25 = vld [vmem:[#allocation4 + $0x12d8] sm:$0xff] }
  0xee   : > { %1878 = vmatprep.subr.mxu0 %v1287_v26  ;;  %v1413_v26 = vld [vmem:[#allocation4 + $0x1298] sm:$0xff] }
  0xef   : > { %1879 = vmatpush2.msra.mxu0 %v1286_v27  ;;  %v519_v27 = vsub.s32 6, %v4383_v38 }
  0xf0   : > { %1880 = vmatprep.subr.mxu0 %v1278_v28  ;;  %v1412_v28 = vld [vmem:[#allocation4 + $0x1290] sm:$0xff] }
  0xf1   : > { %1881 = vmatpush2.msra.mxu0 %v1277_v29  ;;  %v1404_v29 = vld [vmem:[#allocation4 + $0x1250] sm:$0xff] }
  0xf2   : > { %1882 = vmatprep.subr.mxu0 %v1269_v30 }
  0xf3   : > { %1883 = vmatpush2.msra.mxu0 %v1268_v31  ;;  %v1403_v31 = vld [vmem:[#allocation4 + $0x1248] sm:$0xff] }
  0xf4   : > { %1884 = vmatprep.subr.mxu0 %v1260_v32  ;;  %v520_v32 = vrot.slane %v4387_v41, %v519_v27 }
  0xf5   : > { %1885 = vmatpush2.msra.mxu0 %v1259_v33  ;;  %v1395_v33 = vld [vmem:[#allocation4 + $0x1208] sm:$0xff] }
  0xf6   : > { %1886 = vmatprep.subr.mxu0 %v1251_v34 }
  0xf7   : > { %1887 = vmatpush2.msra.mxu0 %v1250_v35  ;;  %v1394_v35 = vld [vmem:[#allocation4 + $0x1200] sm:$0xff] }
  0xf8   : > { %1994 = vmatprep.subr.mxu0 %v1692_v36 }
 0x137   : > { %v594_v48 = vpop.f32.mrf.mxu0  ;;  %v665_v49 = vpop.f32.mrf.mxu1 }
 0x138   : > { %v666_v50 = vadd.f32 %v665_v49, %v504_v44  ;;  %v595_v51 = vadd.f32 %v594_v48, %v496_v45  ;;  %v1673_v44 = vld [vmem:[#allocation4 + $0x1ab8] sm:$0xff]  ;;  %v955_v49 = vld [vmem:[#allocation4 + $0x448] sm:$0xff] }
 0x139   : > { %v596_v52 = vpop.f32.mrf.mxu0  ;;  %v667_v53 = vpop.f32.mrf.mxu1 }
 0x13a   : > { %v597_v54 = vadd.f32 %v596_v52, %v500_v46  ;;  %v668_v55 = vadd.f32 %v667_v53, %v508_v47  ;;  %v4403_v56 = vmax.f32 %v666_v50, 0.0  ;;  %v4409_v59 = vmax.f32 %v595_v51, 0.0  ;;  %v1665_v46 = vld [vmem:[#allocation4 + $0x1a78] sm:$0xff]  ;;  %v1664_v47 = vld [vmem:[#allocation4 + $0x1a70] sm:$0xff]  ;;  %v947_v50 = vld [vmem:[#allocation4 + $0x408] sm:$0xff] }
 0x13b   : > { %v1656_v51 = vld [vmem:[#allocation4 + $0x1a30] sm:$0xff]  ;;  %v946_v52 = vld [vmem:[#allocation4 + $0x400] sm:$0xff]  ;;  %v1655_v53 = vld [vmem:[#allocation4 + $0x1a28] sm:$0xff] }
 0x13c   : > { %v4405_v57 = vmax.f32 %v597_v54, 0.0  ;;  %v4407_v58 = vmax.f32 %v668_v55, 0.0  ;;  %v938_v54 = vld [vmem:[#allocation4 + $0x3c0] sm:$0xff]  ;;  %v1647_v55 = vld [vmem:[#allocation4 + $0x19e8] sm:$0xff] }
 0x13e   : > { %1817 = vmatprep.mubr.f32.mxu1 %v4405_v57  ;;  %1888 = vmatprep.mubr.f32.mxu0 %v4407_v58 }
 0x13f   : > { %1818 = vmatmul.mubr.f32.vlgmr.msra.gmra.mxu1 %v4409_v59  ;;  %1889 = vmatmul.mubr.f32.vlgmr.msra.gmra.mxu0 %v4403_v56 }
 0x140   : > { %1896 = vmatpush1.msra.mxu1 %v1529_v60  ;;  %1995 = vmatpush1.msra.mxu0 %v1691_v61  ;;  %v937_v60 = vld [vmem:[#allocation4 + $0x3b8] sm:$0xff]  ;;  %v1646_v61 = vld [vmem:[#allocation4 + $0x19e0] sm:$0xff] }
 0x141   : > { %1897 = vmatprep.subr.mxu1 %v1521_v62  ;;  %1996 = vmatprep.subr.mxu0 %v1683_v0  ;;  %v929_v62 = vld [vmem:[#allocation4 + $0x378] sm:$0xff]  ;;  %v1638_v0 = vld [vmem:[#allocation4 + $0x19a0] sm:$0xff] }
 0x142   : > { %1898 = vmatpush1.msra.mxu1 %v1520_v2  ;;  %1997 = vmatpush1.msra.mxu0 %v1682_v3  ;;  %v928_v2 = vld [vmem:[#allocation4 + $0x370] sm:$0xff]  ;;  %v1637_v3 = vld [vmem:[#allocation4 + $0x1998] sm:$0xff] }
 0x143   : > { %1899 = vmatprep.subr.mxu1 %v1512_v4  ;;  %2030 = vmatprep.mubr.f32.mxu0 %v3590_v9  ;;  %v920_v4 = vld [vmem:[#allocation4 + $0x330] sm:$0xff] }
 0x144   : > { %1900 = vmatpush1.msra.mxu1 %v1511_v5  ;;  %2037 = vmatprep.subr.mxu0 %v956_v6  ;;  %v1629_v5 = vld [vmem:[#allocation4 + $0x1958] sm:$0xff]  ;;  %v919_v6 = vld [vmem:[#allocation4 + $0x328] sm:$0xff] }
 0x145   : > { %1901 = vmatprep.subr.mxu1 %v1503_v7  ;;  %v1628_v7 = vld [vmem:[#allocation4 + $0x1950] sm:$0xff] }
 0x146   : > { %1902 = vmatpush1.msra.mxu1 %v1502_v8  ;;  %v911_v8 = vld [vmem:[#allocation4 + $0x2e8] sm:$0xff] }
 0x147   : > { %1903 = vmatprep.subr.mxu1 %v1494_v10  ;;  %v1620_v10 = vld [vmem:[#allocation4 + $0x1910] sm:$0xff] }
 0x148   : > { %1904 = vmatpush1.msra.mxu1 %v1493_v11  ;;  %v910_v11 = vld [vmem:[#allocation4 + $0x2e0] sm:$0xff] }
 0x149   : > { %1905 = vmatprep.subr.mxu1 %v1485_v12  ;;  %v1619_v12 = vld [vmem:[#allocation4 + $0x1908] sm:$0xff] }
 0x14a   : > { %1906 = vmatpush1.msra.mxu1 %v1484_v13  ;;  %v902_v13 = vld [vmem:[#allocation4 + $0x2a0] sm:$0xff] }
 0x14b   : > { %1907 = vmatprep.subr.mxu1 %v1476_v14  ;;  %v1611_v14 = vld [vmem:[#allocation4 + $0x18c8] sm:$0xff] }
 0x14c   : > { %1908 = vmatpush1.msra.mxu1 %v1475_v15  ;;  %v901_v15 = vld [vmem:[#allocation4 + $0x298] sm:$0xff] }
 0x14d   : > { %1909 = vmatprep.subr.mxu1 %v1467_v16  ;;  %v1610_v16 = vld [vmem:[#allocation4 + $0x18c0] sm:$0xff] }
 0x14e   : > { %1910 = vmatpush1.msra.mxu1 %v1466_v1  ;;  %v893_v1 = vld [vmem:[#allocation4 + $0x258] sm:$0xff] }
 0x14f   : > { %1911 = vmatprep.subr.mxu1 %v1458_v63  ;;  %v1602_v63 = vld [vmem:[#allocation4 + $0x1880] sm:$0xff] }
 0x150   : > { %1912 = vmatpush1.msra.mxu1 %v1457_v17  ;;  %v892_v17 = vld [vmem:[#allocation4 + $0x250] sm:$0xff] }
 0x151   : > { %1913 = vmatprep.subr.mxu1 %v1449_v18  ;;  %v1601_v18 = vld [vmem:[#allocation4 + $0x1878] sm:$0xff] }
 0x152   : > { %1914 = vmatpush1.msra.mxu1 %v1448_v19  ;;  %v884_v19 = vld [vmem:[#allocation4 + $0x210] sm:$0xff] }
 0x153   : > { %1915 = vmatprep.subr.mxu1 %v1440_v20  ;;  %v1593_v20 = vld [vmem:[#allocation4 + $0x1838] sm:$0xff] }
 0x154   : > { %1916 = vmatpush1.msra.mxu1 %v1439_v21  ;;  %v883_v21 = vld [vmem:[#allocation4 + $0x208] sm:$0xff] }
 0x155   : > { %1917 = vmatprep.subr.mxu1 %v1431_v22  ;;  %v1592_v22 = vld [vmem:[#allocation4 + $0x1830] sm:$0xff] }
 0x156   : > { %1918 = vmatpush1.msra.mxu1 %v1430_v23  ;;  %v875_v23 = vld [vmem:[#allocation4 + $0x1c8] sm:$0xff] }
 0x157   : > { %1919 = vmatprep.subr.mxu1 %v1422_v24  ;;  %v1584_v24 = vld [vmem:[#allocation4 + $0x17f0] sm:$0xff] }
 0x158   : > { %1920 = vmatpush1.msra.mxu1 %v1421_v25  ;;  %v874_v25 = vld [vmem:[#allocation4 + $0x1c0] sm:$0xff] }
 0x159   : > { %v3328_v30 = vpop.f32.mrf.mxu1  ;;  %1921 = vmatprep.subr.mxu1 %v1413_v26  ;;  %v1583_v26 = vld [vmem:[#allocation4 + $0x17e8] sm:$0xff] }
 0x15a   : > { %1922 = vmatpush1.msra.mxu1 %v1412_v28  ;;  %v866_v28 = vld [vmem:[#allocation4 + $0x180] sm:$0xff] }
 0x15b   : > { %v3329_v34 = vpop.f32.mrf.mxu1  ;;  %1923 = vmatprep.subr.mxu1 %v1404_v29  ;;  %v1575_v29 = vld [vmem:[#allocation4 + $0x17a8] sm:$0xff] }
 0x15c   : > { %v3330_v36 = vadd.f32 %v3329_v34, %v3328_v30  ;;  %1924 = vmatpush1.msra.mxu1 %v1403_v31  ;;  %v515_v30 = vsub.s32 5, %v4383_v38  ;;  %v865_v31 = vld [vmem:[#allocation4 + $0x178] sm:$0xff] }
 0x15d   : > { %1925 = vmatprep.subr.mxu1 %v1395_v33  ;;  %v511_v33 = vsub.s32 4, %v4383_v38  ;;  %v857_v34 = vld [vmem:[#allocation4 + $0x138] sm:$0xff] }
 0x15e   : > { %v808_v45 = vadd.f32 %v3330_v36, %v520_v32  ;;  %1926 = vmatpush1.msra.mxu1 %v1394_v35  ;;  %v1574_v32 = vld [vmem:[#allocation4 + $0x17a0] sm:$0xff]  ;;  %v856_v36 = vld [vmem:[#allocation4 + $0x130] sm:$0xff] }
 0x15f   : > { %1927 = vmatprep.subr.mxu1 %v1674_v37  ;;  %v1566_v35 = vld [vmem:[#allocation4 + $0x1760] sm:$0xff]  ;;  %v1565_v37 = vld [vmem:[#allocation4 + $0x1758] sm:$0xff] }
 0x160   : > { %v4420_v48 = vmax.f32 %v808_v45, 0.0  ;;  %1928 = vmatpush2.msra.mxu1 %v1673_v44  ;;  %v848_v44 = vld [vmem:[#allocation4 + $0xf0] sm:$0xff]  ;;  %v1557_v45 = vld [vmem:[#allocation4 + $0x1718] sm:$0xff] }
 0x161   : > { %1929 = vmatprep.subr.mxu1 %v1665_v46  ;;  %v516_v46 = vrot.slane %v4387_v41, %v515_v30 }
 0x162   : > { %3288 = vmatmul.mubr.msk.f32.vlgmr.msra.gmra.mxu0 %vm1749_vm0, %v4420_v48  ;;  %1930 = vmatpush2.msra.mxu1 %v1664_v47  ;;  %v512_v47 = vrot.slane %v4387_v41, %v511_v33  ;;  %v829_v41 = vld [vmem:[#allocation4 + $0x58] sm:$0xff] }
 0x163   : > { %2038 = vmatpush1.msra.mxu0 %v955_v49  ;;  %2101 = vmatprep.mubr.f32.mxu0 %v4405_v57 }
 0x164   : > { %2039 = vmatprep.subr.mxu0 %v947_v50  ;;  %1931 = vmatprep.subr.mxu1 %v1656_v51  ;;  %v847_v50 = vld [vmem:[#allocation4 + $0xe8] sm:$0xff]  ;;  %v1556_v51 = vld [vmem:[#allocation4 + $0x1710] sm:$0xff] }
 0x165   : > { %2040 = vmatpush1.msra.mxu0 %v946_v52  ;;  %1932 = vmatpush2.msra.mxu1 %v1655_v53  ;;  %v839_v52 = vld [vmem:[#allocation4 + $0xa8] sm:$0xff]  ;;  %v1548_v53 = vld [vmem:[#allocation4 + $0x16d0] sm:$0xff] }
 0x166   : > { %2041 = vmatprep.subr.mxu0 %v938_v54  ;;  %1933 = vmatprep.subr.mxu1 %v1647_v55  ;;  %v838_v55 = vld [vmem:[#allocation4 + $0xa0] sm:$0xff] }
 0x167   : > { %2042 = vmatpush1.msra.mxu0 %v937_v60  ;;  %1934 = vmatpush2.msra.mxu1 %v1646_v61  ;;  %v1547_v60 = vld [vmem:[#allocation4 + $0x16c8] sm:$0xff] }
 0x168   : > { %2043 = vmatprep.subr.mxu0 %v929_v62  ;;  %1935 = vmatprep.subr.mxu1 %v1638_v0  ;;  %v830_v62 = vld [vmem:[#allocation4 + $0x60] sm:$0xff]  ;;  %v1539_v0 = vld [vmem:[#allocation4 + $0x1688] sm:$0xff] }
 0x169   : > { %2044 = vmatpush1.msra.mxu0 %v928_v2  ;;  %1936 = vmatpush2.msra.mxu1 %v1637_v3  ;;  %v1538_v3 = vld [vmem:[#allocation4 + $0x1680] sm:$0xff] }
 0x16a   : > { %2045 = vmatprep.subr.mxu0 %v920_v4  ;;  %1937 = vmatprep.subr.mxu1 %v1629_v5  ;;  %v821_v5 = vld [vmem:[#allocation4 + $0x18] sm:$0xff] }
 0x16b   : > { %2046 = vmatpush1.msra.mxu0 %v919_v6  ;;  %1938 = vmatpush2.msra.mxu1 %v1628_v7  ;;  %v820_v6 = vld [vmem:[#allocation4 + $0x10] sm:$0xff] }
 0x16c   : > { %2047 = vmatprep.subr.mxu0 %v911_v8  ;;  %1939 = vmatprep.subr.mxu1 %v1620_v10  ;;  %v1244_v7 = vld [vmem:[#allocation4 + $0xd50] sm:$0xff] }
 0x16d   : > { %2048 = vmatpush1.msra.mxu0 %v910_v11  ;;  %1940 = vmatpush2.msra.mxu1 %v1619_v12  ;;  %v1100_v8 = vld [vmem:[#allocation4 + $0x8d0] sm:$0xff]  ;;  %v1243_v11 = vld [vmem:[#allocation4 + $0xd48] sm:$0xff] }
 0x16e   : > { %2049 = vmatprep.subr.mxu0 %v902_v13  ;;  %1941 = vmatprep.subr.mxu1 %v1611_v14  ;;  %v1099_v12 = vld [vmem:[#allocation4 + $0x8c8] sm:$0xff] }
 0x16f   : > { %2050 = vmatpush1.msra.mxu0 %v901_v15  ;;  %1942 = vmatpush2.msra.mxu1 %v1610_v16  ;;  %v1235_v13 = vld [vmem:[#allocation4 + $0xd08] sm:$0xff]  ;;  %v1234_v15 = vld [vmem:[#allocation4 + $0xd00] sm:$0xff] }
 0x170   : > { %2051 = vmatprep.subr.mxu0 %v893_v1  ;;  %1943 = vmatprep.subr.mxu1 %v1602_v63  ;;  %v1091_v14 = vld [vmem:[#allocation4 + $0x888] sm:$0xff]  ;;  %v1090_v16 = vld [vmem:[#allocation4 + $0x880] sm:$0xff] }
 0x171   : > { %2052 = vmatpush1.msra.mxu0 %v892_v17  ;;  %1944 = vmatpush2.msra.mxu1 %v1601_v18  ;;  %v1226_v1 = vld [vmem:[#allocation4 + $0xcc0] sm:$0xff]  ;;  %v1225_v17 = vld [vmem:[#allocation4 + $0xcb8] sm:$0xff] }
 0x172   : > { %2053 = vmatprep.subr.mxu0 %v884_v19  ;;  %1945 = vmatprep.subr.mxu1 %v1593_v20  ;;  %v1082_v63 = vld [vmem:[#allocation4 + $0x840] sm:$0xff]  ;;  %v1081_v18 = vld [vmem:[#allocation4 + $0x838] sm:$0xff] }
 0x173   : > { %2054 = vmatpush1.msra.mxu0 %v883_v21  ;;  %1946 = vmatpush2.msra.mxu1 %v1592_v22  ;;  %v1217_v19 = vld [vmem:[#allocation4 + $0xc78] sm:$0xff]  ;;  %v1216_v21 = vld [vmem:[#allocation4 + $0xc70] sm:$0xff] }
 0x174   : > { %2055 = vmatprep.subr.mxu0 %v875_v23  ;;  %1947 = vmatprep.subr.mxu1 %v1584_v24  ;;  %v1073_v20 = vld [vmem:[#allocation4 + $0x7f8] sm:$0xff]  ;;  %v1072_v22 = vld [vmem:[#allocation4 + $0x7f0] sm:$0xff] }
 0x175   : > { %2056 = vmatpush1.msra.mxu0 %v874_v25  ;;  %1948 = vmatpush2.msra.mxu1 %v1583_v26  ;;  %v1208_v23 = vld [vmem:[#allocation4 + $0xc30] sm:$0xff]  ;;  %v1207_v25 = vld [vmem:[#allocation4 + $0xc28] sm:$0xff] }
 0x176   : > { %2057 = vmatprep.subr.mxu0 %v866_v28  ;;  %1949 = vmatprep.subr.mxu1 %v1575_v29  ;;  %v1064_v24 = vld [vmem:[#allocation4 + $0x7b0] sm:$0xff]  ;;  %v1063_v26 = vld [vmem:[#allocation4 + $0x7a8] sm:$0xff] }
 0x177   : > { %2058 = vmatpush1.msra.mxu0 %v865_v31  ;;  %1950 = vmatpush2.msra.mxu1 %v1574_v32  ;;  %v1199_v28 = vld [vmem:[#allocation4 + $0xbe8] sm:$0xff]  ;;  %v1198_v31 = vld [vmem:[#allocation4 + $0xbe0] sm:$0xff] }
 0x178   : > { %2059 = vmatprep.subr.mxu0 %v857_v34  ;;  %1951 = vmatprep.subr.mxu1 %v1566_v35  ;;  %v736_v49 = vpop.f32.mrf.mxu0  ;;  %v1055_v29 = vld [vmem:[#allocation4 + $0x768] sm:$0xff]  ;;  %v1054_v32 = vld [vmem:[#allocation4 + $0x760] sm:$0xff] }
 0x179   : > { %2060 = vmatpush1.msra.mxu0 %v856_v36  ;;  %1952 = vmatpush2.msra.mxu1 %v1565_v37  ;;  %v737_v2 = vadd.f32 %v736_v49, %v512_v47  ;;  %v1190_v34 = vld [vmem:[#allocation4 + $0xba0] sm:$0xff]  ;;  %v1189_v36 = vld [vmem:[#allocation4 + $0xb98] sm:$0xff]  ;;  %v1036_v47 = vld [vmem:[#allocation4 + $0x6d0] sm:$0xff] }
 0x17a   : > { %2061 = vmatprep.subr.mxu0 %v848_v44  ;;  %1953 = vmatprep.subr.mxu1 %v1557_v45  ;;  %v738_v54 = vpop.f32.mrf.mxu0  ;;  %v1046_v35 = vld [vmem:[#allocation4 + $0x720] sm:$0xff]  ;;  %v1045_v37 = vld [vmem:[#allocation4 + $0x718] sm:$0xff]  ;;  %v1172_v49 = vld [vmem:[#allocation4 + $0xb10] sm:$0xff] }
 0x17b   : > { %2062 = vmatpush1.msra.mxu0 %v847_v50  ;;  %v739_v61 = vadd.f32 %v738_v54, %v516_v46  ;;  %1954 = vmatpush2.msra.mxu1 %v1556_v51  ;;  %v4435_v10 = vmax.f32 %v737_v2, 0.0  ;;  %v1181_v44 = vld [vmem:[#allocation4 + $0xb58] sm:$0xff]  ;;  %v1180_v46 = vld [vmem:[#allocation4 + $0xb50] sm:$0xff]  ;;  %v1171_v51 = vld [vmem:[#allocation4 + $0xb08] sm:$0xff] }
 0x17c   : > { %2063 = vmatprep.subr.mxu0 %v839_v52  ;;  %1955 = vmatprep.subr.mxu1 %v1548_v53  ;;  %v1037_v45 = vld [vmem:[#allocation4 + $0x6d8] sm:$0xff]  ;;  %v1028_v50 = vld [vmem:[#allocation4 + $0x690] sm:$0xff]  ;;  %v1027_v52 = vld [vmem:[#allocation4 + $0x688] sm:$0xff] }
 0x17d   : > { %v4433_v4 = vmax.f32 %v739_v61, 0.0  ;;  %2064 = vmatpush1.msra.mxu0 %v838_v55  ;;  %1956 = vmatpush2.msra.mxu1 %v1547_v60  ;;  %v1163_v53 = vld [vmem:[#allocation4 + $0xac8] sm:$0xff]  ;;  %v1162_v55 = vld [vmem:[#allocation4 + $0xac0] sm:$0xff]  ;;  %v1009_v2 = vld [vmem:[#allocation4 + $0x5f8] sm:$0xff] }
 0x17e   : > { %2065 = vmatprep.subr.mxu0 %v830_v62  ;;  %1957 = vmatprep.subr.mxu1 %v1539_v0  ;;  %v1019_v54 = vld [vmem:[#allocation4 + $0x648] sm:$0xff]  ;;  %v1018_v60 = vld [vmem:[#allocation4 + $0x640] sm:$0xff]  ;;  %v1153_v0 = vld [vmem:[#allocation4 + $0xa78] sm:$0xff] }
 0x17f   : > { %2066 = vmatpush1.msra.mxu0 %v829_v41  ;;  %1958 = vmatpush2.msra.mxu1 %v1538_v3  ;;  %v1154_v61 = vld [vmem:[#allocation4 + $0xa80] sm:$0xff]  ;;  %v1145_v41 = vld [vmem:[#allocation4 + $0xa38] sm:$0xff] }
 0x180   : > { %2067 = vmatprep.subr.mxu0 %v821_v5  ;;  %1959 = vmatprep.mubr.f32.mxu1 %v4433_v4  ;;  %v1010_v62 = vld [vmem:[#allocation4 + $0x600] sm:$0xff]  ;;  %v1001_v3 = vld [vmem:[#allocation4 + $0x5b8] sm:$0xff]  ;;  %v1144_v5 = vld [vmem:[#allocation4 + $0xa30] sm:$0xff] }
 0x181   : > { %2068 = vmatpush1.msra.mxu0 %v820_v6  ;;  %2108 = vmatprep.subr.mxu1 %v1244_v7  ;;  %v1000_v6 = vld [vmem:[#allocation4 + $0x5b0] sm:$0xff] }
 0x182   : > { %1960 = vmatmul.mubr.f32.vlgmr.msra.gmra.mxu1 %v4435_v10  ;;  %2069 = vmatprep.subr.mxu0 %v1100_v8  ;;  %v1136_v7 = vld [vmem:[#allocation4 + $0x9f0] sm:$0xff] }
 0x183   : > { %2109 = vmatpush1.msra.mxu1 %v1243_v11  ;;  %2070 = vmatpush2.msra.mxu0 %v1099_v12  ;;  %v992_v8 = vld [vmem:[#allocation4 + $0x570] sm:$0xff]  ;;  %v1135_v11 = vld [vmem:[#allocation4 + $0x9e8] sm:$0xff] }
 0x184   : > { %2110 = vmatprep.subr.mxu1 %v1235_v13  ;;  %2172 = vmatprep.mubr.f32.mxu1 %v4407_v58  ;;  %v991_v12 = vld [vmem:[#allocation4 + $0x568] sm:$0xff] }
 0x185   : > { %2071 = vmatprep.subr.mxu0 %v1091_v14  ;;  %2111 = vmatpush1.msra.mxu1 %v1234_v15  ;;  %v1127_v13 = vld [vmem:[#allocation4 + $0x9a8] sm:$0xff]  ;;  %v1126_v15 = vld [vmem:[#allocation4 + $0x9a0] sm:$0xff] }
 0x186   : > { %2072 = vmatpush2.msra.mxu0 %v1090_v16  ;;  %2112 = vmatprep.subr.mxu1 %v1226_v1  ;;  %v983_v14 = vld [vmem:[#allocation4 + $0x528] sm:$0xff]  ;;  %v982_v16 = vld [vmem:[#allocation4 + $0x520] sm:$0xff] }
 0x187   : > { %2073 = vmatprep.subr.mxu0 %v1082_v63  ;;  %2113 = vmatpush1.msra.mxu1 %v1225_v17  ;;  %v1118_v1 = vld [vmem:[#allocation4 + $0x960] sm:$0xff]  ;;  %v1117_v17 = vld [vmem:[#allocation4 + $0x958] sm:$0xff] }
 0x188   : > { %2074 = vmatpush2.msra.mxu0 %v1081_v18  ;;  %2114 = vmatprep.subr.mxu1 %v1217_v19  ;;  %v974_v63 = vld [vmem:[#allocation4 + $0x4e0] sm:$0xff]  ;;  %v973_v18 = vld [vmem:[#allocation4 + $0x4d8] sm:$0xff] }
 0x189   : > { %2075 = vmatprep.subr.mxu0 %v1073_v20  ;;  %2115 = vmatpush1.msra.mxu1 %v1216_v21  ;;  %v1109_v19 = vld [vmem:[#allocation4 + $0x918] sm:$0xff]  ;;  %v1108_v21 = vld [vmem:[#allocation4 + $0x910] sm:$0xff] }
 0x18a   : > { %2076 = vmatpush2.msra.mxu0 %v1072_v22  ;;  %2116 = vmatprep.subr.mxu1 %v1208_v23  ;;  %v965_v20 = vld [vmem:[#allocation4 + $0x498] sm:$0xff]  ;;  %v964_v22 = vld [vmem:[#allocation4 + $0x490] sm:$0xff] }
 0x18b   : > { %2077 = vmatprep.subr.mxu0 %v1064_v24  ;;  %2117 = vmatpush1.msra.mxu1 %v1207_v25  ;;  %v1388_v23 = vld [vmem:[#allocation4 + $0x11d0] sm:$0xff]  ;;  %v1387_v24 = vld [vmem:[#allocation4 + $0x11c8] sm:$0xff] }
 0x18c   : > { %2078 = vmatpush2.msra.mxu0 %v1063_v26  ;;  %2118 = vmatprep.subr.mxu1 %v1199_v28  ;;  %v1532_v25 = vld [vmem:[#allocation4 + $0x1650] sm:$0xff]  ;;  %v1379_v26 = vld [vmem:[#allocation4 + $0x1188] sm:$0xff] }
 0x18d   : > { %2079 = vmatprep.subr.mxu0 %v1055_v29  ;;  %2119 = vmatpush1.msra.mxu1 %v1198_v31  ;;  %v1531_v28 = vld [vmem:[#allocation4 + $0x1648] sm:$0xff]  ;;  %v1378_v29 = vld [vmem:[#allocation4 + $0x1180] sm:$0xff] }
 0x18e   : > { %2080 = vmatpush2.msra.mxu0 %v1054_v32  ;;  %2120 = vmatprep.subr.mxu1 %v1190_v34  ;;  %v1523_v31 = vld [vmem:[#allocation4 + $0x1608] sm:$0xff]  ;;  %v1370_v32 = vld [vmem:[#allocation4 + $0x1140] sm:$0xff] }
 0x18f   : > { %2081 = vmatprep.subr.mxu0 %v1046_v35  ;;  %2121 = vmatpush1.msra.mxu1 %v1189_v36  ;;  %v1522_v34 = vld [vmem:[#allocation4 + $0x1600] sm:$0xff]  ;;  %v1369_v35 = vld [vmem:[#allocation4 + $0x1138] sm:$0xff] }
 0x190   : > { %2082 = vmatpush2.msra.mxu0 %v1045_v37  ;;  %2122 = vmatprep.subr.mxu1 %v1181_v44  ;;  %v1514_v36 = vld [vmem:[#allocation4 + $0x15c0] sm:$0xff]  ;;  %v1361_v37 = vld [vmem:[#allocation4 + $0x10f8] sm:$0xff] }
 0x191   : > { %2083 = vmatprep.subr.mxu0 %v1037_v45  ;;  %2123 = vmatpush1.msra.mxu1 %v1180_v46  ;;  %v1513_v44 = vld [vmem:[#allocation4 + $0x15b8] sm:$0xff]  ;;  %v1360_v45 = vld [vmem:[#allocation4 + $0x10f0] sm:$0xff] }
 0x192   : > { %2084 = vmatpush2.msra.mxu0 %v1036_v47  ;;  %2124 = vmatprep.subr.mxu1 %v1172_v49  ;;  %v1505_v46 = vld [vmem:[#allocation4 + $0x1578] sm:$0xff]  ;;  %v1352_v47 = vld [vmem:[#allocation4 + $0x10b0] sm:$0xff] }
 0x193   : > { %2085 = vmatprep.subr.mxu0 %v1028_v50  ;;  %2125 = vmatpush1.msra.mxu1 %v1171_v51  ;;  %v1504_v49 = vld [vmem:[#allocation4 + $0x1570] sm:$0xff]  ;;  %v1351_v50 = vld [vmem:[#allocation4 + $0x10a8] sm:$0xff] }
 0x194   : > { %2086 = vmatpush2.msra.mxu0 %v1027_v52  ;;  %2126 = vmatprep.subr.mxu1 %v1163_v53  ;;  %v1496_v51 = vld [vmem:[#allocation4 + $0x1530] sm:$0xff]  ;;  %v1343_v52 = vld [vmem:[#allocation4 + $0x1068] sm:$0xff] }
 0x195   : > { %2087 = vmatprep.subr.mxu0 %v1019_v54  ;;  %2127 = vmatpush1.msra.mxu1 %v1162_v55  ;;  %v1495_v53 = vld [vmem:[#allocation4 + $0x1528] sm:$0xff]  ;;  %v1342_v54 = vld [vmem:[#allocation4 + $0x1060] sm:$0xff] }
 0x196   : > { %2088 = vmatpush2.msra.mxu0 %v1018_v60  ;;  %2128 = vmatprep.subr.mxu1 %v1154_v61  ;;  %v1487_v55 = vld [vmem:[#allocation4 + $0x14e8] sm:$0xff]  ;;  %v1334_v60 = vld [vmem:[#allocation4 + $0x1020] sm:$0xff] }
 0x197   : > { %2089 = vmatprep.subr.mxu0 %v1010_v62  ;;  %2129 = vmatpush1.msra.mxu1 %v1153_v0  ;;  %v1486_v61 = vld [vmem:[#allocation4 + $0x14e0] sm:$0xff]  ;;  %v1333_v62 = vld [vmem:[#allocation4 + $0x1018] sm:$0xff] }
 0x198   : > { %2090 = vmatpush2.msra.mxu0 %v1009_v2  ;;  %2130 = vmatprep.subr.mxu1 %v1145_v41  ;;  %v1478_v0 = vld [vmem:[#allocation4 + $0x14a0] sm:$0xff]  ;;  %v1325_v2 = vld [vmem:[#allocation4 + $0xfd8] sm:$0xff] }
 0x199   : > { %2091 = vmatprep.subr.mxu0 %v1001_v3  ;;  %2131 = vmatpush1.msra.mxu1 %v1144_v5  ;;  %v1477_v41 = vld [vmem:[#allocation4 + $0x1498] sm:$0xff]  ;;  %v1324_v3 = vld [vmem:[#allocation4 + $0xfd0] sm:$0xff] }
 0x19a   : > { %2092 = vmatpush2.msra.mxu0 %v1000_v6  ;;  %2132 = vmatprep.subr.mxu1 %v1136_v7  ;;  %v1469_v5 = vld [vmem:[#allocation4 + $0x1458] sm:$0xff]  ;;  %v1316_v6 = vld [vmem:[#allocation4 + $0xf90] sm:$0xff] }
 0x19b   : > { %2093 = vmatprep.subr.mxu0 %v992_v8  ;;  %2133 = vmatpush1.msra.mxu1 %v1135_v11  ;;  %v1468_v7 = vld [vmem:[#allocation4 + $0x1450] sm:$0xff]  ;;  %v1315_v8 = vld [vmem:[#allocation4 + $0xf88] sm:$0xff] }
 0x19c   : > { %2094 = vmatpush2.msra.mxu0 %v991_v12  ;;  %2134 = vmatprep.subr.mxu1 %v1127_v13  ;;  %v1460_v11 = vld [vmem:[#allocation4 + $0x1410] sm:$0xff]  ;;  %v1307_v12 = vld [vmem:[#allocation4 + $0xf48] sm:$0xff] }
 0x19d   : > { %2095 = vmatprep.subr.mxu0 %v983_v14  ;;  %2135 = vmatpush1.msra.mxu1 %v1126_v15  ;;  %v1459_v13 = vld [vmem:[#allocation4 + $0x1408] sm:$0xff]  ;;  %v1306_v14 = vld [vmem:[#allocation4 + $0xf40] sm:$0xff] }
 0x19e   : > { %2096 = vmatpush2.msra.mxu0 %v982_v16  ;;  %2136 = vmatprep.subr.mxu1 %v1118_v1  ;;  %v1451_v15 = vld [vmem:[#allocation4 + $0x13c8] sm:$0xff]  ;;  %v1298_v16 = vld [vmem:[#allocation4 + $0xf00] sm:$0xff] }
 0x19f   : > { %2097 = vmatprep.subr.mxu0 %v974_v63  ;;  %2137 = vmatpush1.msra.mxu1 %v1117_v17  ;;  %v1450_v1 = vld [vmem:[#allocation4 + $0x13c0] sm:$0xff]  ;;  %v1297_v63 = vld [vmem:[#allocation4 + $0xef8] sm:$0xff] }
 0x1a0   : > { %2098 = vmatpush2.msra.mxu0 %v973_v18  ;;  %2138 = vmatprep.subr.mxu1 %v1109_v19  ;;  %v1442_v17 = vld [vmem:[#allocation4 + $0x1380] sm:$0xff]  ;;  %v1289_v18 = vld [vmem:[#allocation4 + $0xeb8] sm:$0xff] }
 0x1a1   : > { %2099 = vmatprep.subr.mxu0 %v965_v20  ;;  %2139 = vmatpush1.msra.mxu1 %v1108_v21  ;;  %v1441_v19 = vld [vmem:[#allocation4 + $0x1378] sm:$0xff]  ;;  %v1288_v20 = vld [vmem:[#allocation4 + $0xeb0] sm:$0xff] }
 0x1a2   : > { %2100 = vmatpush2.msra.mxu0 %v964_v22  ;;  %2140 = vmatprep.subr.mxu1 %v1388_v23  ;;  %v1433_v21 = vld [vmem:[#allocation4 + $0x1338] sm:$0xff]  ;;  %v1280_v22 = vld [vmem:[#allocation4 + $0xe70] sm:$0xff] }
 0x1a3   : > { %2102 = vmatmul.mubr.f32.vlgmr.msra.gmra.mxu0 %v4409_v59  ;;  %2141 = vmatpush2.msra.mxu1 %v1387_v24  ;;  %v1432_v23 = vld [vmem:[#allocation4 + $0x1330] sm:$0xff]  ;;  %v1279_v24 = vld [vmem:[#allocation4 + $0xe68] sm:$0xff] }
 0x1a4   : > { %2179 = vmatprep.subr.mxu0 %v1532_v25  ;;  %2142 = vmatprep.subr.mxu1 %v1379_v26  ;;  %v1424_v25 = vld [vmem:[#allocation4 + $0x12f0] sm:$0xff]  ;;  %v1271_v26 = vld [vmem:[#allocation4 + $0xe28] sm:$0xff] }
 0x1a5   : > { %2180 = vmatpush1.msra.mxu0 %v1531_v28  ;;  %2243 = vmatprep.mubr.f32.mxu0 %v4433_v4  ;;  %v1423_v28 = vld [vmem:[#allocation4 + $0x12e8] sm:$0xff] }
 0x1a6   : > { %2143 = vmatpush2.msra.mxu1 %v1378_v29  ;;  %2181 = vmatprep.subr.mxu0 %v1523_v31  ;;  %v1270_v29 = vld [vmem:[#allocation4 + $0xe20] sm:$0xff]  ;;  %v1415_v31 = vld [vmem:[#allocation4 + $0x12a8] sm:$0xff] }
 0x1a7   : > { %2144 = vmatprep.subr.mxu1 %v1370_v32  ;;  %2182 = vmatpush1.msra.mxu0 %v1522_v34  ;;  %v1262_v32 = vld [vmem:[#allocation4 + $0xde0] sm:$0xff] }
 0x1a8   : > { %2145 = vmatpush2.msra.mxu1 %v1369_v35  ;;  %2183 = vmatprep.subr.mxu0 %v1514_v36  ;;  %v1414_v34 = vld [vmem:[#allocation4 + $0x12a0] sm:$0xff]  ;;  %v1261_v35 = vld [vmem:[#allocation4 + $0xdd8] sm:$0xff] }
 0x1a9   : > { %2146 = vmatprep.subr.mxu1 %v1361_v37  ;;  %2184 = vmatpush1.msra.mxu0 %v1513_v44  ;;  %v1406_v36 = vld [vmem:[#allocation4 + $0x1260] sm:$0xff]  ;;  %v1253_v37 = vld [vmem:[#allocation4 + $0xd98] sm:$0xff] }
 0x1aa   : > { %2147 = vmatpush2.msra.mxu1 %v1360_v45  ;;  %2185 = vmatprep.subr.mxu0 %v1505_v46  ;;  %v1405_v44 = vld [vmem:[#allocation4 + $0x1258] sm:$0xff]  ;;  %v1252_v45 = vld [vmem:[#allocation4 + $0xd90] sm:$0xff] }
 0x1ab   : > { %2148 = vmatprep.subr.mxu1 %v1352_v47  ;;  %2186 = vmatpush1.msra.mxu0 %v1504_v49  ;;  %v1397_v46 = vld [vmem:[#allocation4 + $0x1218] sm:$0xff]  ;;  %v1396_v47 = vld [vmem:[#allocation4 + $0x1210] sm:$0xff]  ;;  %v1694_v49 = vld [vmem:[#allocation4 + $0x1b60] sm:$0xff] }
 0x1ac   : > { %2149 = vmatpush2.msra.mxu1 %v1351_v50  ;;  %2187 = vmatprep.subr.mxu0 %v1496_v51  ;;  %v1676_v50 = vld [vmem:[#allocation4 + $0x1ad0] sm:$0xff]  ;;  %v1693_v51 = vld [vmem:[#allocation4 + $0x1b58] sm:$0xff] }
 0x1ad   : > { %2150 = vmatprep.subr.mxu1 %v1343_v52  ;;  %2188 = vmatpush1.msra.mxu0 %v1495_v53  ;;  %v1675_v52 = vld [vmem:[#allocation4 + $0x1ac8] sm:$0xff]  ;;  %v1685_v53 = vld [vmem:[#allocation4 + $0x1b18] sm:$0xff] }
 0x1ae   : > { %2151 = vmatpush2.msra.mxu1 %v1342_v54  ;;  %2189 = vmatprep.subr.mxu0 %v1487_v55  ;;  %v1667_v54 = vld [vmem:[#allocation4 + $0x1a88] sm:$0xff]  ;;  %v1684_v55 = vld [vmem:[#allocation4 + $0x1b10] sm:$0xff] }
 0x1af   : > { %2152 = vmatprep.subr.mxu1 %v1334_v60  ;;  %2190 = vmatpush1.msra.mxu0 %v1486_v61  ;;  %v1666_v60 = vld [vmem:[#allocation4 + $0x1a80] sm:$0xff] }
 0x1b0   : > { %2153 = vmatpush2.msra.mxu1 %v1333_v62  ;;  %2191 = vmatprep.subr.mxu0 %v1478_v0  ;;  %v958_v61 = vld [vmem:[#allocation4 + $0x460] sm:$0xff]  ;;  %v957_v0 = vld [vmem:[#allocation4 + $0x458] sm:$0xff] }
 0x1b1   : > { %2154 = vmatprep.subr.mxu1 %v1325_v2  ;;  %2192 = vmatpush1.msra.mxu0 %v1477_v41  ;;  %v1658_v62 = vld [vmem:[#allocation4 + $0x1a40] sm:$0xff]  ;;  %v1657_v2 = vld [vmem:[#allocation4 + $0x1a38] sm:$0xff] }
 0x1b2   : > { %2155 = vmatpush2.msra.mxu1 %v1324_v3  ;;  %2193 = vmatprep.subr.mxu0 %v1469_v5  ;;  %v949_v41 = vld [vmem:[#allocation4 + $0x418] sm:$0xff]  ;;  %v948_v5 = vld [vmem:[#allocation4 + $0x410] sm:$0xff] }
 0x1b3   : > { %2156 = vmatprep.subr.mxu1 %v1316_v6  ;;  %2194 = vmatpush1.msra.mxu0 %v1468_v7  ;;  %v1649_v3 = vld [vmem:[#allocation4 + $0x19f8] sm:$0xff]  ;;  %v1648_v6 = vld [vmem:[#allocation4 + $0x19f0] sm:$0xff] }
 0x1b4   : > { %2157 = vmatpush2.msra.mxu1 %v1315_v8  ;;  %2195 = vmatprep.subr.mxu0 %v1460_v11  ;;  %v940_v7 = vld [vmem:[#allocation4 + $0x3d0] sm:$0xff]  ;;  %v939_v11 = vld [vmem:[#allocation4 + $0x3c8] sm:$0xff] }
 0x1b5   : > { %2158 = vmatprep.subr.mxu1 %v1307_v12  ;;  %2196 = vmatpush1.msra.mxu0 %v1459_v13  ;;  %v1640_v8 = vld [vmem:[#allocation4 + $0x19b0] sm:$0xff]  ;;  %v1639_v12 = vld [vmem:[#allocation4 + $0x19a8] sm:$0xff] }
 0x1b6   : > { %2159 = vmatpush2.msra.mxu1 %v1306_v14  ;;  %2197 = vmatprep.subr.mxu0 %v1451_v15  ;;  %v931_v13 = vld [vmem:[#allocation4 + $0x388] sm:$0xff]  ;;  %v930_v15 = vld [vmem:[#allocation4 + $0x380] sm:$0xff] }
 0x1b7   : > { %2160 = vmatprep.subr.mxu1 %v1298_v16  ;;  %2198 = vmatpush1.msra.mxu0 %v1450_v1  ;;  %v1631_v14 = vld [vmem:[#allocation4 + $0x1968] sm:$0xff]  ;;  %v1630_v16 = vld [vmem:[#allocation4 + $0x1960] sm:$0xff] }
 0x1b8   : > { %2161 = vmatpush2.msra.mxu1 %v1297_v63  ;;  %2199 = vmatprep.subr.mxu0 %v1442_v17  ;;  %v922_v1 = vld [vmem:[#allocation4 + $0x340] sm:$0xff]  ;;  %v921_v17 = vld [vmem:[#allocation4 + $0x338] sm:$0xff] }
 0x1b9   : > { %2162 = vmatprep.subr.mxu1 %v1289_v18  ;;  %2200 = vmatpush1.msra.mxu0 %v1441_v19  ;;  %v1622_v63 = vld [vmem:[#allocation4 + $0x1920] sm:$0xff]  ;;  %v1621_v18 = vld [vmem:[#allocation4 + $0x1918] sm:$0xff] }
 0x1ba   : > { %2163 = vmatpush2.msra.mxu1 %v1288_v20  ;;  %2201 = vmatprep.subr.mxu0 %v1433_v21  ;;  %v913_v19 = vld [vmem:[#allocation4 + $0x2f8] sm:$0xff]  ;;  %v912_v21 = vld [vmem:[#allocation4 + $0x2f0] sm:$0xff] }
 0x1bb   : > { %2164 = vmatprep.subr.mxu1 %v1280_v22  ;;  %2202 = vmatpush1.msra.mxu0 %v1432_v23  ;;  %v1613_v20 = vld [vmem:[#allocation4 + $0x18d8] sm:$0xff]  ;;  %v1612_v22 = vld [vmem:[#allocation4 + $0x18d0] sm:$0xff] }
 0x1bc   : > { %2165 = vmatpush2.msra.mxu1 %v1279_v24  ;;  %2203 = vmatprep.subr.mxu0 %v1424_v25  ;;  %v904_v23 = vld [vmem:[#allocation4 + $0x2b0] sm:$0xff]  ;;  %v903_v25 = vld [vmem:[#allocation4 + $0x2a8] sm:$0xff] }
 0x1bd   : > { %2166 = vmatprep.subr.mxu1 %v1271_v26  ;;  %2204 = vmatpush1.msra.mxu0 %v1423_v28  ;;  %v1604_v24 = vld [vmem:[#allocation4 + $0x1890] sm:$0xff]  ;;  %v1603_v26 = vld [vmem:[#allocation4 + $0x1888] sm:$0xff] }
 0x1be   : > { %2167 = vmatpush2.msra.mxu1 %v1270_v29  ;;  %2205 = vmatprep.subr.mxu0 %v1415_v31  ;;  %v895_v28 = vld [vmem:[#allocation4 + $0x268] sm:$0xff]  ;;  %v894_v31 = vld [vmem:[#allocation4 + $0x260] sm:$0xff] }
 0x1bf   : > { %2168 = vmatprep.subr.mxu1 %v1262_v32  ;;  %2206 = vmatpush1.msra.mxu0 %v1414_v34  ;;  %v1595_v29 = vld [vmem:[#allocation4 + $0x1848] sm:$0xff]  ;;  %v1594_v32 = vld [vmem:[#allocation4 + $0x1840] sm:$0xff] }
 0x1c0   : > { %2169 = vmatpush2.msra.mxu1 %v1261_v35  ;;  %2207 = vmatprep.subr.mxu0 %v1406_v36  ;;  %v886_v34 = vld [vmem:[#allocation4 + $0x220] sm:$0xff]  ;;  %v885_v36 = vld [vmem:[#allocation4 + $0x218] sm:$0xff] }
 0x1c1   : > { %2170 = vmatprep.subr.mxu1 %v1253_v37  ;;  %2208 = vmatpush1.msra.mxu0 %v1405_v44  ;;  %v1586_v35 = vld [vmem:[#allocation4 + $0x1800] sm:$0xff]  ;;  %v1585_v37 = vld [vmem:[#allocation4 + $0x17f8] sm:$0xff] }
 0x1c2   : > { %2171 = vmatpush2.msra.mxu1 %v1252_v45  ;;  %2209 = vmatprep.subr.mxu0 %v1397_v46  ;;  %v877_v44 = vld [vmem:[#allocation4 + $0x1d8] sm:$0xff]  ;;  %v876_v46 = vld [vmem:[#allocation4 + $0x1d0] sm:$0xff] }
 0x1c3   : > { %2173 = vmatmul.mubr.f32.vlgmr.msra.gmra.mxu1 %v4403_v56  ;;  %2210 = vmatpush1.msra.mxu0 %v1396_v47  ;;  %v1577_v45 = vld [vmem:[#allocation4 + $0x17b8] sm:$0xff]  ;;  %v1576_v47 = vld [vmem:[#allocation4 + $0x17b0] sm:$0xff] }
 0x1c4   : > { %2278 = vmatprep.subr.mxu1 %v1694_v49  ;;  %2211 = vmatprep.subr.mxu0 %v1676_v50  ;;  %v868_v49 = vld [vmem:[#allocation4 + $0x190] sm:$0xff] }
 0x1c5   : > { %2279 = vmatpush1.msra.mxu1 %v1693_v51  ;;  %2212 = vmatpush2.msra.mxu0 %v1675_v52  ;;  %v1568_v50 = vld [vmem:[#allocation4 + $0x1770] sm:$0xff]  ;;  %v867_v51 = vld [vmem:[#allocation4 + $0x188] sm:$0xff] }
 0x1c6   : > { %2280 = vmatprep.subr.mxu1 %v1685_v53  ;;  %2213 = vmatprep.subr.mxu0 %v1667_v54  ;;  %v1567_v52 = vld [vmem:[#allocation4 + $0x1768] sm:$0xff] }
 0x1c7   : > { %2281 = vmatpush1.msra.mxu1 %v1684_v55  ;;  %2314 = vmatprep.mubr.f32.mxu1 %v3590_v9  ;;  %v859_v53 = vld [vmem:[#allocation4 + $0x148] sm:$0xff]  ;;  %v858_v55 = vld [vmem:[#allocation4 + $0x140] sm:$0xff] }
 0x1c8   : > { %2214 = vmatpush2.msra.mxu0 %v1666_v60  ;;  %3289 = vmatmul.mubr.msk.f32.vlgmr.msra.gmra.mxu1 %vm1749_vm0, %v4420_v48  ;;  %v1559_v54 = vld [vmem:[#allocation4 + $0x1728] sm:$0xff]  ;;  %v1558_v60 = vld [vmem:[#allocation4 + $0x1720] sm:$0xff] }
 0x1c9   : > { %2321 = vmatprep.subr.mxu1 %v958_v61  ;;  %2215 = vmatprep.subr.mxu0 %v1658_v62  ;;  %v850_v61 = vld [vmem:[#allocation4 + $0x100] sm:$0xff] }
 0x1ca   : > { %2322 = vmatpush1.msra.mxu1 %v957_v0  ;;  %2385 = vmatprep.mubr.f32.mxu1 %v4405_v57  ;;  %v1550_v62 = vld [vmem:[#allocation4 + $0x16e0] sm:$0xff]  ;;  %v849_v0 = vld [vmem:[#allocation4 + $0xf8] sm:$0xff] }
 0x1cb   : > { %2216 = vmatpush2.msra.mxu0 %v1657_v2  ;;  %2323 = vmatprep.subr.mxu1 %v949_v41  ;;  %v1549_v2 = vld [vmem:[#allocation4 + $0x16d8] sm:$0xff] }
 0x1cc   : > { %2217 = vmatprep.subr.mxu0 %v1649_v3  ;;  %2324 = vmatpush1.msra.mxu1 %v948_v5  ;;  %v841_v41 = vld [vmem:[#allocation4 + $0xb8] sm:$0xff]  ;;  %v840_v5 = vld [vmem:[#allocation4 + $0xb0] sm:$0xff] }
 0x1cd   : > { %2218 = vmatpush2.msra.mxu0 %v1648_v6  ;;  %2325 = vmatprep.subr.mxu1 %v940_v7  ;;  %v1541_v3 = vld [vmem:[#allocation4 + $0x1698] sm:$0xff]  ;;  %v1540_v6 = vld [vmem:[#allocation4 + $0x1690] sm:$0xff] }
 0x1ce   : > { %2219 = vmatprep.subr.mxu0 %v1640_v8  ;;  %2326 = vmatpush1.msra.mxu1 %v939_v11  ;;  %v832_v7 = vld [vmem:[#allocation4 + $0x70] sm:$0xff]  ;;  %v831_v8 = vld [vmem:[#allocation4 + $0x68] sm:$0xff]  ;;  %v1246_v11 = vld [vmem:[#allocation4 + $0xd60] sm:$0xff] }
 0x1cf   : > { %2220 = vmatpush2.msra.mxu0 %v1639_v12  ;;  %2327 = vmatprep.subr.mxu1 %v931_v13  ;;  %v823_v12 = vld [vmem:[#allocation4 + $0x28] sm:$0xff]  ;;  %v1245_v13 = vld [vmem:[#allocation4 + $0xd58] sm:$0xff] }
 0x1d0   : > { %2221 = vmatprep.subr.mxu0 %v1631_v14  ;;  %2328 = vmatpush1.msra.mxu1 %v930_v15  ;;  %v822_v14 = vld [vmem:[#allocation4 + $0x20] sm:$0xff]  ;;  %v1237_v15 = vld [vmem:[#allocation4 + $0xd18] sm:$0xff] }
 0x1d1   : > { %2222 = vmatpush2.msra.mxu0 %v1630_v16  ;;  %2329 = vmatprep.subr.mxu1 %v922_v1  ;;  %v1102_v16 = vld [vmem:[#allocation4 + $0x8e0] sm:$0xff]  ;;  %v1236_v1 = vld [vmem:[#allocation4 + $0xd10] sm:$0xff] }
 0x1d2   : > { %2223 = vmatprep.subr.mxu0 %v1622_v63  ;;  %2330 = vmatpush1.msra.mxu1 %v921_v17  ;;  %v1101_v63 = vld [vmem:[#allocation4 + $0x8d8] sm:$0xff]  ;;  %v1228_v17 = vld [vmem:[#allocation4 + $0xcd0] sm:$0xff] }
 0x1d3   : > { %2224 = vmatpush2.msra.mxu0 %v1621_v18  ;;  %2331 = vmatprep.subr.mxu1 %v913_v19  ;;  %v1093_v18 = vld [vmem:[#allocation4 + $0x898] sm:$0xff]  ;;  %v1227_v19 = vld [vmem:[#allocation4 + $0xcc8] sm:$0xff] }
 0x1d4   : > { %2225 = vmatprep.subr.mxu0 %v1613_v20  ;;  %2332 = vmatpush1.msra.mxu1 %v912_v21  ;;  %v1092_v20 = vld [vmem:[#allocation4 + $0x890] sm:$0xff]  ;;  %v1219_v21 = vld [vmem:[#allocation4 + $0xc88] sm:$0xff] }
 0x1d5   : > { %2226 = vmatpush2.msra.mxu0 %v1612_v22  ;;  %2333 = vmatprep.subr.mxu1 %v904_v23  ;;  %v1084_v22 = vld [vmem:[#allocation4 + $0x850] sm:$0xff]  ;;  %v1218_v23 = vld [vmem:[#allocation4 + $0xc80] sm:$0xff] }
 0x1d6   : > { %2227 = vmatprep.subr.mxu0 %v1604_v24  ;;  %2334 = vmatpush1.msra.mxu1 %v903_v25  ;;  %v1083_v24 = vld [vmem:[#allocation4 + $0x848] sm:$0xff]  ;;  %v1210_v25 = vld [vmem:[#allocation4 + $0xc40] sm:$0xff] }
 0x1d7   : > { %2228 = vmatpush2.msra.mxu0 %v1603_v26  ;;  %2335 = vmatprep.subr.mxu1 %v895_v28  ;;  %v1075_v26 = vld [vmem:[#allocation4 + $0x808] sm:$0xff]  ;;  %v1209_v28 = vld [vmem:[#allocation4 + $0xc38] sm:$0xff] }
 0x1d8   : > { %2229 = vmatprep.subr.mxu0 %v1595_v29  ;;  %2336 = vmatpush1.msra.mxu1 %v894_v31  ;;  %v1074_v29 = vld [vmem:[#allocation4 + $0x800] sm:$0xff]  ;;  %v1201_v31 = vld [vmem:[#allocation4 + $0xbf8] sm:$0xff] }
 0x1d9   : > { %2230 = vmatpush2.msra.mxu0 %v1594_v32  ;;  %2337 = vmatprep.subr.mxu1 %v886_v34  ;;  %v1066_v32 = vld [vmem:[#allocation4 + $0x7c0] sm:$0xff]  ;;  %v1200_v34 = vld [vmem:[#allocation4 + $0xbf0] sm:$0xff] }
 0x1da   : > { %2231 = vmatprep.subr.mxu0 %v1586_v35  ;;  %2338 = vmatpush1.msra.mxu1 %v885_v36  ;;  %v1065_v35 = vld [vmem:[#allocation4 + $0x7b8] sm:$0xff]  ;;  %v1192_v36 = vld [vmem:[#allocation4 + $0xbb0] sm:$0xff] }
 0x1db   : > { %2232 = vmatpush2.msra.mxu0 %v1585_v37  ;;  %2339 = vmatprep.subr.mxu1 %v877_v44  ;;  %v1057_v37 = vld [vmem:[#allocation4 + $0x778] sm:$0xff]  ;;  %v1191_v44 = vld [vmem:[#allocation4 + $0xba8] sm:$0xff] }
 0x1dc   : > { %2233 = vmatprep.subr.mxu0 %v1577_v45  ;;  %2340 = vmatpush1.msra.mxu1 %v876_v46  ;;  %v1056_v45 = vld [vmem:[#allocation4 + $0x770] sm:$0xff]  ;;  %v1183_v46 = vld [vmem:[#allocation4 + $0xb68] sm:$0xff] }
 0x1dd   : > { %2234 = vmatpush2.msra.mxu0 %v1576_v47  ;;  %2341 = vmatprep.subr.mxu1 %v868_v49  ;;  %v1048_v47 = vld [vmem:[#allocation4 + $0x730] sm:$0xff]  ;;  %v1182_v49 = vld [vmem:[#allocation4 + $0xb60] sm:$0xff] }
 0x1de   : > { %2235 = vmatprep.subr.mxu0 %v1568_v50  ;;  %2342 = vmatpush1.msra.mxu1 %v867_v51  ;;  %v1047_v50 = vld [vmem:[#allocation4 + $0x728] sm:$0xff]  ;;  %v1174_v51 = vld [vmem:[#allocation4 + $0xb20] sm:$0xff] }
 0x1df   : > { %2236 = vmatpush2.msra.mxu0 %v1567_v52  ;;  %2343 = vmatprep.subr.mxu1 %v859_v53  ;;  %v1039_v52 = vld [vmem:[#allocation4 + $0x6e8] sm:$0xff]  ;;  %v1173_v53 = vld [vmem:[#allocation4 + $0xb18] sm:$0xff] }
 0x1e0   : > { %2237 = vmatprep.subr.mxu0 %v1559_v54  ;;  %2344 = vmatpush1.msra.mxu1 %v858_v55  ;;  %v1038_v54 = vld [vmem:[#allocation4 + $0x6e0] sm:$0xff]  ;;  %v1165_v55 = vld [vmem:[#allocation4 + $0xad8] sm:$0xff] }
 0x1e1   : > { %2238 = vmatpush2.msra.mxu0 %v1558_v60  ;;  %2345 = vmatprep.subr.mxu1 %v850_v61  ;;  %v1030_v60 = vld [vmem:[#allocation4 + $0x6a0] sm:$0xff]  ;;  %v1164_v61 = vld [vmem:[#allocation4 + $0xad0] sm:$0xff] }
 0x1e2   : > { %2239 = vmatprep.subr.mxu0 %v1550_v62  ;;  %2346 = vmatpush1.msra.mxu1 %v849_v0  ;;  %v1029_v62 = vld [vmem:[#allocation4 + $0x698] sm:$0xff]  ;;  %v1156_v0 = vld [vmem:[#allocation4 + $0xa90] sm:$0xff] }
 0x1e3   : > { %2240 = vmatpush2.msra.mxu0 %v1549_v2  ;;  %2347 = vmatprep.subr.mxu1 %v841_v41  ;;  %v1021_v2 = vld [vmem:[#allocation4 + $0x658] sm:$0xff]  ;;  %v1155_v41 = vld [vmem:[#allocation4 + $0xa88] sm:$0xff] }
 0x1e4   : > { %2241 = vmatprep.subr.mxu0 %v1541_v3  ;;  %2348 = vmatpush1.msra.mxu1 %v840_v5  ;;  %v1020_v3 = vld [vmem:[#allocation4 + $0x650] sm:$0xff]  ;;  %v1147_v5 = vld [vmem:[#allocation4 + $0xa48] sm:$0xff] }
 0x1e5   : > { %2242 = vmatpush2.msra.mxu0 %v1540_v6  ;;  %2349 = vmatprep.subr.mxu1 %v832_v7  ;;  %v1012_v6 = vld [vmem:[#allocation4 + $0x610] sm:$0xff]  ;;  %v1146_v7 = vld [vmem:[#allocation4 + $0xa40] sm:$0xff] }
 0x1e6   : > { %2244 = vmatmul.mubr.f32.vlgmr.msra.gmra.mxu0 %v4435_v10  ;;  %2350 = vmatpush1.msra.mxu1 %v831_v8  ;;  %v1011_v8 = vld [vmem:[#allocation4 + $0x608] sm:$0xff] }
 0x1e7   : > { %2392 = vmatprep.subr.mxu0 %v1246_v11  ;;  %2351 = vmatprep.subr.mxu1 %v823_v12  ;;  %v1138_v11 = vld [vmem:[#allocation4 + $0xa00] sm:$0xff]  ;;  %v1003_v12 = vld [vmem:[#allocation4 + $0x5c8] sm:$0xff] }
 0x1e8   : > { %2393 = vmatpush1.msra.mxu0 %v1245_v13  ;;  %2456 = vmatprep.mubr.f32.mxu0 %v4407_v58  ;;  %v1137_v13 = vld [vmem:[#allocation4 + $0x9f8] sm:$0xff] }
 0x1e9   : > { %2352 = vmatpush1.msra.mxu1 %v822_v14  ;;  %2394 = vmatprep.subr.mxu0 %v1237_v15  ;;  %v1002_v14 = vld [vmem:[#allocation4 + $0x5c0] sm:$0xff]  ;;  %v1129_v15 = vld [vmem:[#allocation4 + $0x9b8] sm:$0xff] }
 0x1ea   : > { %2353 = vmatprep.subr.mxu1 %v1102_v16  ;;  %2395 = vmatpush1.msra.mxu0 %v1236_v1  ;;  %v994_v16 = vld [vmem:[#allocation4 + $0x580] sm:$0xff]  ;;  %v1128_v1 = vld [vmem:[#allocation4 + $0x9b0] sm:$0xff] }
 0x1eb   : > { %2354 = vmatpush2.msra.mxu1 %v1101_v63  ;;  %2396 = vmatprep.subr.mxu0 %v1228_v17  ;;  %v993_v63 = vld [vmem:[#allocation4 + $0x578] sm:$0xff]  ;;  %v1120_v17 = vld [vmem:[#allocation4 + $0x970] sm:$0xff] }
 0x1ec   : > { %2355 = vmatprep.subr.mxu1 %v1093_v18  ;;  %2397 = vmatpush1.msra.mxu0 %v1227_v19  ;;  %v985_v18 = vld [vmem:[#allocation4 + $0x538] sm:$0xff]  ;;  %v1119_v19 = vld [vmem:[#allocation4 + $0x968] sm:$0xff] }
 0x1ed   : > { %2356 = vmatpush2.msra.mxu1 %v1092_v20  ;;  %2398 = vmatprep.subr.mxu0 %v1219_v21  ;;  %v984_v20 = vld [vmem:[#allocation4 + $0x530] sm:$0xff]  ;;  %v1111_v21 = vld [vmem:[#allocation4 + $0x928] sm:$0xff] }
 0x1ee   : > { %2357 = vmatprep.subr.mxu1 %v1084_v22  ;;  %2399 = vmatpush1.msra.mxu0 %v1218_v23  ;;  %v976_v22 = vld [vmem:[#allocation4 + $0x4f0] sm:$0xff]  ;;  %v1110_v23 = vld [vmem:[#allocation4 + $0x920] sm:$0xff] }
 0x1ef   : > { %2358 = vmatpush2.msra.mxu1 %v1083_v24  ;;  %2400 = vmatprep.subr.mxu0 %v1210_v25  ;;  %v975_v24 = vld [vmem:[#allocation4 + $0x4e8] sm:$0xff]  ;;  %v1390_v25 = vld [vmem:[#allocation4 + $0x11e0] sm:$0xff] }
 0x1f0   : > { %2359 = vmatprep.subr.mxu1 %v1075_v26  ;;  %2401 = vmatpush1.msra.mxu0 %v1209_v28  ;;  %v967_v26 = vld [vmem:[#allocation4 + $0x4a8] sm:$0xff]  ;;  %v1389_v28 = vld [vmem:[#allocation4 + $0x11d8] sm:$0xff] }
 0x1f1   : > { %2360 = vmatpush2.msra.mxu1 %v1074_v29  ;;  %2402 = vmatprep.subr.mxu0 %v1201_v31  ;;  %v966_v29 = vld [vmem:[#allocation4 + $0x4a0] sm:$0xff]  ;;  %v1381_v31 = vld [vmem:[#allocation4 + $0x1198] sm:$0xff] }
 0x1f2   : > { %2361 = vmatprep.subr.mxu1 %v1066_v32  ;;  %2403 = vmatpush1.msra.mxu0 %v1200_v34  ;;  %v1380_v32 = vld [vmem:[#allocation4 + $0x1190] sm:$0xff]  ;;  %v1534_v34 = vld [vmem:[#allocation4 + $0x1660] sm:$0xff] }
 0x1f3   : > { %2362 = vmatpush2.msra.mxu1 %v1065_v35  ;;  %2404 = vmatprep.subr.mxu0 %v1192_v36  ;;  %v1372_v35 = vld [vmem:[#allocation4 + $0x1150] sm:$0xff]  ;;  %v1533_v36 = vld [vmem:[#allocation4 + $0x1658] sm:$0xff] }
 0x1f4   : > { %2363 = vmatprep.subr.mxu1 %v1057_v37  ;;  %2405 = vmatpush1.msra.mxu0 %v1191_v44  ;;  %v1371_v37 = vld [vmem:[#allocation4 + $0x1148] sm:$0xff]  ;;  %v1525_v44 = vld [vmem:[#allocation4 + $0x1618] sm:$0xff] }
 0x1f5   : > { %2364 = vmatpush2.msra.mxu1 %v1056_v45  ;;  %2406 = vmatprep.subr.mxu0 %v1183_v46  ;;  %v1363_v45 = vld [vmem:[#allocation4 + $0x1108] sm:$0xff]  ;;  %v1524_v46 = vld [vmem:[#allocation4 + $0x1610] sm:$0xff] }
 0x1f6   : > { %2365 = vmatprep.subr.mxu1 %v1048_v47  ;;  %2407 = vmatpush1.msra.mxu0 %v1182_v49  ;;  %v1362_v47 = vld [vmem:[#allocation4 + $0x1100] sm:$0xff]  ;;  %v1516_v49 = vld [vmem:[#allocation4 + $0x15d0] sm:$0xff] }
 0x1f7   : > { %2366 = vmatpush2.msra.mxu1 %v1047_v50  ;;  %2408 = vmatprep.subr.mxu0 %v1174_v51  ;;  %v1354_v50 = vld [vmem:[#allocation4 + $0x10c0] sm:$0xff]  ;;  %v1515_v51 = vld [vmem:[#allocation4 + $0x15c8] sm:$0xff] }
 0x1f8   : > { %2367 = vmatprep.subr.mxu1 %v1039_v52  ;;  %2409 = vmatpush1.msra.mxu0 %v1173_v53  ;;  %v1353_v52 = vld [vmem:[#allocation4 + $0x10b8] sm:$0xff]  ;;  %v1507_v53 = vld [vmem:[#allocation4 + $0x1588] sm:$0xff] }
 0x1f9   : > { %2368 = vmatpush2.msra.mxu1 %v1038_v54  ;;  %2410 = vmatprep.subr.mxu0 %v1165_v55  ;;  %v1345_v54 = vld [vmem:[#allocation4 + $0x1078] sm:$0xff]  ;;  %v1506_v55 = vld [vmem:[#allocation4 + $0x1580] sm:$0xff] }
 0x1fa   : > { %2369 = vmatprep.subr.mxu1 %v1030_v60  ;;  %2411 = vmatpush1.msra.mxu0 %v1164_v61  ;;  %v1344_v60 = vld [vmem:[#allocation4 + $0x1070] sm:$0xff]  ;;  %v1498_v61 = vld [vmem:[#allocation4 + $0x1540] sm:$0xff] }
 0x1fb   : > { %2370 = vmatpush2.msra.mxu1 %v1029_v62  ;;  %2412 = vmatprep.subr.mxu0 %v1156_v0  ;;  %v1336_v62 = vld [vmem:[#allocation4 + $0x1030] sm:$0xff]  ;;  %v1497_v0 = vld [vmem:[#allocation4 + $0x1538] sm:$0xff] }
 0x1fc   : > { %2371 = vmatprep.subr.mxu1 %v1021_v2  ;;  %2413 = vmatpush1.msra.mxu0 %v1155_v41  ;;  %v1335_v2 = vld [vmem:[#allocation4 + $0x1028] sm:$0xff]  ;;  %v1489_v41 = vld [vmem:[#allocation4 + $0x14f8] sm:$0xff] }
 0x1fd   : > { %2372 = vmatpush2.msra.mxu1 %v1020_v3  ;;  %2414 = vmatprep.subr.mxu0 %v1147_v5  ;;  %v1327_v3 = vld [vmem:[#allocation4 + $0xfe8] sm:$0xff]  ;;  %v1488_v5 = vld [vmem:[#allocation4 + $0x14f0] sm:$0xff] }
 0x1fe   : > { %2373 = vmatprep.subr.mxu1 %v1012_v6  ;;  %2415 = vmatpush1.msra.mxu0 %v1146_v7  ;;  %v1326_v6 = vld [vmem:[#allocation4 + $0xfe0] sm:$0xff]  ;;  %v1480_v7 = vld [vmem:[#allocation4 + $0x14b0] sm:$0xff] }
 0x1ff   : > { %2374 = vmatpush2.msra.mxu1 %v1011_v8  ;;  %2416 = vmatprep.subr.mxu0 %v1138_v11  ;;  %v1318_v8 = vld [vmem:[#allocation4 + $0xfa0] sm:$0xff]  ;;  %v1479_v11 = vld [vmem:[#allocation4 + $0x14a8] sm:$0xff] }
 0x200   : > { %2375 = vmatprep.subr.mxu1 %v1003_v12  ;;  %2417 = vmatpush1.msra.mxu0 %v1137_v13  ;;  %v1317_v12 = vld [vmem:[#allocation4 + $0xf98] sm:$0xff]  ;;  %v1471_v13 = vld [vmem:[#allocation4 + $0x1468] sm:$0xff] }
 0x201   : > { %2376 = vmatpush2.msra.mxu1 %v1002_v14  ;;  %2418 = vmatprep.subr.mxu0 %v1129_v15  ;;  %v1309_v14 = vld [vmem:[#allocation4 + $0xf58] sm:$0xff]  ;;  %v1470_v15 = vld [vmem:[#allocation4 + $0x1460] sm:$0xff] }
 0x202   : > { %2377 = vmatprep.subr.mxu1 %v994_v16  ;;  %2419 = vmatpush1.msra.mxu0 %v1128_v1  ;;  %v1308_v16 = vld [vmem:[#allocation4 + $0xf50] sm:$0xff]  ;;  %v1462_v1 = vld [vmem:[#allocation4 + $0x1420] sm:$0xff] }
 0x203   : > { %2378 = vmatpush2.msra.mxu1 %v993_v63  ;;  %2420 = vmatprep.subr.mxu0 %v1120_v17  ;;  %v1300_v63 = vld [vmem:[#allocation4 + $0xf10] sm:$0xff]  ;;  %v1461_v17 = vld [vmem:[#allocation4 + $0x1418] sm:$0xff] }
 0x204   : > { %2379 = vmatprep.subr.mxu1 %v985_v18  ;;  %2421 = vmatpush1.msra.mxu0 %v1119_v19  ;;  %v1299_v18 = vld [vmem:[#allocation4 + $0xf08] sm:$0xff]  ;;  %v1453_v19 = vld [vmem:[#allocation4 + $0x13d8] sm:$0xff] }
 0x205   : > { %2380 = vmatpush2.msra.mxu1 %v984_v20  ;;  %2422 = vmatprep.subr.mxu0 %v1111_v21  ;;  %v1291_v20 = vld [vmem:[#allocation4 + $0xec8] sm:$0xff]  ;;  %v1452_v21 = vld [vmem:[#allocation4 + $0x13d0] sm:$0xff] }
 0x206   : > { %2381 = vmatprep.subr.mxu1 %v976_v22  ;;  %2423 = vmatpush1.msra.mxu0 %v1110_v23  ;;  %v1290_v22 = vld [vmem:[#allocation4 + $0xec0] sm:$0xff]  ;;  %v1444_v23 = vld [vmem:[#allocation4 + $0x1390] sm:$0xff] }
 0x207   : > { %2382 = vmatpush2.msra.mxu1 %v975_v24  ;;  %2424 = vmatprep.subr.mxu0 %v1390_v25  ;;  %v1282_v24 = vld [vmem:[#allocation4 + $0xe80] sm:$0xff]  ;;  %v1443_v25 = vld [vmem:[#allocation4 + $0x1388] sm:$0xff] }
 0x208   : > { %2383 = vmatprep.subr.mxu1 %v967_v26  ;;  %2425 = vmatpush2.msra.mxu0 %v1389_v28  ;;  %v1281_v26 = vld [vmem:[#allocation4 + $0xe78] sm:$0xff]  ;;  %v1435_v28 = vld [vmem:[#allocation4 + $0x1348] sm:$0xff] }
 0x209   : > { %2384 = vmatpush2.msra.mxu1 %v966_v29  ;;  %2426 = vmatprep.subr.mxu0 %v1381_v31  ;;  %v1273_v29 = vld [vmem:[#allocation4 + $0xe38] sm:$0xff]  ;;  %v1434_v31 = vld [vmem:[#allocation4 + $0x1340] sm:$0xff] }
 0x20a   : > { %2386 = vmatmul.mubr.f32.vlgmr.msra.gmra.mxu1 %v4409_v59  ;;  %2427 = vmatpush2.msra.mxu0 %v1380_v32  ;;  %v1272_v32 = vld [vmem:[#allocation4 + $0xe30] sm:$0xff] }
 0x20b   : > { %2463 = vmatprep.subr.mxu1 %v1534_v34  ;;  %2428 = vmatprep.subr.mxu0 %v1372_v35  ;;  %v1426_v34 = vld [vmem:[#allocation4 + $0x1300] sm:$0xff]  ;;  %v1264_v35 = vld [vmem:[#allocation4 + $0xdf0] sm:$0xff] }
 0x20c   : > { %2464 = vmatpush1.msra.mxu1 %v1533_v36  ;;  %2527 = vmatprep.mubr.f32.mxu1 %v4433_v4  ;;  %v1425_v36 = vld [vmem:[#allocation4 + $0x12f8] sm:$0xff] }
 0x20d   : > { %2429 = vmatpush2.msra.mxu0 %v1371_v37  ;;  %2465 = vmatprep.subr.mxu1 %v1525_v44  ;;  %v1263_v37 = vld [vmem:[#allocation4 + $0xde8] sm:$0xff]  ;;  %v1417_v44 = vld [vmem:[#allocation4 + $0x12b8] sm:$0xff] }
 0x20e   : > { %2430 = vmatprep.subr.mxu0 %v1363_v45  ;;  %2466 = vmatpush1.msra.mxu1 %v1524_v46  ;;  %v1255_v45 = vld [vmem:[#allocation4 + $0xda8] sm:$0xff]  ;;  %v1416_v46 = vld [vmem:[#allocation4 + $0x12b0] sm:$0xff] }
 0x20f   : > { %2431 = vmatpush2.msra.mxu0 %v1362_v47  ;;  %2467 = vmatprep.subr.mxu1 %v1516_v49  ;;  %v1254_v47 = vld [vmem:[#allocation4 + $0xda0] sm:$0xff]  ;;  %v1408_v49 = vld [vmem:[#allocation4 + $0x1270] sm:$0xff] }
 0x210   : > { %2432 = vmatprep.subr.mxu0 %v1354_v50  ;;  %2468 = vmatpush1.msra.mxu1 %v1515_v51  ;;  %v1407_v50 = vld [vmem:[#allocation4 + $0x1268] sm:$0xff]  ;;  %v1696_v51 = vld [vmem:[#allocation4 + $0x1b70] sm:$0xff] }
 0x211   : > { %2433 = vmatpush2.msra.mxu0 %v1353_v52  ;;  %2469 = vmatprep.subr.mxu1 %v1507_v53  ;;  %v1399_v52 = vld [vmem:[#allocation4 + $0x1228] sm:$0xff] }
 0x212   : > { %2434 = vmatprep.subr.mxu0 %v1345_v54  ;;  %2470 = vmatpush1.msra.mxu1 %v1506_v55  ;;  %v1695_v53 = vld [vmem:[#allocation4 + $0x1b68] sm:$0xff]  ;;  %v1398_v54 = vld [vmem:[#allocation4 + $0x1220] sm:$0xff] }
 0x213   : > { %2435 = vmatpush2.msra.mxu0 %v1344_v60  ;;  %2471 = vmatprep.subr.mxu1 %v1498_v61  ;;  %v1687_v55 = vld [vmem:[#allocation4 + $0x1b28] sm:$0xff]  ;;  %v1678_v60 = vld [vmem:[#allocation4 + $0x1ae0] sm:$0xff] }
 0x214   : > { %2436 = vmatprep.subr.mxu0 %v1336_v62  ;;  %2472 = vmatpush1.msra.mxu1 %v1497_v0  ;;  %v1686_v61 = vld [vmem:[#allocation4 + $0x1b20] sm:$0xff]  ;;  %v1677_v62 = vld [vmem:[#allocation4 + $0x1ad8] sm:$0xff]  ;;  %v960_v0 = vld [vmem:[#allocation4 + $0x470] sm:$0xff] }
 0x215   : > { %2437 = vmatpush2.msra.mxu0 %v1335_v2  ;;  %2473 = vmatprep.subr.mxu1 %v1489_v41  ;;  %v1669_v2 = vld [vmem:[#allocation4 + $0x1a98] sm:$0xff]  ;;  %v959_v41 = vld [vmem:[#allocation4 + $0x468] sm:$0xff] }
 0x216   : > { %2438 = vmatprep.subr.mxu0 %v1327_v3  ;;  %2474 = vmatpush1.msra.mxu1 %v1488_v5  ;;  %v1668_v3 = vld [vmem:[#allocation4 + $0x1a90] sm:$0xff]  ;;  %v951_v5 = vld [vmem:[#allocation4 + $0x428] sm:$0xff] }
 0x217   : > { %2439 = vmatpush2.msra.mxu0 %v1326_v6  ;;  %2475 = vmatprep.subr.mxu1 %v1480_v7  ;;  %v1660_v6 = vld [vmem:[#allocation4 + $0x1a50] sm:$0xff]  ;;  %v950_v7 = vld [vmem:[#allocation4 + $0x420] sm:$0xff] }
 0x218   : > { %2440 = vmatprep.subr.mxu0 %v1318_v8  ;;  %2476 = vmatpush1.msra.mxu1 %v1479_v11  ;;  %v1659_v8 = vld [vmem:[#allocation4 + $0x1a48] sm:$0xff]  ;;  %v942_v11 = vld [vmem:[#allocation4 + $0x3e0] sm:$0xff] }
 0x219   : > { %2441 = vmatpush2.msra.mxu0 %v1317_v12  ;;  %2477 = vmatprep.subr.mxu1 %v1471_v13  ;;  %v1651_v12 = vld [vmem:[#allocation4 + $0x1a08] sm:$0xff]  ;;  %v941_v13 = vld [vmem:[#allocation4 + $0x3d8] sm:$0xff] }
 0x21a   : > { %2442 = vmatprep.subr.mxu0 %v1309_v14  ;;  %2478 = vmatpush1.msra.mxu1 %v1470_v15  ;;  %v1650_v14 = vld [vmem:[#allocation4 + $0x1a00] sm:$0xff]  ;;  %v933_v15 = vld [vmem:[#allocation4 + $0x398] sm:$0xff] }
 0x21b   : > { %2443 = vmatpush2.msra.mxu0 %v1308_v16  ;;  %2479 = vmatprep.subr.mxu1 %v1462_v1  ;;  %v1642_v16 = vld [vmem:[#allocation4 + $0x19c0] sm:$0xff]  ;;  %v932_v1 = vld [vmem:[#allocation4 + $0x390] sm:$0xff] }
 0x21c   : > { %2444 = vmatprep.subr.mxu0 %v1300_v63  ;;  %2480 = vmatpush1.msra.mxu1 %v1461_v17  ;;  %v1641_v63 = vld [vmem:[#allocation4 + $0x19b8] sm:$0xff]  ;;  %v924_v17 = vld [vmem:[#allocation4 + $0x350] sm:$0xff] }
 0x21d   : > { %2445 = vmatpush2.msra.mxu0 %v1299_v18  ;;  %2481 = vmatprep.subr.mxu1 %v1453_v19  ;;  %v1633_v18 = vld [vmem:[#allocation4 + $0x1978] sm:$0xff]  ;;  %v923_v19 = vld [vmem:[#allocation4 + $0x348] sm:$0xff] }
 0x21e   : > { %2446 = vmatprep.subr.mxu0 %v1291_v20  ;;  %2482 = vmatpush1.msra.mxu1 %v1452_v21  ;;  %v1632_v20 = vld [vmem:[#allocation4 + $0x1970] sm:$0xff]  ;;  %v915_v21 = vld [vmem:[#allocation4 + $0x308] sm:$0xff] }
 0x21f   : > { %2447 = vmatpush2.msra.mxu0 %v1290_v22  ;;  %2483 = vmatprep.subr.mxu1 %v1444_v23  ;;  %v4456_v22 = vld [vmem:[#allocation6] sm:$0xff] }
 0x220   : > { %2448 = vmatprep.subr.mxu0 %v1282_v24  ;;  %2484 = vmatpush1.msra.mxu1 %v1443_v25  ;;  %v1624_v23 = vld [vmem:[#allocation4 + $0x1930] sm:$0xff]  ;;  %v914_v24 = vld [vmem:[#allocation4 + $0x300] sm:$0xff]  ;;  %v1623_v25 = vld [vmem:[#allocation4 + $0x1928] sm:$0xff] }
 0x221   : > { %2449 = vmatpush2.msra.mxu0 %v1281_v26  ;;  %2485 = vmatprep.subr.mxu1 %v1435_v28  ;;  %v906_v26 = vld [vmem:[#allocation4 + $0x2c0] sm:$0xff]  ;;  %v1819_v28 = vpop.f32.mrf.mxu1 }
 0x222   : > { %2450 = vmatprep.subr.mxu0 %v1273_v29  ;;  %2486 = vmatpush1.msra.mxu1 %v1434_v31  ;;  %v1615_v29 = vld [vmem:[#allocation4 + $0x18e8] sm:$0xff]  ;;  %v905_v31 = vld [vmem:[#allocation4 + $0x2b8] sm:$0xff] }
 0x223   : > { %2451 = vmatpush2.msra.mxu0 %v1272_v32  ;;  %2487 = vmatprep.subr.mxu1 %v1426_v34  ;;  %v1707_v32 = vrot.slane %v4456_v22, %v495_v40  ;;  %v1614_v34 = vld [vmem:[#allocation4 + $0x18e0] sm:$0xff]  ;;  %v1597_v40 = vld [vmem:[#allocation4 + $0x1858] sm:$0xff] }
 0x224   : > { %2452 = vmatprep.subr.mxu0 %v1264_v35  ;;  %2488 = vmatpush1.msra.mxu1 %v1425_v36  ;;  %v897_v35 = vld [vmem:[#allocation4 + $0x278] sm:$0xff]  ;;  %v1606_v36 = vld [vmem:[#allocation4 + $0x18a0] sm:$0xff] }
 0x225   : > { %2453 = vmatpush2.msra.mxu0 %v1263_v37  ;;  %2489 = vmatprep.subr.mxu1 %v1417_v44  ;;  %v896_v37 = vld [vmem:[#allocation4 + $0x270] sm:$0xff]  ;;  %v1711_v44 = vrot.slane %v4456_v22, %v499_v42 }
 0x226   : > { %2454 = vmatprep.subr.mxu0 %v1255_v45  ;;  %2490 = vmatpush1.msra.mxu1 %v1416_v46  ;;  %v1605_v45 = vld [vmem:[#allocation4 + $0x1898] sm:$0xff]  ;;  %v888_v46 = vld [vmem:[#allocation4 + $0x230] sm:$0xff] }
 0x227   : > { %2455 = vmatpush2.msra.mxu0 %v1254_v47  ;;  %2491 = vmatprep.subr.mxu1 %v1408_v49  ;;  %v1890_v47 = vpop.f32.mrf.mxu0  ;;  %v1821_v49 = vpop.f32.mrf.mxu1 }
 0x228   : > { %2457 = vmatmul.mubr.f32.vlgmr.msra.gmra.mxu0 %v4403_v56  ;;  %2492 = vmatpush1.msra.mxu1 %v1407_v50  ;;  %v887_v50 = vld [vmem:[#allocation4 + $0x228] sm:$0xff]  ;;  %v1822_v42 = vadd.f32 %v1821_v49, %v1711_v44  ;;  %v1248_v44 = vld [vmem:[#allocation4 + $0xd70] sm:$0xff] }
 0x229   : > { %2562 = vmatprep.subr.mxu0 %v1696_v51  ;;  %2493 = vmatprep.subr.mxu1 %v1399_v52  ;;  %v1820_v51 = vadd.f32 %v1819_v28, %v1707_v32  ;;  %v1596_v52 = vld [vmem:[#allocation4 + $0x1850] sm:$0xff]  ;;  %v834_v28 = vld [vmem:[#allocation4 + $0x80] sm:$0xff]  ;;  %v833_v32 = vld [vmem:[#allocation4 + $0x78] sm:$0xff] }
 0x22a   : > { %2563 = vmatpush1.msra.mxu0 %v1695_v53  ;;  %2494 = vmatpush1.msra.mxu1 %v1398_v54  ;;  %v879_v53 = vld [vmem:[#allocation4 + $0x1e8] sm:$0xff]  ;;  %v1588_v54 = vld [vmem:[#allocation4 + $0x1810] sm:$0xff] }
 0x22b   : > { %2564 = vmatprep.subr.mxu0 %v1687_v55  ;;  %2495 = vmatprep.subr.mxu1 %v1678_v60  ;;  %v878_v55 = vld [vmem:[#allocation4 + $0x1e0] sm:$0xff]  ;;  %v1587_v60 = vld [vmem:[#allocation4 + $0x1808] sm:$0xff] }
 0x22c   : > { %2565 = vmatpush1.msra.mxu0 %v1686_v61  ;;  %2598 = vmatprep.mubr.f32.mxu0 %v3590_v9  ;;  %v870_v61 = vld [vmem:[#allocation4 + $0x1a0] sm:$0xff]  ;;  %v1239_v49 = vld [vmem:[#allocation4 + $0xd28] sm:$0xff] }
 0x22d   : > { %2496 = vmatpush2.msra.mxu1 %v1677_v62  ;;  %3290 = vmatmul.mubr.msk.f32.vlgmr.msra.gmra.mxu0 %vm1749_vm0, %v4420_v48  ;;  %v1892_v62 = vpop.f32.mrf.mxu0 }
 0x22e   : > { %2605 = vmatprep.subr.mxu0 %v960_v0  ;;  %2497 = vmatprep.subr.mxu1 %v1669_v2  ;;  %v1579_v0 = vld [vmem:[#allocation4 + $0x17c8] sm:$0xff]  ;;  %v869_v2 = vld [vmem:[#allocation4 + $0x198] sm:$0xff] }
 0x22f   : > { %2606 = vmatpush1.msra.mxu0 %v959_v41  ;;  %2669 = vmatprep.mubr.f32.mxu0 %v4405_v57  ;;  %v1891_v41 = vadd.f32 %v1890_v47, %v1820_v51  ;;  %v1103_v47 = vld [vmem:[#allocation4 + $0x8e8] sm:$0xff]  ;;  %v1094_v51 = vld [vmem:[#allocation4 + $0x8a0] sm:$0xff] }
 0x230   : > { %2498 = vmatpush2.msra.mxu1 %v1668_v3  ;;  %2607 = vmatprep.subr.mxu0 %v951_v5  ;;  %v1578_v3 = vld [vmem:[#allocation4 + $0x17c0] sm:$0xff]  ;;  %v861_v5 = vld [vmem:[#allocation4 + $0x158] sm:$0xff] }
 0x231   : > { %2499 = vmatprep.subr.mxu1 %v1660_v6  ;;  %2608 = vmatpush1.msra.mxu0 %v950_v7  ;;  %v2032_v6 = vpop.f32.mrf.mxu0  ;;  %v1570_v7 = vld [vmem:[#allocation4 + $0x1780] sm:$0xff] }
 0x232   : > { %2500 = vmatpush2.msra.mxu1 %v1659_v8  ;;  %2609 = vmatprep.subr.mxu0 %v942_v11  ;;  %v860_v8 = vld [vmem:[#allocation4 + $0x150] sm:$0xff] }
 0x233   : > { %2501 = vmatprep.subr.mxu1 %v1651_v12  ;;  %2610 = vmatpush1.msra.mxu0 %v941_v13  ;;  %v1893_v12 = vadd.f32 %v1892_v62, %v1822_v42  ;;  %v1569_v13 = vld [vmem:[#allocation4 + $0x1778] sm:$0xff]  ;;  %v1076_v62 = vld [vmem:[#allocation4 + $0x810] sm:$0xff] }
 0x234   : > { %2502 = vmatpush2.msra.mxu1 %v1650_v14  ;;  %2611 = vmatprep.subr.mxu0 %v933_v15  ;;  %v852_v14 = vld [vmem:[#allocation4 + $0x110] sm:$0xff]  ;;  %v1221_v42 = vld [vmem:[#allocation4 + $0xc98] sm:$0xff] }
 0x235   : > { %2503 = vmatprep.subr.mxu1 %v1642_v16  ;;  %2612 = vmatpush1.msra.mxu0 %v932_v1  ;;  %v1561_v16 = vld [vmem:[#allocation4 + $0x1738] sm:$0xff]  ;;  %v851_v1 = vld [vmem:[#allocation4 + $0x108] sm:$0xff] }
 0x236   : > { %2504 = vmatpush2.msra.mxu1 %v1641_v63  ;;  %2613 = vmatprep.subr.mxu0 %v924_v17  ;;  %v1560_v17 = vld [vmem:[#allocation4 + $0x1730] sm:$0xff] }
 0x237   : > { %2505 = vmatprep.subr.mxu1 %v1633_v18  ;;  %2614 = vmatpush1.msra.mxu0 %v923_v19  ;;  %v843_v18 = vld [vmem:[#allocation4 + $0xc8] sm:$0xff] }
 0x238   : > { %2506 = vmatpush2.msra.mxu1 %v1632_v20  ;;  %2615 = vmatprep.subr.mxu0 %v915_v21  ;;  %v2034_v21 = vpop.f32.mrf.mxu0 }
 0x239   : > { %2507 = vmatprep.subr.mxu1 %v1624_v23  ;;  %2616 = vmatpush1.msra.mxu0 %v914_v24  ;;  %v1552_v23 = vld [vmem:[#allocation4 + $0x16f0] sm:$0xff]  ;;  %v842_v24 = vld [vmem:[#allocation4 + $0xc0] sm:$0xff] }
 0x23a   : > { %2508 = vmatpush2.msra.mxu1 %v1623_v25  ;;  %2617 = vmatprep.subr.mxu0 %v906_v26  ;;  %v1551_v26 = vld [vmem:[#allocation4 + $0x16e8] sm:$0xff] }
 0x23b   : > { %2509 = vmatprep.subr.mxu1 %v1615_v29  ;;  %2618 = vmatpush1.msra.mxu0 %v905_v31  ;;  %v1543_v31 = vld [vmem:[#allocation4 + $0x16a8] sm:$0xff] }
 0x23c   : > { %2510 = vmatpush2.msra.mxu1 %v1614_v34  ;;  %2619 = vmatprep.subr.mxu0 %v897_v35  ;;  %v1542_v35 = vld [vmem:[#allocation4 + $0x16a0] sm:$0xff] }
 0x23d   : > { %2511 = vmatprep.subr.mxu1 %v1606_v36  ;;  %2620 = vmatpush1.msra.mxu0 %v896_v37  ;;  %v825_v36 = vld [vmem:[#allocation4 + $0x38] sm:$0xff]  ;;  %v824_v37 = vld [vmem:[#allocation4 + $0x30] sm:$0xff] }
 0x23e   : > { %2512 = vmatpush2.msra.mxu1 %v1605_v45  ;;  %2621 = vmatprep.subr.mxu0 %v888_v46  ;;  %v1104_v45 = vld [vmem:[#allocation4 + $0x8f0] sm:$0xff]  ;;  %v1247_v46 = vld [vmem:[#allocation4 + $0xd68] sm:$0xff] }
 0x23f   : > { %2513 = vmatprep.subr.mxu1 %v1597_v40  ;;  %2622 = vmatpush1.msra.mxu0 %v887_v50  ;;  %v1095_v40 = vld [vmem:[#allocation4 + $0x8a8] sm:$0xff]  ;;  %v1238_v50 = vld [vmem:[#allocation4 + $0xd20] sm:$0xff] }
 0x240   : > { %2514 = vmatpush2.msra.mxu1 %v1596_v52  ;;  %2623 = vmatprep.subr.mxu0 %v879_v53  ;;  %v1230_v52 = vld [vmem:[#allocation4 + $0xce0] sm:$0xff] }
 0x241   : > { %2515 = vmatprep.subr.mxu1 %v1588_v54  ;;  %2624 = vmatpush1.msra.mxu0 %v878_v55  ;;  %v1086_v53 = vld [vmem:[#allocation4 + $0x860] sm:$0xff]  ;;  %v1229_v54 = vld [vmem:[#allocation4 + $0xcd8] sm:$0xff] }
 0x242   : > { %2516 = vmatpush2.msra.mxu1 %v1587_v60  ;;  %2625 = vmatprep.subr.mxu0 %v870_v61  ;;  %v1961_v11 = vpop.f32.mrf.mxu1  ;;  %v1085_v55 = vld [vmem:[#allocation4 + $0x858] sm:$0xff]  ;;  %v1220_v61 = vld [vmem:[#allocation4 + $0xc90] sm:$0xff] }
 0x243   : > { %2517 = vmatprep.subr.mxu1 %v1579_v0  ;;  %2626 = vmatpush1.msra.mxu0 %v869_v2  ;;  %v1962_v15 = vadd.f32 %v1961_v11, %v1891_v41  ;;  %v1077_v60 = vld [vmem:[#allocation4 + $0x818] sm:$0xff]  ;;  %v1212_v0 = vld [vmem:[#allocation4 + $0xc50] sm:$0xff]  ;;  %v1211_v41 = vld [vmem:[#allocation4 + $0xc48] sm:$0xff] }
 0x244   : > { %2518 = vmatpush2.msra.mxu1 %v1578_v3  ;;  %2627 = vmatprep.subr.mxu0 %v861_v5  ;;  %v1963_v63 = vpop.f32.mrf.mxu1  ;;  %v1068_v2 = vld [vmem:[#allocation4 + $0x7d0] sm:$0xff]  ;;  %v1067_v3 = vld [vmem:[#allocation4 + $0x7c8] sm:$0xff]  ;;  %v1194_v11 = vld [vmem:[#allocation4 + $0xbc0] sm:$0xff] }
 0x245   : > { %2519 = vmatprep.subr.mxu1 %v1570_v7  ;;  %2628 = vmatpush1.msra.mxu0 %v860_v8  ;;  %v2033_v19 = vadd.f32 %v2032_v6, %v1962_v15  ;;  %v1964_v20 = vadd.f32 %v1963_v63, %v1893_v12  ;;  %v1203_v5 = vld [vmem:[#allocation4 + $0xc08] sm:$0xff]  ;;  %v1202_v7 = vld [vmem:[#allocation4 + $0xc00] sm:$0xff]  ;;  %v1185_v15 = vld [vmem:[#allocation4 + $0xb78] sm:$0xff] }
 0x246   : > { %2520 = vmatpush2.msra.mxu1 %v1569_v13  ;;  %2629 = vmatprep.subr.mxu0 %v852_v14  ;;  %v1059_v6 = vld [vmem:[#allocation4 + $0x788] sm:$0xff]  ;;  %v1058_v8 = vld [vmem:[#allocation4 + $0x780] sm:$0xff]  ;;  %v1193_v13 = vld [vmem:[#allocation4 + $0xbb8] sm:$0xff] }
 0x247   : > { %2521 = vmatprep.subr.mxu1 %v1561_v16  ;;  %2630 = vmatpush1.msra.mxu0 %v851_v1  ;;  %v3169_v25 = vmax.f32 %v2033_v19, 0.0  ;;  %v2035_v29 = vadd.f32 %v2034_v21, %v1964_v20  ;;  %v1050_v12 = vld [vmem:[#allocation4 + $0x740] sm:$0xff]  ;;  %v1049_v14 = vld [vmem:[#allocation4 + $0x738] sm:$0xff]  ;;  %v1184_v1 = vld [vmem:[#allocation4 + $0xb70] sm:$0xff] }
 0x248   : > { %2522 = vmatpush2.msra.mxu1 %v1560_v17  ;;  %2631 = vmatprep.subr.mxu0 %v843_v18  ;;  %v1041_v16 = vld [vmem:[#allocation4 + $0x6f8] sm:$0xff]  ;;  %v1040_v63 = vld [vmem:[#allocation4 + $0x6f0] sm:$0xff]  ;;  %v1175_v19 = vld [vmem:[#allocation4 + $0xb28] sm:$0xff] }
 0x249   : > { %2523 = vmatprep.subr.mxu1 %v1552_v23  ;;  %2632 = vmatpush1.msra.mxu0 %v842_v24  ;;  %3178 = vst [vmem:[%s4468_s10] sm:$0xff] %v3169_v25  ;;  %v3170_v34 = vmax.f32 %v2035_v29, 0.0  ;;  %v1176_v17 = vld [vmem:[#allocation4 + $0xb30] sm:$0xff]  ;;  %v1031_v20 = vld [vmem:[#allocation4 + $0x6a8] sm:$0xff]  ;;  %v1166_v24 = vld [vmem:[#allocation4 + $0xae0] sm:$0xff] }
 0x24a   : > { %2524 = vmatpush2.msra.mxu1 %v1551_v26  ;;  %2633 = vmatprep.subr.mxu0 %v834_v28  ;;  %v1032_v18 = vld [vmem:[#allocation4 + $0x6b0] sm:$0xff]  ;;  %v1167_v21 = vld [vmem:[#allocation4 + $0xae8] sm:$0xff]  ;;  %v1022_v25 = vld [vmem:[#allocation4 + $0x660] sm:$0xff] }
 0x24b   : > { %2525 = vmatprep.subr.mxu1 %v1543_v31  ;;  %2634 = vmatpush1.msra.mxu0 %v833_v32  ;;  %3179 = vst [vmem:[%s4468_s10 + $0x8] sm:$0xff] %v3170_v34  ;;  %v1023_v23 = vld [vmem:[#allocation4 + $0x668] sm:$0xff]  ;;  %v1158_v26 = vld [vmem:[#allocation4 + $0xaa0] sm:$0xff]  ;;  %v1157_v29 = vld [vmem:[#allocation4 + $0xa98] sm:$0xff] }
 0x24c   : > { %2526 = vmatpush2.msra.mxu1 %v1542_v35  ;;  %2635 = vmatprep.subr.mxu0 %v825_v36  ;;  %v1014_v28 = vld [vmem:[#allocation4 + $0x620] sm:$0xff]  ;;  %v1013_v31 = vld [vmem:[#allocation4 + $0x618] sm:$0xff]  ;;  %v1148_v35 = vld [vmem:[#allocation4 + $0xa50] sm:$0xff] }
 0x24d   : > { %2528 = vmatmul.mubr.f32.vlgmr.msra.gmra.mxu1 %v4435_v10  ;;  %2636 = vmatpush1.msra.mxu0 %v824_v37  ;;  %v1149_v32 = vld [vmem:[#allocation4 + $0xa58] sm:$0xff]  ;;  %v1004_v36 = vld [vmem:[#allocation4 + $0x5d0] sm:$0xff] }
 0x24e   : > { %2676 = vmatprep.subr.mxu1 %v1248_v44  ;;  %2637 = vmatprep.subr.mxu0 %v1104_v45  ;;  %v1005_v34 = vld [vmem:[#allocation4 + $0x5d8] sm:$0xff]  ;;  %v1140_v37 = vld [vmem:[#allocation4 + $0xa10] sm:$0xff]  ;;  %v1139_v45 = vld [vmem:[#allocation4 + $0xa08] sm:$0xff] }
 0x24f   : > { %2677 = vmatpush1.msra.mxu1 %v1247_v46  ;;  %2740 = vmatprep.mubr.f32.mxu1 %v4407_v58  ;;  %v996_v44 = vld [vmem:[#allocation4 + $0x590] sm:$0xff]  ;;  %v995_v46 = vld [vmem:[#allocation4 + $0x588] sm:$0xff] }
 0x250   : > { %2638 = vmatpush2.msra.mxu0 %v1103_v47  ;;  %2678 = vmatprep.subr.mxu1 %v1239_v49  ;;  %v1131_v47 = vld [vmem:[#allocation4 + $0x9c8] sm:$0xff] }
 0x251   : > { %2639 = vmatprep.subr.mxu0 %v1095_v40  ;;  %2679 = vmatpush1.msra.mxu1 %v1238_v50  ;;  %v987_v49 = vld [vmem:[#allocation4 + $0x548] sm:$0xff]  ;;  %v1130_v40 = vld [vmem:[#allocation4 + $0x9c0] sm:$0xff] }
 0x252   : > { %2640 = vmatpush2.msra.mxu0 %v1094_v51  ;;  %2680 = vmatprep.subr.mxu1 %v1230_v52  ;;  %v986_v50 = vld [vmem:[#allocation4 + $0x540] sm:$0xff] }
 0x253   : > { %2641 = vmatprep.subr.mxu0 %v1086_v53  ;;  %2681 = vmatpush1.msra.mxu1 %v1229_v54  ;;  %v1122_v51 = vld [vmem:[#allocation4 + $0x980] sm:$0xff]  ;;  %v1121_v53 = vld [vmem:[#allocation4 + $0x978] sm:$0xff] }
 0x254   : > { %2642 = vmatpush2.msra.mxu0 %v1085_v55  ;;  %2682 = vmatprep.subr.mxu1 %v1221_v42  ;;  %v978_v52 = vld [vmem:[#allocation4 + $0x500] sm:$0xff]  ;;  %v977_v54 = vld [vmem:[#allocation4 + $0x4f8] sm:$0xff] }
 0x255   : > { %2643 = vmatprep.subr.mxu0 %v1077_v60  ;;  %2683 = vmatpush1.msra.mxu1 %v1220_v61  ;;  %v1113_v55 = vld [vmem:[#allocation4 + $0x938] sm:$0xff]  ;;  %v1112_v60 = vld [vmem:[#allocation4 + $0x930] sm:$0xff] }
 0x256   : > { %2644 = vmatpush2.msra.mxu0 %v1076_v62  ;;  %2684 = vmatprep.subr.mxu1 %v1212_v0  ;;  %v969_v42 = vld [vmem:[#allocation4 + $0x4b8] sm:$0xff]  ;;  %v968_v61 = vld [vmem:[#allocation4 + $0x4b0] sm:$0xff]  ;;  %v1391_v0 = vld [vmem:[#allocation4 + $0x11e8] sm:$0xff] }
 0x257   : > { %2645 = vmatprep.subr.mxu0 %v1068_v2  ;;  %2685 = vmatpush1.msra.mxu1 %v1211_v41  ;;  %v1392_v62 = vld [vmem:[#allocation4 + $0x11f0] sm:$0xff]  ;;  %v1383_v41 = vld [vmem:[#allocation4 + $0x11a8] sm:$0xff] }
 0x258   : > { %2646 = vmatpush2.msra.mxu0 %v1067_v3  ;;  %2686 = vmatprep.subr.mxu1 %v1203_v5  ;;  %v1536_v2 = vld [vmem:[#allocation4 + $0x1670] sm:$0xff]  ;;  %v1535_v3 = vld [vmem:[#allocation4 + $0x1668] sm:$0xff]  ;;  %v1382_v5 = vld [vmem:[#allocation4 + $0x11a0] sm:$0xff] }
 0x259   : > { %2647 = vmatprep.subr.mxu0 %v1059_v6  ;;  %2687 = vmatpush1.msra.mxu1 %v1202_v7  ;;  %v1527_v6 = vld [vmem:[#allocation4 + $0x1628] sm:$0xff]  ;;  %v1374_v7 = vld [vmem:[#allocation4 + $0x1160] sm:$0xff] }
 0x25a   : > { %2648 = vmatpush2.msra.mxu0 %v1058_v8  ;;  %2688 = vmatprep.subr.mxu1 %v1194_v11  ;;  %v1526_v8 = vld [vmem:[#allocation4 + $0x1620] sm:$0xff]  ;;  %v1373_v11 = vld [vmem:[#allocation4 + $0x1158] sm:$0xff] }
 0x25b   : > { %2649 = vmatprep.subr.mxu0 %v1050_v12  ;;  %2689 = vmatpush1.msra.mxu1 %v1193_v13  ;;  %v1518_v12 = vld [vmem:[#allocation4 + $0x15e0] sm:$0xff]  ;;  %v1365_v13 = vld [vmem:[#allocation4 + $0x1118] sm:$0xff] }
 0x25c   : > { %2650 = vmatpush2.msra.mxu0 %v1049_v14  ;;  %2690 = vmatprep.subr.mxu1 %v1185_v15  ;;  %v1517_v14 = vld [vmem:[#allocation4 + $0x15d8] sm:$0xff]  ;;  %v1364_v15 = vld [vmem:[#allocation4 + $0x1110] sm:$0xff] }
 0x25d   : > { %2651 = vmatprep.subr.mxu0 %v1041_v16  ;;  %2691 = vmatpush1.msra.mxu1 %v1184_v1  ;;  %v1509_v16 = vld [vmem:[#allocation4 + $0x1598] sm:$0xff]  ;;  %v1356_v1 = vld [vmem:[#allocation4 + $0x10d0] sm:$0xff] }
 0x25e   : > { %2652 = vmatpush2.msra.mxu0 %v1040_v63  ;;  %2692 = vmatprep.subr.mxu1 %v1176_v17  ;;  %v1508_v63 = vld [vmem:[#allocation4 + $0x1590] sm:$0xff]  ;;  %v1355_v17 = vld [vmem:[#allocation4 + $0x10c8] sm:$0xff] }
 0x25f   : > { %2653 = vmatprep.subr.mxu0 %v1032_v18  ;;  %2693 = vmatpush1.msra.mxu1 %v1175_v19  ;;  %v1500_v18 = vld [vmem:[#allocation4 + $0x1550] sm:$0xff]  ;;  %v1347_v19 = vld [vmem:[#allocation4 + $0x1088] sm:$0xff] }
 0x260   : > { %2654 = vmatpush2.msra.mxu0 %v1031_v20  ;;  %2694 = vmatprep.subr.mxu1 %v1167_v21  ;;  %v1499_v20 = vld [vmem:[#allocation4 + $0x1548] sm:$0xff]  ;;  %v1346_v21 = vld [vmem:[#allocation4 + $0x1080] sm:$0xff] }
 0x261   : > { %2655 = vmatprep.subr.mxu0 %v1023_v23  ;;  %2695 = vmatpush1.msra.mxu1 %v1166_v24  ;;  %v1491_v23 = vld [vmem:[#allocation4 + $0x1508] sm:$0xff]  ;;  %v1338_v24 = vld [vmem:[#allocation4 + $0x1040] sm:$0xff] }
 0x262   : > { %2656 = vmatpush2.msra.mxu0 %v1022_v25  ;;  %2696 = vmatprep.subr.mxu1 %v1158_v26  ;;  %v1490_v25 = vld [vmem:[#allocation4 + $0x1500] sm:$0xff]  ;;  %v1337_v26 = vld [vmem:[#allocation4 + $0x1038] sm:$0xff] }
 0x263   : > { %2657 = vmatprep.subr.mxu0 %v1014_v28  ;;  %2697 = vmatpush1.msra.mxu1 %v1157_v29  ;;  %v1482_v28 = vld [vmem:[#allocation4 + $0x14c0] sm:$0xff]  ;;  %v1329_v29 = vld [vmem:[#allocation4 + $0xff8] sm:$0xff] }
 0x264   : > { %2658 = vmatpush2.msra.mxu0 %v1013_v31  ;;  %2698 = vmatprep.subr.mxu1 %v1149_v32  ;;  %v1481_v31 = vld [vmem:[#allocation4 + $0x14b8] sm:$0xff]  ;;  %v1328_v32 = vld [vmem:[#allocation4 + $0xff0] sm:$0xff] }
 0x265   : > { %2659 = vmatprep.subr.mxu0 %v1005_v34  ;;  %2699 = vmatpush1.msra.mxu1 %v1148_v35  ;;  %v1473_v34 = vld [vmem:[#allocation4 + $0x1478] sm:$0xff]  ;;  %v1320_v35 = vld [vmem:[#allocation4 + $0xfb0] sm:$0xff] }
 0x266   : > { %2660 = vmatpush2.msra.mxu0 %v1004_v36  ;;  %2700 = vmatprep.subr.mxu1 %v1140_v37  ;;  %v1472_v36 = vld [vmem:[#allocation4 + $0x1470] sm:$0xff]  ;;  %v1319_v37 = vld [vmem:[#allocation4 + $0xfa8] sm:$0xff] }
 0x267   : > { %2661 = vmatprep.subr.mxu0 %v996_v44  ;;  %2701 = vmatpush1.msra.mxu1 %v1139_v45  ;;  %v1464_v44 = vld [vmem:[#allocation4 + $0x1430] sm:$0xff]  ;;  %v1311_v45 = vld [vmem:[#allocation4 + $0xf68] sm:$0xff] }
 0x268   : > { %2662 = vmatpush2.msra.mxu0 %v995_v46  ;;  %2702 = vmatprep.subr.mxu1 %v1131_v47  ;;  %v1463_v46 = vld [vmem:[#allocation4 + $0x1428] sm:$0xff]  ;;  %v1310_v47 = vld [vmem:[#allocation4 + $0xf60] sm:$0xff] }
 0x269   : > { %2663 = vmatprep.subr.mxu0 %v987_v49  ;;  %2703 = vmatpush1.msra.mxu1 %v1130_v40  ;;  %v1455_v49 = vld [vmem:[#allocation4 + $0x13e8] sm:$0xff]  ;;  %v1302_v40 = vld [vmem:[#allocation4 + $0xf20] sm:$0xff] }
 0x26a   : > { %2664 = vmatpush2.msra.mxu0 %v986_v50  ;;  %2704 = vmatprep.subr.mxu1 %v1122_v51  ;;  %v1454_v50 = vld [vmem:[#allocation4 + $0x13e0] sm:$0xff]  ;;  %v1301_v51 = vld [vmem:[#allocation4 + $0xf18] sm:$0xff] }
 0x26b   : > { %2665 = vmatprep.subr.mxu0 %v978_v52  ;;  %2705 = vmatpush1.msra.mxu1 %v1121_v53  ;;  %v1446_v52 = vld [vmem:[#allocation4 + $0x13a0] sm:$0xff]  ;;  %v1293_v53 = vld [vmem:[#allocation4 + $0xed8] sm:$0xff] }
 0x26c   : > { %2666 = vmatpush2.msra.mxu0 %v977_v54  ;;  %2706 = vmatprep.subr.mxu1 %v1113_v55  ;;  %v1445_v54 = vld [vmem:[#allocation4 + $0x1398] sm:$0xff]  ;;  %v1292_v55 = vld [vmem:[#allocation4 + $0xed0] sm:$0xff] }
 0x26d   : > { %2667 = vmatprep.subr.mxu0 %v969_v42  ;;  %2707 = vmatpush1.msra.mxu1 %v1112_v60  ;;  %v1437_v42 = vld [vmem:[#allocation4 + $0x1358] sm:$0xff]  ;;  %v1284_v60 = vld [vmem:[#allocation4 + $0xe90] sm:$0xff] }
 0x26e   : > { %2668 = vmatpush2.msra.mxu0 %v968_v61  ;;  %2708 = vmatprep.subr.mxu1 %v1392_v62  ;;  %v1436_v61 = vld [vmem:[#allocation4 + $0x1350] sm:$0xff]  ;;  %v1283_v62 = vld [vmem:[#allocation4 + $0xe88] sm:$0xff] }
 0x26f   : > { %2670 = vmatmul.mubr.f32.vlgmr.msra.gmra.mxu0 %v4409_v59  ;;  %2709 = vmatpush2.msra.mxu1 %v1391_v0  ;;  %v1428_v0 = vld [vmem:[#allocation4 + $0x1310] sm:$0xff] }
 0x270   : > { %2747 = vmatprep.subr.mxu0 %v1536_v2  ;;  %2710 = vmatprep.subr.mxu1 %v1383_v41  ;;  %v1275_v2 = vld [vmem:[#allocation4 + $0xe48] sm:$0xff] }
 0x271   : > { %2748 = vmatpush1.msra.mxu0 %v1535_v3  ;;  %2811 = vmatprep.mubr.f32.mxu0 %v4433_v4  ;;  %v1427_v41 = vld [vmem:[#allocation4 + $0x1308] sm:$0xff]  ;;  %v1274_v3 = vld [vmem:[#allocation4 + $0xe40] sm:$0xff] }
 0x272   : > { %2711 = vmatpush2.msra.mxu1 %v1382_v5  ;;  %2749 = vmatprep.subr.mxu0 %v1527_v6  ;;  %v1419_v5 = vld [vmem:[#allocation4 + $0x12c8] sm:$0xff]  ;;  %v1266_v6 = vld [vmem:[#allocation4 + $0xe00] sm:$0xff] }
 0x273   : > { %2712 = vmatprep.subr.mxu1 %v1374_v7  ;;  %2750 = vmatpush1.msra.mxu0 %v1526_v8  ;;  %v1418_v7 = vld [vmem:[#allocation4 + $0x12c0] sm:$0xff]  ;;  %v1265_v8 = vld [vmem:[#allocation4 + $0xdf8] sm:$0xff] }
 0x274   : > { %2713 = vmatpush2.msra.mxu1 %v1373_v11  ;;  %2751 = vmatprep.subr.mxu0 %v1518_v12  ;;  %v1410_v11 = vld [vmem:[#allocation4 + $0x1280] sm:$0xff]  ;;  %v1257_v12 = vld [vmem:[#allocation4 + $0xdb8] sm:$0xff] }
 0x275   : > { %2714 = vmatprep.subr.mxu1 %v1365_v13  ;;  %2752 = vmatpush1.msra.mxu0 %v1517_v14  ;;  %v1409_v13 = vld [vmem:[#allocation4 + $0x1278] sm:$0xff]  ;;  %v1256_v14 = vld [vmem:[#allocation4 + $0xdb0] sm:$0xff] }
 0x276   : > { %2715 = vmatpush2.msra.mxu1 %v1364_v15  ;;  %2753 = vmatprep.subr.mxu0 %v1509_v16  ;;  %v1401_v15 = vld [vmem:[#allocation4 + $0x1238] sm:$0xff]  ;;  %v1400_v16 = vld [vmem:[#allocation4 + $0x1230] sm:$0xff] }
 0x277   : > { %2716 = vmatprep.subr.mxu1 %v1356_v1  ;;  %2754 = vmatpush1.msra.mxu0 %v1508_v63  ;;  %v1698_v1 = vld [vmem:[#allocation4 + $0x1b80] sm:$0xff]  ;;  %v1680_v63 = vld [vmem:[#allocation4 + $0x1af0] sm:$0xff] }
 0x278   : > { %2717 = vmatpush2.msra.mxu1 %v1355_v17  ;;  %2755 = vmatprep.subr.mxu0 %v1500_v18  ;;  %v1697_v17 = vld [vmem:[#allocation4 + $0x1b78] sm:$0xff]  ;;  %v1679_v18 = vld [vmem:[#allocation4 + $0x1ae8] sm:$0xff] }
 0x279   : > { %2718 = vmatprep.subr.mxu1 %v1347_v19  ;;  %2756 = vmatpush1.msra.mxu0 %v1499_v20  ;;  %v1689_v19 = vld [vmem:[#allocation4 + $0x1b38] sm:$0xff]  ;;  %v1671_v20 = vld [vmem:[#allocation4 + $0x1aa8] sm:$0xff] }
 0x27a   : > { %2719 = vmatpush2.msra.mxu1 %v1346_v21  ;;  %2757 = vmatprep.subr.mxu0 %v1491_v23  ;;  %v1688_v21 = vld [vmem:[#allocation4 + $0x1b30] sm:$0xff]  ;;  %v1670_v23 = vld [vmem:[#allocation4 + $0x1aa0] sm:$0xff] }
 0x27b   : > { %2720 = vmatprep.subr.mxu1 %v1338_v24  ;;  %2758 = vmatpush1.msra.mxu0 %v1490_v25  ;;  %v1105_v24 = vld [vmem:[#allocation4 + $0x8f8] sm:$0xff]  ;;  %v1662_v25 = vld [vmem:[#allocation4 + $0x1a60] sm:$0xff] }
 0x27c   : > { %2721 = vmatpush2.msra.mxu1 %v1337_v26  ;;  %2759 = vmatprep.subr.mxu0 %v1482_v28  ;;  %v961_v26 = vld [vmem:[#allocation4 + $0x478] sm:$0xff] }
 0x27d   : > { %2722 = vmatprep.subr.mxu1 %v1329_v29  ;;  %2760 = vmatpush1.msra.mxu0 %v1481_v31  ;;  %v1661_v28 = vld [vmem:[#allocation4 + $0x1a58] sm:$0xff]  ;;  %v1096_v29 = vld [vmem:[#allocation4 + $0x8b0] sm:$0xff] }
 0x27e   : > { %2723 = vmatpush2.msra.mxu1 %v1328_v32  ;;  %2761 = vmatprep.subr.mxu0 %v1473_v34  ;;  %v1653_v31 = vld [vmem:[#allocation4 + $0x1a18] sm:$0xff]  ;;  %v952_v32 = vld [vmem:[#allocation4 + $0x430] sm:$0xff] }
 0x27f   : > { %2724 = vmatprep.subr.mxu1 %v1320_v35  ;;  %2762 = vmatpush1.msra.mxu0 %v1472_v36  ;;  %v1652_v34 = vld [vmem:[#allocation4 + $0x1a10] sm:$0xff]  ;;  %v1087_v35 = vld [vmem:[#allocation4 + $0x868] sm:$0xff] }
 0x280   : > { %2725 = vmatpush2.msra.mxu1 %v1319_v37  ;;  %2763 = vmatprep.subr.mxu0 %v1464_v44  ;;  %v1644_v36 = vld [vmem:[#allocation4 + $0x19d0] sm:$0xff]  ;;  %v943_v37 = vld [vmem:[#allocation4 + $0x3e8] sm:$0xff] }
 0x281   : > { %2726 = vmatprep.subr.mxu1 %v1311_v45  ;;  %2764 = vmatpush1.msra.mxu0 %v1463_v46  ;;  %v1643_v44 = vld [vmem:[#allocation4 + $0x19c8] sm:$0xff]  ;;  %v1078_v45 = vld [vmem:[#allocation4 + $0x820] sm:$0xff] }
 0x282   : > { %2727 = vmatpush2.msra.mxu1 %v1310_v47  ;;  %2765 = vmatprep.subr.mxu0 %v1455_v49  ;;  %v1635_v46 = vld [vmem:[#allocation4 + $0x1988] sm:$0xff]  ;;  %v934_v47 = vld [vmem:[#allocation4 + $0x3a0] sm:$0xff] }
 0x283   : > { %2728 = vmatprep.subr.mxu1 %v1302_v40  ;;  %2766 = vmatpush1.msra.mxu0 %v1454_v50  ;;  %v1634_v49 = vld [vmem:[#allocation4 + $0x1980] sm:$0xff]  ;;  %v1069_v40 = vld [vmem:[#allocation4 + $0x7d8] sm:$0xff] }
 0x284   : > { %2729 = vmatpush2.msra.mxu1 %v1301_v51  ;;  %2767 = vmatprep.subr.mxu0 %v1446_v52  ;;  %v925_v50 = vld [vmem:[#allocation4 + $0x358] sm:$0xff]  ;;  %v1060_v52 = vld [vmem:[#allocation4 + $0x790] sm:$0xff] }
 0x285   : > { %2730 = vmatprep.subr.mxu1 %v1293_v53  ;;  %2768 = vmatpush1.msra.mxu0 %v1445_v54  ;;  %v1625_v51 = vld [vmem:[#allocation4 + $0x1938] sm:$0xff]  ;;  %v916_v54 = vld [vmem:[#allocation4 + $0x310] sm:$0xff] }
 0x286   : > { %2731 = vmatpush2.msra.mxu1 %v1292_v55  ;;  %2769 = vmatprep.subr.mxu0 %v1437_v42  ;;  %v1617_v53 = vld [vmem:[#allocation4 + $0x18f8] sm:$0xff]  ;;  %v2103_v55 = vpop.f32.mrf.mxu0  ;;  %v2174_v42 = vpop.f32.mrf.mxu1 }
 0x287   : > { %2732 = vmatprep.subr.mxu1 %v1284_v60  ;;  %2770 = vmatpush1.msra.mxu0 %v1436_v61  ;;  %v1616_v60 = vld [vmem:[#allocation4 + $0x18f0] sm:$0xff]  ;;  %v1051_v61 = vld [vmem:[#allocation4 + $0x748] sm:$0xff] }
 0x288   : > { %2733 = vmatpush2.msra.mxu1 %v1283_v62  ;;  %2771 = vmatprep.subr.mxu0 %v1428_v0  ;;  %v1715_v62 = vrot.slane %v4456_v22, %v503_v39  ;;  %v1608_v0 = vld [vmem:[#allocation4 + $0x18b0] sm:$0xff]  ;;  %v1598_v39 = vld [vmem:[#allocation4 + $0x1860] sm:$0xff] }
 0x289   : > { %2734 = vmatprep.subr.mxu1 %v1275_v2  ;;  %2772 = vmatpush1.msra.mxu0 %v1427_v41  ;;  %v907_v2 = vld [vmem:[#allocation4 + $0x2c8] sm:$0xff] }
 0x28a   : > { %2735 = vmatpush2.msra.mxu1 %v1274_v3  ;;  %2773 = vmatprep.subr.mxu0 %v1419_v5  ;;  %v1607_v41 = vld [vmem:[#allocation4 + $0x18a8] sm:$0xff]  ;;  %v1042_v3 = vld [vmem:[#allocation4 + $0x700] sm:$0xff]  ;;  %v1719_v5 = vrot.slane %v4456_v22, %v507_v43 }
 0x28b   : > { %2736 = vmatprep.subr.mxu1 %v1266_v6  ;;  %2774 = vmatpush1.msra.mxu0 %v1418_v7  ;;  %v1599_v6 = vld [vmem:[#allocation4 + $0x1868] sm:$0xff]  ;;  %v898_v7 = vld [vmem:[#allocation4 + $0x280] sm:$0xff] }
 0x28c   : > { %2737 = vmatpush2.msra.mxu1 %v1265_v8  ;;  %2775 = vmatprep.subr.mxu0 %v1410_v11  ;;  %v2105_v8 = vpop.f32.mrf.mxu0  ;;  %v2176_v11 = vpop.f32.mrf.mxu1 }
 0x28d   : > { %2738 = vmatprep.subr.mxu1 %v1257_v12  ;;  %2776 = vmatpush1.msra.mxu0 %v1409_v13  ;;  %v1033_v12 = vld [vmem:[#allocation4 + $0x6b8] sm:$0xff]  ;;  %v2104_v13 = vadd.f32 %v2103_v55, %v1715_v62  ;;  %v2106_v43 = vadd.f32 %v2105_v8, %v1719_v5  ;;  %v979_v55 = vld [vmem:[#allocation4 + $0x508] sm:$0xff]  ;;  %v1672_v8 = vld [vmem:[#allocation4 + $0x1ab0] sm:$0xff] }
 0x28e   : > { %2739 = vmatpush2.msra.mxu1 %v1256_v14  ;;  %2777 = vmatprep.subr.mxu0 %v1401_v15  ;;  %v1590_v14 = vld [vmem:[#allocation4 + $0x1820] sm:$0xff]  ;;  %v889_v15 = vld [vmem:[#allocation4 + $0x238] sm:$0xff]  ;;  %v1375_v5 = vld [vmem:[#allocation4 + $0x1168] sm:$0xff] }
 0x28f   : > { %2741 = vmatmul.mubr.f32.vlgmr.msra.gmra.mxu1 %v4403_v56  ;;  %2778 = vmatpush1.msra.mxu0 %v1400_v16  ;;  %v1589_v16 = vld [vmem:[#allocation4 + $0x1818] sm:$0xff]  ;;  %v2175_v22 = vadd.f32 %v2174_v42, %v2104_v13  ;;  %v835_v42 = vld [vmem:[#allocation4 + $0x88] sm:$0xff] }
 0x290   : > { %2846 = vmatprep.subr.mxu1 %v1698_v1  ;;  %2779 = vmatprep.subr.mxu0 %v1680_v63  ;;  %v1024_v1 = vld [vmem:[#allocation4 + $0x670] sm:$0xff]  ;;  %v1581_v63 = vld [vmem:[#allocation4 + $0x17d8] sm:$0xff]  ;;  %v1663_v13 = vld [vmem:[#allocation4 + $0x1a68] sm:$0xff] }
 0x291   : > { %2847 = vmatpush1.msra.mxu1 %v1697_v17  ;;  %2780 = vmatpush2.msra.mxu0 %v1679_v18  ;;  %v880_v17 = vld [vmem:[#allocation4 + $0x1f0] sm:$0xff]  ;;  %v2316_v18 = vpop.f32.mrf.mxu1  ;;  %v1249_v62 = vld [vmem:[#allocation4 + $0xd78] sm:$0xff] }
 0x292   : > { %2848 = vmatprep.subr.mxu1 %v1689_v19  ;;  %2781 = vmatprep.subr.mxu0 %v1671_v20  ;;  %v1580_v19 = vld [vmem:[#allocation4 + $0x17d0] sm:$0xff]  ;;  %v1015_v20 = vld [vmem:[#allocation4 + $0x628] sm:$0xff] }
 0x293   : > { %2849 = vmatpush1.msra.mxu1 %v1688_v21  ;;  %2882 = vmatprep.mubr.f32.mxu1 %v3590_v9 }
 0x294   : > { %2782 = vmatpush2.msra.mxu0 %v1670_v23  ;;  %3291 = vmatmul.mubr.msk.f32.vlgmr.msra.gmra.mxu1 %vm1749_vm0, %v4420_v48  ;;  %v2177_v23 = vadd.f32 %v2176_v11, %v2106_v43  ;;  %v1366_v11 = vld [vmem:[#allocation4 + $0x1120] sm:$0xff]  ;;  %v1204_v43 = vld [vmem:[#allocation4 + $0xc10] sm:$0xff] }
 0x295   : > { %3331 = vmatprep.subr.mxu1 %v1105_v24  ;;  %2783 = vmatprep.subr.mxu0 %v1662_v25  ;;  %v1572_v24 = vld [vmem:[#allocation4 + $0x1790] sm:$0xff]  ;;  %v871_v25 = vld [vmem:[#allocation4 + $0x1a8] sm:$0xff] }
 0x296   : > { %3332 = vmatpush3.msra.mxu1 %v961_v26  ;;  %2953 = vmatprep.mubr.f32.mxu1 %v4405_v57  ;;  %v1626_v57 = vld [vmem:[#allocation4 + $0x1940] sm:$0xff] }
 0x297   : > { %2784 = vmatpush2.msra.mxu0 %v1661_v28  ;;  %3333 = vmatprep.subr.mxu1 %v1096_v29  ;;  %v1571_v28 = vld [vmem:[#allocation4 + $0x1788] sm:$0xff]  ;;  %v1006_v29 = vld [vmem:[#allocation4 + $0x5e0] sm:$0xff] }
 0x298   : > { %2785 = vmatprep.subr.mxu0 %v1653_v31  ;;  %3334 = vmatpush3.msra.mxu1 %v952_v32  ;;  %v1563_v32 = vld [vmem:[#allocation4 + $0x1748] sm:$0xff] }
 0x299   : > { %2786 = vmatpush2.msra.mxu0 %v1652_v34  ;;  %3335 = vmatprep.subr.mxu1 %v1087_v35  ;;  %v862_v34 = vld [vmem:[#allocation4 + $0x160] sm:$0xff] }
 0x29a   : > { %2787 = vmatprep.subr.mxu0 %v1644_v36  ;;  %3336 = vmatpush3.msra.mxu1 %v943_v37  ;;  %v2318_v37 = vpop.f32.mrf.mxu1 }
 0x29b   : > { %2788 = vmatpush2.msra.mxu0 %v1643_v44  ;;  %3337 = vmatprep.subr.mxu1 %v1078_v45  ;;  %v1562_v44 = vld [vmem:[#allocation4 + $0x1740] sm:$0xff]  ;;  %v997_v45 = vld [vmem:[#allocation4 + $0x598] sm:$0xff] }
 0x29c   : > { %2789 = vmatprep.subr.mxu0 %v1635_v46  ;;  %3338 = vmatpush3.msra.mxu1 %v934_v47  ;;  %v1554_v47 = vld [vmem:[#allocation4 + $0x1700] sm:$0xff] }
 0x29d   : > { %2790 = vmatpush2.msra.mxu0 %v1634_v49  ;;  %3339 = vmatprep.subr.mxu1 %v1069_v40  ;;  %v853_v49 = vld [vmem:[#allocation4 + $0x118] sm:$0xff] }
 0x29e   : > { %2791 = vmatprep.subr.mxu0 %v1626_v57  ;;  %3340 = vmatpush3.msra.mxu1 %v925_v50  ;;  %v1553_v57 = vld [vmem:[#allocation4 + $0x16f8] sm:$0xff]  ;;  %v988_v50 = vld [vmem:[#allocation4 + $0x550] sm:$0xff] }
 0x29f   : > { %2792 = vmatpush2.msra.mxu0 %v1625_v51  ;;  %3341 = vmatprep.subr.mxu1 %v1060_v52  ;;  %v1545_v52 = vld [vmem:[#allocation4 + $0x16b8] sm:$0xff] }
 0x2a0   : > { %2793 = vmatprep.subr.mxu0 %v1617_v53  ;;  %3342 = vmatpush3.msra.mxu1 %v916_v54  ;;  %v844_v53 = vld [vmem:[#allocation4 + $0xd0] sm:$0xff] }
 0x2a1   : > { %2794 = vmatpush2.msra.mxu0 %v1616_v60  ;;  %3343 = vmatprep.subr.mxu1 %v1051_v61  ;;  %v1544_v54 = vld [vmem:[#allocation4 + $0x16b0] sm:$0xff]  ;;  %v1393_v60 = vld [vmem:[#allocation4 + $0x11f8] sm:$0xff]  ;;  %v970_v61 = vld [vmem:[#allocation4 + $0x4c0] sm:$0xff] }
 0x2a2   : > { %2795 = vmatprep.subr.mxu0 %v1608_v0  ;;  %3344 = vmatpush3.msra.mxu1 %v907_v2  ;;  %v826_v0 = vld [vmem:[#allocation4 + $0x40] sm:$0xff]  ;;  %v1384_v2 = vld [vmem:[#allocation4 + $0x11b0] sm:$0xff] }
 0x2a3   : > { %2796 = vmatpush2.msra.mxu0 %v1607_v41  ;;  %3345 = vmatprep.subr.mxu1 %v1042_v3  ;;  %v1240_v41 = vld [vmem:[#allocation4 + $0xd30] sm:$0xff]  ;;  %v1681_v3 = vld [vmem:[#allocation4 + $0x1af8] sm:$0xff] }
 0x2a4   : > { %2797 = vmatprep.subr.mxu0 %v1599_v6  ;;  %3346 = vmatpush3.msra.mxu1 %v898_v7  ;;  %v1537_v6 = vld [vmem:[#allocation4 + $0x1678] sm:$0xff]  ;;  %v1231_v7 = vld [vmem:[#allocation4 + $0xce8] sm:$0xff] }
 0x2a5   : > { %2798 = vmatpush2.msra.mxu0 %v1598_v39  ;;  %3347 = vmatprep.subr.mxu1 %v1033_v12  ;;  %v1528_v39 = vld [vmem:[#allocation4 + $0x1630] sm:$0xff]  ;;  %v1222_v12 = vld [vmem:[#allocation4 + $0xca0] sm:$0xff] }
 0x2a6   : > { %2799 = vmatprep.subr.mxu0 %v1590_v14  ;;  %3348 = vmatpush3.msra.mxu1 %v889_v15  ;;  %v2245_v21 = vpop.f32.mrf.mxu0  ;;  %v1519_v14 = vld [vmem:[#allocation4 + $0x15e8] sm:$0xff]  ;;  %v1213_v15 = vld [vmem:[#allocation4 + $0xc58] sm:$0xff] }
 0x2a7   : > { %2800 = vmatpush2.msra.mxu0 %v1589_v16  ;;  %3349 = vmatprep.subr.mxu1 %v1024_v1  ;;  %v2246_v26 = vadd.f32 %v2245_v21, %v2175_v22  ;;  %v1348_v16 = vld [vmem:[#allocation4 + $0x1090] sm:$0xff]  ;;  %v1510_v1 = vld [vmem:[#allocation4 + $0x15a0] sm:$0xff]  ;;  %v1645_v22 = vld [vmem:[#allocation4 + $0x19d8] sm:$0xff] }
 0x2a8   : > { %2801 = vmatprep.subr.mxu0 %v1581_v63  ;;  %3350 = vmatpush3.msra.mxu1 %v880_v17  ;;  %v2247_v31 = vpop.f32.mrf.mxu0  ;;  %v1501_v63 = vld [vmem:[#allocation4 + $0x1558] sm:$0xff]  ;;  %v1195_v17 = vld [vmem:[#allocation4 + $0xbc8] sm:$0xff]  ;;  %v1186_v21 = vld [vmem:[#allocation4 + $0xb80] sm:$0xff] }
 0x2a9   : > { %2802 = vmatpush2.msra.mxu0 %v1580_v19  ;;  %3351 = vmatprep.subr.mxu1 %v1015_v20  ;;  %v2317_v35 = vadd.f32 %v2316_v18, %v2246_v26  ;;  %v2248_v36 = vadd.f32 %v2247_v31, %v2177_v23  ;;  %v1636_v18 = vld [vmem:[#allocation4 + $0x1990] sm:$0xff]  ;;  %v1330_v19 = vld [vmem:[#allocation4 + $0x1000] sm:$0xff]  ;;  %v1627_v23 = vld [vmem:[#allocation4 + $0x1948] sm:$0xff] }
 0x2aa   : > { %2803 = vmatprep.subr.mxu0 %v1572_v24  ;;  %3352 = vmatpush3.msra.mxu1 %v871_v25  ;;  %v1492_v20 = vld [vmem:[#allocation4 + $0x1510] sm:$0xff]  ;;  %v1321_v24 = vld [vmem:[#allocation4 + $0xfb8] sm:$0xff]  ;;  %v1483_v25 = vld [vmem:[#allocation4 + $0x14c8] sm:$0xff] }
 0x2ab   : > { %2804 = vmatpush2.msra.mxu0 %v1571_v28  ;;  %3353 = vmatprep.subr.mxu1 %v1006_v29  ;;  %v3171_v46 = vmax.f32 %v2317_v35, 0.0  ;;  %v2319_v40 = vadd.f32 %v2318_v37, %v2248_v36  ;;  %v1177_v26 = vld [vmem:[#allocation4 + $0xb38] sm:$0xff]  ;;  %v1618_v28 = vld [vmem:[#allocation4 + $0x1900] sm:$0xff]  ;;  %v1312_v29 = vld [vmem:[#allocation4 + $0xf70] sm:$0xff] }
 0x2ac   : > { %2805 = vmatprep.subr.mxu0 %v1563_v32  ;;  %3354 = vmatpush3.msra.mxu1 %v862_v34  ;;  %v1474_v31 = vld [vmem:[#allocation4 + $0x1480] sm:$0xff]  ;;  %v1168_v32 = vld [vmem:[#allocation4 + $0xaf0] sm:$0xff]  ;;  %v1609_v34 = vld [vmem:[#allocation4 + $0x18b8] sm:$0xff] }
 0x2ad   : > { %2806 = vmatpush2.msra.mxu0 %v1562_v44  ;;  %3355 = vmatprep.subr.mxu1 %v997_v45  ;;  %3180 = vst [vmem:[%s4468_s10 + $0x10] sm:$0xff] %v3171_v46  ;;  %v3172_v51 = vmax.f32 %v2319_v40, 0.0  ;;  %v1303_v35 = vld [vmem:[#allocation4 + $0xf28] sm:$0xff]  ;;  %v1465_v36 = vld [vmem:[#allocation4 + $0x1438] sm:$0xff]  ;;  %v1600_v44 = vld [vmem:[#allocation4 + $0x1870] sm:$0xff] }
 0x2ae   : > { %2807 = vmatprep.subr.mxu0 %v1554_v47  ;;  %3356 = vmatpush3.msra.mxu1 %v853_v49  ;;  %v1159_v37 = vld [vmem:[#allocation4 + $0xaa8] sm:$0xff]  ;;  %v1294_v45 = vld [vmem:[#allocation4 + $0xee0] sm:$0xff]  ;;  %v1456_v46 = vld [vmem:[#allocation4 + $0x13f0] sm:$0xff] }
 0x2af   : > { %2808 = vmatpush2.msra.mxu0 %v1553_v57  ;;  %3357 = vmatprep.subr.mxu1 %v988_v50  ;;  %3181 = vst [vmem:[%s4468_s10 + $0x18] sm:$0xff] %v3172_v51  ;;  %v1150_v47 = vld [vmem:[#allocation4 + $0xa60] sm:$0xff]  ;;  %v1591_v49 = vld [vmem:[#allocation4 + $0x1828] sm:$0xff]  ;;  %v1285_v40 = vld [vmem:[#allocation4 + $0xe98] sm:$0xff] }
 0x2b0   : > { %2809 = vmatprep.subr.mxu0 %v1545_v52  ;;  %3358 = vmatpush3.msra.mxu1 %v844_v53  ;;  %v1447_v57 = vld [vmem:[#allocation4 + $0x13a8] sm:$0xff]  ;;  %v1141_v50 = vld [vmem:[#allocation4 + $0xa18] sm:$0xff]  ;;  %v1582_v51 = vld [vmem:[#allocation4 + $0x17e0] sm:$0xff] }
 0x2b1   : > { %2810 = vmatpush2.msra.mxu0 %v1544_v54  ;;  %3359 = vmatprep.subr.mxu1 %v979_v55  ;;  %v1276_v52 = vld [vmem:[#allocation4 + $0xe50] sm:$0xff]  ;;  %v1438_v53 = vld [vmem:[#allocation4 + $0x1360] sm:$0xff]  ;;  %v1573_v55 = vld [vmem:[#allocation4 + $0x1798] sm:$0xff] }
 0x2b2   : > { %2812 = vmatmul.mubr.f32.vlgmr.msra.gmra.mxu0 %v4435_v10  ;;  %3360 = vmatpush3.msra.mxu1 %v835_v42  ;;  %v1132_v54 = vld [vmem:[#allocation4 + $0x9d0] sm:$0xff]  ;;  %v1267_v42 = vld [vmem:[#allocation4 + $0xe08] sm:$0xff] }
 0x2b3   : > { %3366 = vmatprep.subr.mxu0 %v1393_v60  ;;  %3361 = vmatprep.subr.mxu1 %v970_v61  ;;  %v1429_v60 = vld [vmem:[#allocation4 + $0x1318] sm:$0xff]  ;;  %v1123_v61 = vld [vmem:[#allocation4 + $0x988] sm:$0xff] }
 0x2b4   : > { %3367 = vmatpush3.msra.mxu0 %v1249_v62  ;;  %3023 = vmatprep.mubr.f32.mxu0 %v4407_v58  ;;  %v1357_v58 = vld [vmem:[#allocation4 + $0x10d8] sm:$0xff]  ;;  %v1564_v62 = vld [vmem:[#allocation4 + $0x1750] sm:$0xff] }
 0x2b5   : > { %3362 = vmatpush3.msra.mxu1 %v826_v0  ;;  %3368 = vmatprep.subr.mxu0 %v1384_v2  ;;  %v1258_v0 = vld [vmem:[#allocation4 + $0xdc0] sm:$0xff]  ;;  %v1420_v2 = vld [vmem:[#allocation4 + $0x12d0] sm:$0xff] }
 0x2b6   : > { %2954 = vmatmul.mubr.f32.vlgmr.msra.gmra.mxu1 %v4409_v59  ;;  %3369 = vmatpush3.msra.mxu0 %v1240_v41  ;;  %v1654_v59 = vld [vmem:[#allocation4 + $0x1a20] sm:$0xff] }
 0x2b7   : > { %3401 = vmatprep.subr.mxu1 %v1681_v3  ;;  %3370 = vmatprep.subr.mxu0 %v1375_v5  ;;  %v1114_v41 = vld [vmem:[#allocation4 + $0x940] sm:$0xff]  ;;  %v1555_v3 = vld [vmem:[#allocation4 + $0x1708] sm:$0xff] }
 0x2b8   : > { %3402 = vmatpush3.msra.mxu1 %v1537_v6  ;;  %3093 = vmatprep.mubr.f32.mxu1 %v4433_v4  ;;  %v1339_v4 = vld [vmem:[#allocation4 + $0x1048] sm:$0xff]  ;;  %v1546_v6 = vld [vmem:[#allocation4 + $0x16c0] sm:$0xff] }
 0x2b9   : > { %3371 = vmatpush3.msra.mxu0 %v1231_v7  ;;  %3403 = vmatprep.subr.mxu1 %v1672_v8  ;;  %v1411_v5 = vld [vmem:[#allocation4 + $0x1288] sm:$0xff]  ;;  %v1402_v8 = vld [vmem:[#allocation4 + $0x1240] sm:$0xff] }
 0x2ba   : > { %3372 = vmatprep.subr.mxu0 %v1366_v11  ;;  %3404 = vmatpush3.msra.mxu1 %v1528_v39  ;;  %v1699_v7 = vld [vmem:[#allocation4 + $0x1b88] sm:$0xff]  ;;  %v1690_v11 = vld [vmem:[#allocation4 + $0x1b40] sm:$0xff] }
 0x2bb   : > { %3373 = vmatpush3.msra.mxu0 %v1222_v12  ;;  %3405 = vmatprep.subr.mxu1 %v1663_v13  ;;  %v3490_v12 = vld [vmem:[#allocation6] sm:$0xff] }
 0x2bc   : > { %3374 = vmatprep.subr.mxu0 %v1357_v58  ;;  %3406 = vmatpush3.msra.mxu1 %v1519_v14  ;;  %v1723_v13 = vrot.slane %v3490_v12, %v511_v33  ;;  %v1727_v58 = vrot.slane %v3490_v12, %v515_v30  ;;  %v1734_v30 = vsub.s32 7, %v4383_v38 }
 0x2bd   : > { %3375 = vmatpush3.msra.mxu0 %v1213_v15  ;;  %3407 = vmatprep.subr.mxu1 %v1654_v59 }
 0x2be   : > { %3376 = vmatprep.subr.mxu0 %v1348_v16  ;;  %3408 = vmatpush3.msra.mxu1 %v1510_v1 }
 0x2bf   : > { %3377 = vmatpush3.msra.mxu0 %v1204_v43  ;;  %3409 = vmatprep.subr.mxu1 %v1645_v22 }
 0x2c0   : > { %3378 = vmatprep.subr.mxu0 %v1339_v4  ;;  %3410 = vmatpush3.msra.mxu1 %v1501_v63 }
 0x2c1   : > { %3379 = vmatpush3.msra.mxu0 %v1195_v17  ;;  %3411 = vmatprep.subr.mxu1 %v1636_v18 }
 0x2c2   : > { %3380 = vmatprep.subr.mxu0 %v1330_v19  ;;  %3412 = vmatpush3.msra.mxu1 %v1492_v20 }
 0x2c3   : > { %3381 = vmatpush3.msra.mxu0 %v1186_v21  ;;  %3413 = vmatprep.subr.mxu1 %v1627_v23  ;;  %v1731_v23 = vrot.slane %v3490_v12, %v519_v27 }
 0x2c4   : > { %3382 = vmatprep.subr.mxu0 %v1321_v24  ;;  %3414 = vmatpush3.msra.mxu1 %v1483_v25  ;;  %v1735_v24 = vrot.slane %v3490_v12, %v1734_v30 }
 0x2c5   : > { %3383 = vmatpush3.msra.mxu0 %v1177_v26  ;;  %3415 = vmatprep.subr.mxu1 %v1618_v28 }
 0x2c6   : > { %3384 = vmatprep.subr.mxu0 %v1312_v29  ;;  %3416 = vmatpush3.msra.mxu1 %v1474_v31 }
 0x2c7   : > { %3385 = vmatpush3.msra.mxu0 %v1168_v32  ;;  %3417 = vmatprep.subr.mxu1 %v1609_v34 }
 0x2c8   : > { %3386 = vmatprep.subr.mxu0 %v1303_v35  ;;  %3418 = vmatpush3.msra.mxu1 %v1465_v36 }
 0x2c9   : > { %3387 = vmatpush3.msra.mxu0 %v1159_v37  ;;  %3419 = vmatprep.subr.mxu1 %v1600_v44 }
 0x2ca   : > { %3388 = vmatprep.subr.mxu0 %v1294_v45  ;;  %3420 = vmatpush3.msra.mxu1 %v1456_v46  ;;  %v2387_v39 = vpop.f32.mrf.mxu1 }
 0x2cb   : > { %3389 = vmatpush3.msra.mxu0 %v1150_v47  ;;  %3421 = vmatprep.subr.mxu1 %v1591_v49 }
 0x2cc   : > { %3390 = vmatprep.subr.mxu0 %v1285_v40  ;;  %3422 = vmatpush3.msra.mxu1 %v1447_v57  ;;  %v2389_v14 = vpop.f32.mrf.mxu1 }
 0x2cd   : > { %3391 = vmatpush3.msra.mxu0 %v1141_v50  ;;  %3423 = vmatprep.subr.mxu1 %v1582_v51  ;;  %v2390_v59 = vadd.f32 %v2389_v14, %v1727_v58  ;;  %v3287_v50 = vld [vmem:[#allocation6 + $0x8] ss:$0 sm:$0xff] }
 0x2ce   : > { %3392 = vmatprep.subr.mxu0 %v1276_v52  ;;  %3424 = vmatpush3.msra.mxu1 %v1438_v53 }
 0x2cf   : > { %3393 = vmatpush3.msra.mxu0 %v1132_v54  ;;  %3425 = vmatprep.subr.mxu1 %v1573_v55 }
 0x2d0   : > { %3394 = vmatprep.subr.mxu0 %v1267_v42  ;;  %3426 = vmatpush3.msra.mxu1 %v1429_v60 }
 0x2d1   : > { %3395 = vmatpush3.msra.mxu0 %v1123_v61  ;;  %3427 = vmatprep.subr.mxu1 %v1564_v62 }
 0x2d2   : > { %3396 = vmatprep.subr.mxu0 %v1258_v0  ;;  %3428 = vmatpush3.msra.mxu1 %v1420_v2 }
 0x2d3   : > { %3397 = vmatpush3.msra.mxu0 %v1114_v41  ;;  %3429 = vmatprep.subr.mxu1 %v1555_v3 }
 0x2d4   : > { %3024 = vmatmul.mubr.f32.vlgmr.msra.gmra.mxu0 %v4403_v56  ;;  %3430 = vmatpush3.msra.mxu1 %v1411_v5 }
 0x2d5   : > { %3439 = vmatprep.subr.mxu0 %v3590_v9  ;;  %3431 = vmatprep.subr.mxu1 %v1546_v6 }
 0x2d6   : > { %3440 = vmatpush3.msra.mxu0 %v1699_v7  ;;  %3432 = vmatpush3.msra.mxu1 %v1402_v8 }
 0x2d7   : > { %3441 = vmatprep.subr.mxu0 %v3590_v9  ;;  %3094 = vmatmul.mubr.f32.vlgmr.msra.gmra.mxu1 %v4435_v10  ;;  %v2388_v10 = vadd.f32 %v2387_v39, %v1723_v13 }
 0x2d8   : > { %3442 = vmatpush3.msra.mxu0 %v1690_v11  ;;  %3443 = vmatprep.mubr.msk.f32.mxu0 %vm3591_vm1, %v3590_v9 }
 0x2d9   : > { %3444 = vmatmul.mubr.msk.f32.vlgmr.msra.gmra.mxu0 %vm1749_vm0, %v4420_v48 }
 0x2e8   : > { %v2458_v56 = vpop.f32.mrf.mxu0 }
 0x2e9   : > { %v2459_v16 = vadd.f32 %v2458_v56, %v2388_v10 }
 0x2ea   : > { %v2460_v15 = vpop.f32.mrf.mxu0 }
 0x2eb   : > { %v2461_v43 = vadd.f32 %v2460_v15, %v2390_v59 }
 0x2ed   : > { %v2600_v9 = vpop.f32.mrf.mxu0 }
 0x2ef   : > { %v2602_v17 = vpop.f32.mrf.mxu0 }
 0x30d   : > { %v2529_v1 = vpop.f32.mrf.mxu1 }
 0x30e   : > { %v2530_v48 = vadd.f32 %v2529_v1, %v2459_v16 }
 0x30f   : > { %v2531_v22 = vpop.f32.mrf.mxu1 }
 0x310   : > { %v2601_v4 = vadd.f32 %v2600_v9, %v2530_v48  ;;  %v2532_v63 = vadd.f32 %v2531_v22, %v2461_v43 }
 0x312   : > { %v3173_v18 = vmax.f32 %v2601_v4, 0.0  ;;  %v2603_v33 = vadd.f32 %v2602_v17, %v2532_v63 }
 0x314   : > { %3182 = vst [vmem:[%s4468_s10 + $0x20] sm:$0xff] %v3173_v18  ;;  %v3174_v19 = vmax.f32 %v2603_v33, 0.0 }
 0x316   : > { %3183 = vst [vmem:[%s4468_s10 + $0x28] sm:$0xff] %v3174_v19 }
 0x32f   : > { %v2671_v20 = vpop.f32.mrf.mxu0 }
 0x330   : > { %v2672_v28 = vadd.f32 %v2671_v20, %v1731_v23 }
 0x331   : > { %v2673_v25 = vpop.f32.mrf.mxu0 }
 0x332   : > { %v2674_v29 = vadd.f32 %v2673_v25, %v1735_v24 }
 0x34f   : > { %v2742_v21 = vpop.f32.mrf.mxu1 }
 0x350   : > { %v2743_v31 = vadd.f32 %v2742_v21, %v2672_v28 }
 0x351   : > { %v2744_v26 = vpop.f32.mrf.mxu1 }
 0x352   : > { %v2745_v35 = vadd.f32 %v2744_v26, %v2674_v29 }
 0x354   : > { %v2884_v32 = vpop.f32.mrf.mxu1 }
 0x356   : > { %v2886_v46 = vpop.f32.mrf.mxu1 }
 0x372   : > { %v2813_v34 = vpop.f32.mrf.mxu0 }
 0x373   : > { %v2814_v36 = vadd.f32 %v2813_v34, %v2743_v31 }
 0x374   : > { %v2815_v37 = vpop.f32.mrf.mxu0 }
 0x375   : > { %v2885_v44 = vadd.f32 %v2884_v32, %v2814_v36  ;;  %v2816_v45 = vadd.f32 %v2815_v37, %v2745_v35 }
 0x376   : > { %v3363_v27 = vpop.f32.mrf.mxu1 }
 0x377   : > { %v3175_v47 = vmax.f32 %v2885_v44, 0.0  ;;  %v2887_v49 = vadd.f32 %v2886_v46, %v2816_v45 }
 0x378   : > { %v3364_v40 = vpop.f32.mrf.mxu1 }
 0x379   : > { %3184 = vst [vmem:[%s4468_s10 + $0x30] sm:$0xff] %v3175_v47  ;;  %v3176_v38 = vmax.f32 %v2887_v49, 0.0  ;;  %v3365_v57 = vadd.f32 %v3364_v40, %v3363_v27 }
 0x37b   : > { %3185 = vst [vmem:[%s4468_s10 + $0x38] sm:$0xff] %v3176_v38  ;;  %v2956_v53 = vadd.f32 %v3365_v57, %v3287_v50 }
 0x394   : > { %v3398_v51 = vpop.f32.mrf.mxu0 }
 0x396   : > { %v3399_v52 = vpop.f32.mrf.mxu0 }
 0x397   : > { %v3400_v54 = vadd.f32 %v3399_v52, %v3398_v51  ;;  %v3433_v55 = vpop.f32.mrf.mxu1 }
 0x399   : > { %v3026_v42 = vadd.f32 %v3400_v54, %v2956_v53  ;;  %v3165_v60 = vpop.f32.mrf.mxu0  ;;  %v3434_v61 = vpop.f32.mrf.mxu1 }
 0x39a   : > { %v3435_v62 = vadd.f32 %v3434_v61, %v3433_v55 }
 0x39b   : > { %v3445_v0 = vpop.f32.mrf.mxu0 }
 0x39c   : > { %v3096_v2 = vadd.f32 %v3435_v62, %v3026_v42 }
 0x39e   : > { %v3166_v41 = vadd.f32 %v3165_v60, %v3096_v2 }
 0x3a0   : > { %v3177_v3 = vmax.f32 %v3166_v41, 0.0 }
 0x3a2   : > { %3186 = vst [vmem:[%s4468_s10 + $0x40] sm:$0xff] %v3177_v3 }
 0x3a3 PF: > { %s17_s18 = sadd.s32 1, %s3583_s18  }
 0x3a4   : > { %p14_p3 = scmp.ge.s32.totalorder %s17_s18, 4  }
 0x3a6   :  { %16 = sbr.rel (!%p14_p3) target bundleno = 2 (0x2), region = 83 }
 0x3ab   :  { %3208 = vsyncpa [#allocation3], 1 }
 0x3ac   :  { %3210 = vsyncpa [#allocation3 + $0x1], 1 }
 0x3ad   :  { %3211 = vsyncpa [#allocation5], 1 }

</bundles_post_ra>
